<compile_context>
chip_gen: v7x
topology: tpu7x:2x2x1
jax: 0.10.0
libtpu: 0.0.40
codegen_flags: <defaults>
</compile_context>

<pallas_src>
import jax
import jax.numpy as jnp
from jax import lax
from jax.experimental import pallas as pl
from jax.experimental.pallas import tpu as pltpu

NEG = -1e9
VMEM_LIMIT = 48 * 1024 * 1024  # raised scoped-VMEM budget, still < v7x physical


def _unroll(n):
    # Full unroll for short fixed trip counts (LLO scheduler visibility),
    # modest factor otherwise.
    return True if n <= 32 else 8


# ----------------------------------------------------------------------------
# Kernel 1: fused  embedding-projection + bidirectional LSTM + fc head + bin head
# ----------------------------------------------------------------------------
def bilstm_heads_kernel(emb_ref, wif_ref, wib_ref, whcat_ref, bf_ref, bb_ref,
                        wfc_ref, bfc_ref, wbin_ref, bbin_ref,
                        scores_ref, bin_ref,
                        xgf_scr, xgb_scr, hf_scr, hb_scr):
    T, TB, E = emb_ref.shape
    H4 = wif_ref.shape[1]
    H = H4 // 4
    Kp = wfc_ref.shape[1]

    # --- input projections hoisted out of the recurrence: two big MXU matmuls ---
    x = emb_ref[...].reshape(T * TB, E)
    xgf_scr[...] = (jnp.dot(x, wif_ref[...], preferred_element_type=jnp.float32)
                    + bf_ref[...]).reshape(T, TB, H4)
    xgb_scr[...] = (jnp.dot(x, wib_ref[...], preferred_element_type=jnp.float32)
                    + bb_ref[...]).reshape(T, TB, H4)

    whcat = whcat_ref[...]                      # (2H, 8H) = blockdiag(whf, whb)

    def cell(gates, c):
        i = jax.nn.sigmoid(gates[:, 0:H])
        f = jax.nn.sigmoid(gates[:, H:2 * H])
        g = jnp.tanh(gates[:, 2 * H:3 * H])
        o = jax.nn.sigmoid(gates[:, 3 * H:4 * H])
        c_new = f * c + i * g
        return o * jnp.tanh(c_new), c_new

    def step(t, carry):
        hf, cf, hb, cb = carry
        t_rev = T - 1 - t
        # one fused recurrent matmul per step: [hf | hb] @ blockdiag(whf, whb)
        gh = jnp.dot(jnp.concatenate([hf, hb], axis=1), whcat,
                     preferred_element_type=jnp.float32)            # (TB, 8H)
        hf, cf = cell(xgf_scr[t] + gh[:, :H4], cf)
        hb, cb = cell(xgb_scr[t_rev] + gh[:, H4:], cb)
        hf_scr[pl.ds(t, 1)] = hf[None]          # time-major contiguous slab store
        hb_scr[pl.ds(t_rev, 1)] = hb[None]
        return hf, cf, hb, cb

    zeros = jnp.zeros((TB, H), jnp.float32)
    lax.fori_loop(0, T, step, (zeros, zeros, zeros, zeros), unroll=_unroll(T))

    # --- heads (dropout = identity in eval) ---
    hf_all = hf_scr[...]                        # (T, TB, H)
    hb_all = hb_scr[...]
    wfc = wfc_ref[...]
    s = (jnp.dot(hf_all.reshape(T * TB, H), wfc[:H, :],
                 preferred_element_type=jnp.float32)
         + jnp.dot(hb_all.reshape(T * TB, H), wfc[H:, :],
                   preferred_element_type=jnp.float32)
         + bfc_ref[...])
    scores_ref[...] = s.reshape(T, TB, Kp)      # time-major emissions for the CRF

    # mean over ALL timesteps (matches plain nn.LSTM on padded input + torch.mean)
    xm_f = jnp.mean(hf_all, axis=0)             # (TB, H)
    xm_b = jnp.mean(hb_all, axis=0)
    wbin = wbin_ref[...]
    bin_ref[...] = (jnp.dot(xm_f, wbin[:H, :], preferred_element_type=jnp.float32)
                    + jnp.dot(xm_b, wbin[H:, :], preferred_element_type=jnp.float32)
                    + bbin_ref[...])


# ----------------------------------------------------------------------------
# Kernel 2: CRF Viterbi decode (torchcrf semantics, masked), time-major emissions
# ----------------------------------------------------------------------------
def crf_decode_kernel(em_ref, maskx_ref, start_ref, end_ref, trans_ref,
                      tags_ref, hist_ref):
    T, TB, Kp = em_ref.shape
    trans = trans_ref[...]                                          # (Kp, Kp)

    # --- forward (max-product) pass ---
    score0 = start_ref[...] + em_ref[0]                             # (TB, Kp)

    def fwd_body(t, score):
        e_t = em_ref[t]                                             # (TB, Kp)
        m_t = maskx_ref[:, pl.ds(t, 1)]                             # (TB, 1)
        nxt = (score[:, :, None] + trans[None, :, :]
               + e_t[:, None, :])                                   # (TB, Kprev, Kcur)
        best = jnp.max(nxt, axis=1)                                 # (TB, Kp)
        jidx = lax.broadcasted_iota(jnp.int32, (TB, Kp, Kp), 1)
        amax = jnp.min(jnp.where(nxt >= best[:, None, :], jidx, Kp), axis=1)
        hist_ref[pl.ds(t - 1, 1)] = amax[None]
        return jnp.where(m_t > 0, best, score)

    score = lax.fori_loop(1, T, fwd_body, score0, unroll=_unroll(T))
    score = score + end_ref[...]                                    # (TB, Kp)

    # best last tag (first index attaining the max, per batch row)
    kidx = lax.broadcasted_iota(jnp.int32, (TB, Kp), 1)
    smax = jnp.max(score, axis=1, keepdims=True)
    cur0 = jnp.min(jnp.where(score >= smax, kidx, Kp), axis=1, keepdims=True)

    # --- backtrace (hist slot T-1 is never written; its read is masked dead) ---
    def bwd_body(i, cur):
        t = T - 1 - i
        m_t = maskx_ref[:, pl.ds(t, 1)]                             # (TB, 1)
        m_next = maskx_ref[:, pl.ds(t + 1, 1)]                      # (TB, 1) extended mask
        h_t = hist_ref[t]                                           # (TB, Kp)
        onehot = lax.broadcasted_iota(jnp.int32, (TB, Kp), 1) == cur
        gathered = jnp.sum(jnp.where(onehot, h_t, 0), axis=1, keepdims=True)
        take_hist = jnp.logical_and(m_t > 0, m_next > 0)            # t < seq_end
        cur_new = jnp.where(take_hist, gathered, cur)
        tags_ref[:, pl.ds(t, 1)] = jnp.where(m_t > 0, cur_new, 0)
        return cur_new

    lax.fori_loop(0, T, bwd_body, cur0, unroll=_unroll(T))


# ----------------------------------------------------------------------------
# Wrappers
# ----------------------------------------------------------------------------
def run_bilstm_heads(emb_tm, wif, wib, whcat, bf, bb, wfc, bfc, wbin, bbin):
    T, B, E = emb_tm.shape
    H4 = wif.shape[1]
    H = H4 // 4
    Kp = wfc.shape[1]
    TB = B                                   # batch block (== B here; multiple of 8 for tiling)
    nb = pl.cdiv(B, TB)

    def whole(shape):
        return pl.BlockSpec(shape, lambda b: (0,) * len(shape))

    in_specs = [
        pl.BlockSpec((T, TB, E), lambda b: (0, b, 0)),
        whole(wif.shape), whole(wib.shape), whole(whcat.shape),
        whole(bf.shape), whole(bb.shape),
        whole(wfc.shape), whole(bfc.shape), whole(wbin.shape), whole(bbin.shape),
    ]
    out_specs = (pl.BlockSpec((T, TB, Kp), lambda b: (0, b, 0)),
                 pl.BlockSpec((TB, 2), lambda b: (b, 0)))

    scores_tm, bin_scores = pl.pallas_call(
        bilstm_heads_kernel,
        out_shape=(jax.ShapeDtypeStruct((T, B, Kp), jnp.float32),
                   jax.ShapeDtypeStruct((B, 2), jnp.float32)),
        grid=(nb,),
        in_specs=in_specs,
        out_specs=out_specs,
        scratch_shapes=[pltpu.VMEM((T, TB, H4), jnp.float32),   # fwd input-proj gates
                        pltpu.VMEM((T, TB, H4), jnp.float32),   # bwd input-proj gates
                        pltpu.VMEM((T, TB, H), jnp.float32),    # fwd hidden states
                        pltpu.VMEM((T, TB, H), jnp.float32)],   # bwd hidden states
        compiler_params=pltpu.CompilerParams(
            dimension_semantics=("parallel",),
            vmem_limit_bytes=VMEM_LIMIT),
    )(emb_tm, wif, wib, whcat, bf, bb, wfc, bfc, wbin, bbin)
    return scores_tm, bin_scores


def run_crf_decode(scores_tm, mask_ext, start, end, trans):
    T, B, Kp = scores_tm.shape
    TB = B
    nb = pl.cdiv(B, TB)
    tags = pl.pallas_call(
        crf_decode_kernel,
        out_shape=jax.ShapeDtypeStruct((B, T), jnp.int32),
        grid=(nb,),
        in_specs=[pl.BlockSpec((T, TB, Kp), lambda b: (0, b, 0)),
                  pl.BlockSpec((TB, T + 1), lambda b: (b, 0)),
                  pl.BlockSpec((1, Kp), lambda b: (0, 0)),
                  pl.BlockSpec((1, Kp), lambda b: (0, 0)),
                  pl.BlockSpec((Kp, Kp), lambda b: (0, 0))],
        out_specs=pl.BlockSpec((TB, T), lambda b: (b, 0)),
        scratch_shapes=[pltpu.VMEM((T, TB, Kp), jnp.int32)],    # Viterbi backpointers
        compiler_params=pltpu.CompilerParams(
            dimension_semantics=("parallel",),
            vmem_limit_bytes=VMEM_LIMIT),
    )(scores_tm, mask_ext, start, end, trans)
    return tags


@jax.jit
def bilstm_crf_forward(params, sentence, mask):
    B, T = sentence.shape
    H = params["whf"].shape[0]
    K = params["wfc"].shape[1]
    Kp = ((K + 7) // 8) * 8
    pad = Kp - K

    # Embedding gather: XLA gather keeps the (V, E) table in HBM (no one-hot,
    # no vocab-sized VMEM block).  Produced time-major (T, B, E) for the kernel.
    emb_tm = jnp.take(params["emb"], sentence.T, axis=0)

    # Block-diagonal recurrent weight so both directions share one MXU dot/step.
    whcat = jnp.zeros((2 * H, 8 * H), jnp.float32)
    whcat = whcat.at[:H, :4 * H].set(params["whf"])
    whcat = whcat.at[H:, 4 * H:].set(params["whb"])

    # Pad tag dim to a sublane multiple; padded tags are unreachable (-1e9).
    wfc = jnp.pad(params["wfc"], ((0, 0), (0, pad)))
    bfc = jnp.pad(params["bfc"], ((0, 0), (0, pad)), constant_values=NEG)
    start = jnp.pad(params["start"], ((0, 0), (0, pad)), constant_values=NEG)
    end = jnp.pad(params["end"], ((0, 0), (0, pad)), constant_values=NEG)
    trans = jnp.pad(params["trans"], ((0, pad), (0, pad)), constant_values=NEG)

    scores_tm, bin_scores = run_bilstm_heads(
        emb_tm, params["wif"], params["wib"], whcat, params["bf"], params["bb"],
        wfc, bfc, params["wbin"], params["bbin"])

    mask_ext = jnp.concatenate(
        [mask.astype(jnp.int32), jnp.zeros((B, 1), jnp.int32)], axis=1)
    crf_out = run_crf_decode(scores_tm, mask_ext, start, end, trans)
    return crf_out, bin_scores


# ----------------------------------------------------------------------------
# Deterministic parameter init (shapes follow BiLSTMCRF.__init__)
# ----------------------------------------------------------------------------
def init_params(key, V, E, H, K):
    ks = jax.random.split(key, 13)
    n = lambda k, s: (jax.random.normal(k, s, jnp.float32) * 0.1)
    u = lambda k, s: jax.random.uniform(k, s, jnp.float32, minval=-0.1, maxval=0.1)
    return {
        "emb":  n(ks[0], (V, E)),                 # nn.Embedding weight
        # LSTM forward dir: weight_ih/hh transposed to (in, 4H); bias = b_ih + b_hh
        "wif":  n(ks[1], (E, 4 * H)),
        "whf":  n(ks[2], (H, 4 * H)),
        "bf":   n(ks[3], (1, 4 * H)),
        # LSTM reverse dir
        "wib":  n(ks[4], (E, 4 * H)),
        "whb":  n(ks[5], (H, 4 * H)),
        "bb":   n(ks[6], (1, 4 * H)),
        # fc: Linear(2H, K); bin_fc: Linear(2H, 2)  (weights stored transposed)
        "wfc":  n(ks[7], (2 * H, K)),
        "bfc":  n(ks[8], (1, K)),
        "wbin": n(ks[9], (2 * H, 2)),
        "bbin": n(ks[10], (1, 2)),
        # CRF params (torchcrf init: uniform(-0.1, 0.1))
        "start": u(ks[11], (1, K)),
        "end":   u(ks[12], (1, K)),
        "trans": u(jax.random.fold_in(key, 99), (K, K)),
    }


if __name__ == "__main__":
    B, T, V, E, H, K = 2, 8, 64, 32, 32, 6
    key = jax.random.PRNGKey(0)
    kp, kd = jax.random.split(key)
    params = init_params(kp, V, E, H, K)

    sentence = jax.random.randint(kd, (B, T), 0, V, dtype=jnp.int32)
    lengths = jnp.array([T, 5], dtype=jnp.int32)
    mask = (jnp.arange(T)[None, :] < lengths[:, None]).astype(jnp.int32)  # col 0 all on

    crf_out, bin_scores = bilstm_crf_forward(params, sentence, mask)
    jax.block_until_ready((crf_out, bin_scores))

    assert crf_out.shape == (B, T) and crf_out.dtype == jnp.int32
    assert bin_scores.shape == (B, 2)
    assert int(crf_out.min()) >= 0 and int(crf_out.max()) < K  # padded tags never decoded
    print("KERNEL_OK")
</pallas_src>

<mosaic_0001>
module attributes {stable_mosaic.version = 11 : i64} {
  func.func @crf_decode_kernel(%arg0: i32, %arg1: memref<8x2x8xf32, #tpu.memory_space<vmem>>, %arg2: memref<2x9xi32, #tpu.memory_space<vmem>>, %arg3: memref<1x8xf32, #tpu.memory_space<vmem>>, %arg4: memref<1x8xf32, #tpu.memory_space<vmem>>, %arg5: memref<8x8xf32, #tpu.memory_space<vmem>>, %arg6: memref<2x8xi32, #tpu.memory_space<vmem>>, %arg7: memref<8x2x8xi32, #tpu.memory_space<vmem>>) attributes {dimension_semantics = [#tpu.dimension_semantics<parallel>], iteration_bounds = array<i64: 1>, scalar_prefetch = 0 : i64, scratch_operands = 1 : i64, tpu.core_type = #tpu.core_type<tc>, window_params = [{transform_indices = @transform_0, window_bounds = array<i64: 8, 2, 8>}, {transform_indices = @transform_1, window_bounds = array<i64: 2, 9>}, {pipeline_mode = #tpu.pipeline_mode<synchronous>, transform_indices = @transform_2, window_bounds = array<i64: 1, 8>}, {pipeline_mode = #tpu.pipeline_mode<synchronous>, transform_indices = @transform_3, window_bounds = array<i64: 1, 8>}, {pipeline_mode = #tpu.pipeline_mode<synchronous>, transform_indices = @transform_4, window_bounds = array<i64: 8, 8>}, {transform_indices = @transform_5, window_bounds = array<i64: 2, 8>}]} {
    %c0 = arith.constant 0 : index
    %c0_0 = arith.constant 0 : index
    %0 = vector.load %arg5[%c0, %c0_0] : memref<8x8xf32, #tpu.memory_space<vmem>>, vector<8x8xf32>
    %c0_1 = arith.constant 0 : index
    %c0_2 = arith.constant 0 : index
    %1 = vector.load %arg3[%c0_1, %c0_2] : memref<1x8xf32, #tpu.memory_space<vmem>>, vector<1x8xf32>
    %c0_3 = arith.constant 0 : index
    %c0_4 = arith.constant 0 : index
    %c0_5 = arith.constant 0 : index
    %2 = vector.load %arg1[%c0_3, %c0_4, %c0_5] : memref<8x2x8xf32, #tpu.memory_space<vmem>>, vector<1x2x8xf32>
    %3 = vector.shape_cast %2 : vector<1x2x8xf32> to vector<2x8xf32>
    %4 = vector.broadcast %1 : vector<1x8xf32> to vector<2x8xf32>
    %5 = arith.addf %4, %3 : vector<2x8xf32>
    %c1_i32 = arith.constant 1 : i32
    %6 = arith.index_cast %c1_i32 : i32 to index
    %c0_6 = arith.constant 0 : index
    %c0_7 = arith.constant 0 : index
    %7 = vector.load %arg1[%6, %c0_6, %c0_7] : memref<8x2x8xf32, #tpu.memory_space<vmem>>, vector<1x2x8xf32>
    %8 = vector.shape_cast %7 : vector<1x2x8xf32> to vector<2x8xf32>
    %c0_8 = arith.constant 0 : index
    %9 = arith.index_cast %c1_i32 : i32 to index
    %10 = vector.load %arg2[%c0_8, %9] : memref<2x9xi32, #tpu.memory_space<vmem>>, vector<2x1xi32>
    %11 = vector.shape_cast %5 : vector<2x8xf32> to vector<2x8x1xf32>
    %12 = vector.shape_cast %0 : vector<8x8xf32> to vector<1x8x8xf32>
    %13 = vector.broadcast %11 : vector<2x8x1xf32> to vector<2x8x8xf32>
    %14 = vector.broadcast %12 : vector<1x8x8xf32> to vector<2x8x8xf32>
    %15 = arith.addf %13, %14 : vector<2x8x8xf32>
    %16 = vector.shape_cast %8 : vector<2x8xf32> to vector<2x1x8xf32>
    %17 = vector.broadcast %16 : vector<2x1x8xf32> to vector<2x8x8xf32>
    %18 = arith.addf %15, %17 : vector<2x8x8xf32>
    %cst = arith.constant dense<0xFF800000> : vector<2x8xf32>
    %19 = vector.multi_reduction <maximumf>, %18, %cst [1] : vector<2x8x8xf32> to vector<2x8xf32>
    %20 = tpu.iota {dimensions = array<i32: 1>} : vector<2x8x8xi32>
    %21 = vector.shape_cast %19 : vector<2x8xf32> to vector<2x1x8xf32>
    %22 = vector.broadcast %21 : vector<2x1x8xf32> to vector<2x8x8xf32>
    %23 = arith.cmpf oge, %18, %22 : vector<2x8x8xf32>
    %c8_i32 = arith.constant 8 : i32
    %24 = vector.broadcast %c8_i32 : i32 to vector<2x8x8xi32>
    %25 = arith.select %23, %20, %24 : vector<2x8x8xi1>, vector<2x8x8xi32>
    %cst_9 = arith.constant dense<2147483647> : vector<2x8xi32>
    %26 = vector.multi_reduction <minsi>, %25, %cst_9 [1] : vector<2x8x8xi32> to vector<2x8xi32>
    %27 = vector.shape_cast %26 : vector<2x8xi32> to vector<1x2x8xi32>
    %c1_i32_10 = arith.constant 1 : i32
    %28 = arith.subi %c1_i32, %c1_i32_10 : i32
    %29 = arith.index_cast %28 : i32 to index
    %c0_11 = arith.constant 0 : index
    %c0_12 = arith.constant 0 : index
    %30 = vector.load %arg7[%29, %c0_11, %c0_12] : memref<8x2x8xi32, #tpu.memory_space<vmem>>, vector<1x2x8xi32>
    tpu.vector_store %arg7[%29, %c0_11, %c0_12], %27 {strides = array<i32>} : memref<8x2x8xi32, #tpu.memory_space<vmem>>, vector<1x2x8xi32>,
    %c0_i32 = arith.constant 0 : i32
    %31 = vector.broadcast %c0_i32 : i32 to vector<2x1xi32>
    %32 = arith.cmpi sgt, %10, %31 : vector<2x1xi32>
    %33 = vector.shape_cast %32 : vector<2x1xi1> to vector<2x1xi1>
    %34 = vector.broadcast %33 : vector<2x1xi1> to vector<2x8xi1>
    %35 = arith.select %34, %19, %5 : vector<2x8xi1>, vector<2x8xf32>
    %c2_i32 = arith.constant 2 : i32
    %36 = arith.index_cast %c2_i32 : i32 to index
    %c0_13 = arith.constant 0 : index
    %c0_14 = arith.constant 0 : index
    %37 = vector.load %arg1[%36, %c0_13, %c0_14] : memref<8x2x8xf32, #tpu.memory_space<vmem>>, vector<1x2x8xf32>
    %38 = vector.shape_cast %37 : vector<1x2x8xf32> to vector<2x8xf32>
    %c0_15 = arith.constant 0 : index
    %39 = arith.index_cast %c2_i32 : i32 to index
    %40 = vector.load %arg2[%c0_15, %39] : memref<2x9xi32, #tpu.memory_space<vmem>>, vector<2x1xi32>
    %41 = vector.shape_cast %35 : vector<2x8xf32> to vector<2x8x1xf32>
    %42 = vector.shape_cast %0 : vector<8x8xf32> to vector<1x8x8xf32>
    %43 = vector.broadcast %41 : vector<2x8x1xf32> to vector<2x8x8xf32>
    %44 = vector.broadcast %42 : vector<1x8x8xf32> to vector<2x8x8xf32>
    %45 = arith.addf %43, %44 : vector<2x8x8xf32>
    %46 = vector.shape_cast %38 : vector<2x8xf32> to vector<2x1x8xf32>
    %47 = vector.broadcast %46 : vector<2x1x8xf32> to vector<2x8x8xf32>
    %48 = arith.addf %45, %47 : vector<2x8x8xf32>
    %cst_16 = arith.constant dense<0xFF800000> : vector<2x8xf32>
    %49 = vector.multi_reduction <maximumf>, %48, %cst_16 [1] : vector<2x8x8xf32> to vector<2x8xf32>
    %50 = tpu.iota {dimensions = array<i32: 1>} : vector<2x8x8xi32>
    %51 = vector.shape_cast %49 : vector<2x8xf32> to vector<2x1x8xf32>
    %52 = vector.broadcast %51 : vector<2x1x8xf32> to vector<2x8x8xf32>
    %53 = arith.cmpf oge, %48, %52 : vector<2x8x8xf32>
    %c8_i32_17 = arith.constant 8 : i32
    %54 = vector.broadcast %c8_i32_17 : i32 to vector<2x8x8xi32>
    %55 = arith.select %53, %50, %54 : vector<2x8x8xi1>, vector<2x8x8xi32>
    %cst_18 = arith.constant dense<2147483647> : vector<2x8xi32>
    %56 = vector.multi_reduction <minsi>, %55, %cst_18 [1] : vector<2x8x8xi32> to vector<2x8xi32>
    %57 = vector.shape_cast %56 : vector<2x8xi32> to vector<1x2x8xi32>
    %c1_i32_19 = arith.constant 1 : i32
    %58 = arith.subi %c2_i32, %c1_i32_19 : i32
    %59 = arith.index_cast %58 : i32 to index
    %c0_20 = arith.constant 0 : index
    %c0_21 = arith.constant 0 : index
    %60 = vector.load %arg7[%59, %c0_20, %c0_21] : memref<8x2x8xi32, #tpu.memory_space<vmem>>, vector<1x2x8xi32>
    tpu.vector_store %arg7[%59, %c0_20, %c0_21], %57 {strides = array<i32>} : memref<8x2x8xi32, #tpu.memory_space<vmem>>, vector<1x2x8xi32>,
    %c0_i32_22 = arith.constant 0 : i32
    %61 = vector.broadcast %c0_i32_22 : i32 to vector<2x1xi32>
    %62 = arith.cmpi sgt, %40, %61 : vector<2x1xi32>
    %63 = vector.shape_cast %62 : vector<2x1xi1> to vector<2x1xi1>
    %64 = vector.broadcast %63 : vector<2x1xi1> to vector<2x8xi1>
    %65 = arith.select %64, %49, %35 : vector<2x8xi1>, vector<2x8xf32>
    %c3_i32 = arith.constant 3 : i32
    %66 = arith.index_cast %c3_i32 : i32 to index
    %c0_23 = arith.constant 0 : index
    %c0_24 = arith.constant 0 : index
    %67 = vector.load %arg1[%66, %c0_23, %c0_24] : memref<8x2x8xf32, #tpu.memory_space<vmem>>, vector<1x2x8xf32>
    %68 = vector.shape_cast %67 : vector<1x2x8xf32> to vector<2x8xf32>
    %c0_25 = arith.constant 0 : index
    %69 = arith.index_cast %c3_i32 : i32 to index
    %70 = vector.load %arg2[%c0_25, %69] : memref<2x9xi32, #tpu.memory_space<vmem>>, vector<2x1xi32>
    %71 = vector.shape_cast %65 : vector<2x8xf32> to vector<2x8x1xf32>
    %72 = vector.shape_cast %0 : vector<8x8xf32> to vector<1x8x8xf32>
    %73 = vector.broadcast %71 : vector<2x8x1xf32> to vector<2x8x8xf32>
    %74 = vector.broadcast %72 : vector<1x8x8xf32> to vector<2x8x8xf32>
    %75 = arith.addf %73, %74 : vector<2x8x8xf32>
    %76 = vector.shape_cast %68 : vector<2x8xf32> to vector<2x1x8xf32>
    %77 = vector.broadcast %76 : vector<2x1x8xf32> to vector<2x8x8xf32>
    %78 = arith.addf %75, %77 : vector<2x8x8xf32>
    %cst_26 = arith.constant dense<0xFF800000> : vector<2x8xf32>
    %79 = vector.multi_reduction <maximumf>, %78, %cst_26 [1] : vector<2x8x8xf32> to vector<2x8xf32>
    %80 = tpu.iota {dimensions = array<i32: 1>} : vector<2x8x8xi32>
    %81 = vector.shape_cast %79 : vector<2x8xf32> to vector<2x1x8xf32>
    %82 = vector.broadcast %81 : vector<2x1x8xf32> to vector<2x8x8xf32>
    %83 = arith.cmpf oge, %78, %82 : vector<2x8x8xf32>
    %c8_i32_27 = arith.constant 8 : i32
    %84 = vector.broadcast %c8_i32_27 : i32 to vector<2x8x8xi32>
    %85 = arith.select %83, %80, %84 : vector<2x8x8xi1>, vector<2x8x8xi32>
    %cst_28 = arith.constant dense<2147483647> : vector<2x8xi32>
    %86 = vector.multi_reduction <minsi>, %85, %cst_28 [1] : vector<2x8x8xi32> to vector<2x8xi32>
    %87 = vector.shape_cast %86 : vector<2x8xi32> to vector<1x2x8xi32>
    %c1_i32_29 = arith.constant 1 : i32
    %88 = arith.subi %c3_i32, %c1_i32_29 : i32
    %89 = arith.index_cast %88 : i32 to index
    %c0_30 = arith.constant 0 : index
    %c0_31 = arith.constant 0 : index
    %90 = vector.load %arg7[%89, %c0_30, %c0_31] : memref<8x2x8xi32, #tpu.memory_space<vmem>>, vector<1x2x8xi32>
    tpu.vector_store %arg7[%89, %c0_30, %c0_31], %87 {strides = array<i32>} : memref<8x2x8xi32, #tpu.memory_space<vmem>>, vector<1x2x8xi32>,
    %c0_i32_32 = arith.constant 0 : i32
    %91 = vector.broadcast %c0_i32_32 : i32 to vector<2x1xi32>
    %92 = arith.cmpi sgt, %70, %91 : vector<2x1xi32>
    %93 = vector.shape_cast %92 : vector<2x1xi1> to vector<2x1xi1>
    %94 = vector.broadcast %93 : vector<2x1xi1> to vector<2x8xi1>
    %95 = arith.select %94, %79, %65 : vector<2x8xi1>, vector<2x8xf32>
    %c4_i32 = arith.constant 4 : i32
    %96 = arith.index_cast %c4_i32 : i32 to index
    %c0_33 = arith.constant 0 : index
    %c0_34 = arith.constant 0 : index
    %97 = vector.load %arg1[%96, %c0_33, %c0_34] : memref<8x2x8xf32, #tpu.memory_space<vmem>>, vector<1x2x8xf32>
    %98 = vector.shape_cast %97 : vector<1x2x8xf32> to vector<2x8xf32>
    %c0_35 = arith.constant 0 : index
    %99 = arith.index_cast %c4_i32 : i32 to index
    %100 = vector.load %arg2[%c0_35, %99] : memref<2x9xi32, #tpu.memory_space<vmem>>, vector<2x1xi32>
    %101 = vector.shape_cast %95 : vector<2x8xf32> to vector<2x8x1xf32>
    %102 = vector.shape_cast %0 : vector<8x8xf32> to vector<1x8x8xf32>
    %103 = vector.broadcast %101 : vector<2x8x1xf32> to vector<2x8x8xf32>
    %104 = vector.broadcast %102 : vector<1x8x8xf32> to vector<2x8x8xf32>
    %105 = arith.addf %103, %104 : vector<2x8x8xf32>
    %106 = vector.shape_cast %98 : vector<2x8xf32> to vector<2x1x8xf32>
    %107 = vector.broadcast %106 : vector<2x1x8xf32> to vector<2x8x8xf32>
    %108 = arith.addf %105, %107 : vector<2x8x8xf32>
    %cst_36 = arith.constant dense<0xFF800000> : vector<2x8xf32>
    %109 = vector.multi_reduction <maximumf>, %108, %cst_36 [1] : vector<2x8x8xf32> to vector<2x8xf32>
    %110 = tpu.iota {dimensions = array<i32: 1>} : vector<2x8x8xi32>
    %111 = vector.shape_cast %109 : vector<2x8xf32> to vector<2x1x8xf32>
    %112 = vector.broadcast %111 : vector<2x1x8xf32> to vector<2x8x8xf32>
    %113 = arith.cmpf oge, %108, %112 : vector<2x8x8xf32>
    %c8_i32_37 = arith.constant 8 : i32
    %114 = vector.broadcast %c8_i32_37 : i32 to vector<2x8x8xi32>
    %115 = arith.select %113, %110, %114 : vector<2x8x8xi1>, vector<2x8x8xi32>
    %cst_38 = arith.constant dense<2147483647> : vector<2x8xi32>
    %116 = vector.multi_reduction <minsi>, %115, %cst_38 [1] : vector<2x8x8xi32> to vector<2x8xi32>
    %117 = vector.shape_cast %116 : vector<2x8xi32> to vector<1x2x8xi32>
    %c1_i32_39 = arith.constant 1 : i32
    %118 = arith.subi %c4_i32, %c1_i32_39 : i32
    %119 = arith.index_cast %118 : i32 to index
    %c0_40 = arith.constant 0 : index
    %c0_41 = arith.constant 0 : index
    %120 = vector.load %arg7[%119, %c0_40, %c0_41] : memref<8x2x8xi32, #tpu.memory_space<vmem>>, vector<1x2x8xi32>
    tpu.vector_store %arg7[%119, %c0_40, %c0_41], %117 {strides = array<i32>} : memref<8x2x8xi32, #tpu.memory_space<vmem>>, vector<1x2x8xi32>,
    %c0_i32_42 = arith.constant 0 : i32
    %121 = vector.broadcast %c0_i32_42 : i32 to vector<2x1xi32>
    %122 = arith.cmpi sgt, %100, %121 : vector<2x1xi32>
    %123 = vector.shape_cast %122 : vector<2x1xi1> to vector<2x1xi1>
    %124 = vector.broadcast %123 : vector<2x1xi1> to vector<2x8xi1>
    %125 = arith.select %124, %109, %95 : vector<2x8xi1>, vector<2x8xf32>
    %c5_i32 = arith.constant 5 : i32
    %126 = arith.index_cast %c5_i32 : i32 to index
    %c0_43 = arith.constant 0 : index
    %c0_44 = arith.constant 0 : index
    %127 = vector.load %arg1[%126, %c0_43, %c0_44] : memref<8x2x8xf32, #tpu.memory_space<vmem>>, vector<1x2x8xf32>
    %128 = vector.shape_cast %127 : vector<1x2x8xf32> to vector<2x8xf32>
    %c0_45 = arith.constant 0 : index
    %129 = arith.index_cast %c5_i32 : i32 to index
    %130 = vector.load %arg2[%c0_45, %129] : memref<2x9xi32, #tpu.memory_space<vmem>>, vector<2x1xi32>
    %131 = vector.shape_cast %125 : vector<2x8xf32> to vector<2x8x1xf32>
    %132 = vector.shape_cast %0 : vector<8x8xf32> to vector<1x8x8xf32>
    %133 = vector.broadcast %131 : vector<2x8x1xf32> to vector<2x8x8xf32>
    %134 = vector.broadcast %132 : vector<1x8x8xf32> to vector<2x8x8xf32>
    %135 = arith.addf %133, %134 : vector<2x8x8xf32>
    %136 = vector.shape_cast %128 : vector<2x8xf32> to vector<2x1x8xf32>
    %137 = vector.broadcast %136 : vector<2x1x8xf32> to vector<2x8x8xf32>
    %138 = arith.addf %135, %137 : vector<2x8x8xf32>
    %cst_46 = arith.constant dense<0xFF800000> : vector<2x8xf32>
    %139 = vector.multi_reduction <maximumf>, %138, %cst_46 [1] : vector<2x8x8xf32> to vector<2x8xf32>
    %140 = tpu.iota {dimensions = array<i32: 1>} : vector<2x8x8xi32>
    %141 = vector.shape_cast %139 : vector<2x8xf32> to vector<2x1x8xf32>
    %142 = vector.broadcast %141 : vector<2x1x8xf32> to vector<2x8x8xf32>
    %143 = arith.cmpf oge, %138, %142 : vector<2x8x8xf32>
    %c8_i32_47 = arith.constant 8 : i32
    %144 = vector.broadcast %c8_i32_47 : i32 to vector<2x8x8xi32>
    %145 = arith.select %143, %140, %144 : vector<2x8x8xi1>, vector<2x8x8xi32>
    %cst_48 = arith.constant dense<2147483647> : vector<2x8xi32>
    %146 = vector.multi_reduction <minsi>, %145, %cst_48 [1] : vector<2x8x8xi32> to vector<2x8xi32>
    %147 = vector.shape_cast %146 : vector<2x8xi32> to vector<1x2x8xi32>
    %c1_i32_49 = arith.constant 1 : i32
    %148 = arith.subi %c5_i32, %c1_i32_49 : i32
    %149 = arith.index_cast %148 : i32 to index
    %c0_50 = arith.constant 0 : index
    %c0_51 = arith.constant 0 : index
    %150 = vector.load %arg7[%149, %c0_50, %c0_51] : memref<8x2x8xi32, #tpu.memory_space<vmem>>, vector<1x2x8xi32>
    tpu.vector_store %arg7[%149, %c0_50, %c0_51], %147 {strides = array<i32>} : memref<8x2x8xi32, #tpu.memory_space<vmem>>, vector<1x2x8xi32>,
    %c0_i32_52 = arith.constant 0 : i32
    %151 = vector.broadcast %c0_i32_52 : i32 to vector<2x1xi32>
    %152 = arith.cmpi sgt, %130, %151 : vector<2x1xi32>
    %153 = vector.shape_cast %152 : vector<2x1xi1> to vector<2x1xi1>
    %154 = vector.broadcast %153 : vector<2x1xi1> to vector<2x8xi1>
    %155 = arith.select %154, %139, %125 : vector<2x8xi1>, vector<2x8xf32>
    %c6_i32 = arith.constant 6 : i32
    %156 = arith.index_cast %c6_i32 : i32 to index
    %c0_53 = arith.constant 0 : index
    %c0_54 = arith.constant 0 : index
    %157 = vector.load %arg1[%156, %c0_53, %c0_54] : memref<8x2x8xf32, #tpu.memory_space<vmem>>, vector<1x2x8xf32>
    %158 = vector.shape_cast %157 : vector<1x2x8xf32> to vector<2x8xf32>
    %c0_55 = arith.constant 0 : index
    %159 = arith.index_cast %c6_i32 : i32 to index
    %160 = vector.load %arg2[%c0_55, %159] : memref<2x9xi32, #tpu.memory_space<vmem>>, vector<2x1xi32>
    %161 = vector.shape_cast %155 : vector<2x8xf32> to vector<2x8x1xf32>
    %162 = vector.shape_cast %0 : vector<8x8xf32> to vector<1x8x8xf32>
    %163 = vector.broadcast %161 : vector<2x8x1xf32> to vector<2x8x8xf32>
    %164 = vector.broadcast %162 : vector<1x8x8xf32> to vector<2x8x8xf32>
    %165 = arith.addf %163, %164 : vector<2x8x8xf32>
    %166 = vector.shape_cast %158 : vector<2x8xf32> to vector<2x1x8xf32>
    %167 = vector.broadcast %166 : vector<2x1x8xf32> to vector<2x8x8xf32>
    %168 = arith.addf %165, %167 : vector<2x8x8xf32>
    %cst_56 = arith.constant dense<0xFF800000> : vector<2x8xf32>
    %169 = vector.multi_reduction <maximumf>, %168, %cst_56 [1] : vector<2x8x8xf32> to vector<2x8xf32>
    %170 = tpu.iota {dimensions = array<i32: 1>} : vector<2x8x8xi32>
    %171 = vector.shape_cast %169 : vector<2x8xf32> to vector<2x1x8xf32>
    %172 = vector.broadcast %171 : vector<2x1x8xf32> to vector<2x8x8xf32>
    %173 = arith.cmpf oge, %168, %172 : vector<2x8x8xf32>
    %c8_i32_57 = arith.constant 8 : i32
    %174 = vector.broadcast %c8_i32_57 : i32 to vector<2x8x8xi32>
    %175 = arith.select %173, %170, %174 : vector<2x8x8xi1>, vector<2x8x8xi32>
    %cst_58 = arith.constant dense<2147483647> : vector<2x8xi32>
    %176 = vector.multi_reduction <minsi>, %175, %cst_58 [1] : vector<2x8x8xi32> to vector<2x8xi32>
    %177 = vector.shape_cast %176 : vector<2x8xi32> to vector<1x2x8xi32>
    %c1_i32_59 = arith.constant 1 : i32
    %178 = arith.subi %c6_i32, %c1_i32_59 : i32
    %179 = arith.index_cast %178 : i32 to index
    %c0_60 = arith.constant 0 : index
    %c0_61 = arith.constant 0 : index
    %180 = vector.load %arg7[%179, %c0_60, %c0_61] : memref<8x2x8xi32, #tpu.memory_space<vmem>>, vector<1x2x8xi32>
    tpu.vector_store %arg7[%179, %c0_60, %c0_61], %177 {strides = array<i32>} : memref<8x2x8xi32, #tpu.memory_space<vmem>>, vector<1x2x8xi32>,
    %c0_i32_62 = arith.constant 0 : i32
    %181 = vector.broadcast %c0_i32_62 : i32 to vector<2x1xi32>
    %182 = arith.cmpi sgt, %160, %181 : vector<2x1xi32>
    %183 = vector.shape_cast %182 : vector<2x1xi1> to vector<2x1xi1>
    %184 = vector.broadcast %183 : vector<2x1xi1> to vector<2x8xi1>
    %185 = arith.select %184, %169, %155 : vector<2x8xi1>, vector<2x8xf32>
    %c7_i32 = arith.constant 7 : i32
    %186 = arith.index_cast %c7_i32 : i32 to index
    %c0_63 = arith.constant 0 : index
    %c0_64 = arith.constant 0 : index
    %187 = vector.load %arg1[%186, %c0_63, %c0_64] : memref<8x2x8xf32, #tpu.memory_space<vmem>>, vector<1x2x8xf32>
    %188 = vector.shape_cast %187 : vector<1x2x8xf32> to vector<2x8xf32>
    %c0_65 = arith.constant 0 : index
    %189 = arith.index_cast %c7_i32 : i32 to index
    %190 = vector.load %arg2[%c0_65, %189] : memref<2x9xi32, #tpu.memory_space<vmem>>, vector<2x1xi32>
    %191 = vector.shape_cast %185 : vector<2x8xf32> to vector<2x8x1xf32>
    %192 = vector.shape_cast %0 : vector<8x8xf32> to vector<1x8x8xf32>
    %193 = vector.broadcast %191 : vector<2x8x1xf32> to vector<2x8x8xf32>
    %194 = vector.broadcast %192 : vector<1x8x8xf32> to vector<2x8x8xf32>
    %195 = arith.addf %193, %194 : vector<2x8x8xf32>
    %196 = vector.shape_cast %188 : vector<2x8xf32> to vector<2x1x8xf32>
    %197 = vector.broadcast %196 : vector<2x1x8xf32> to vector<2x8x8xf32>
    %198 = arith.addf %195, %197 : vector<2x8x8xf32>
    %cst_66 = arith.constant dense<0xFF800000> : vector<2x8xf32>
    %199 = vector.multi_reduction <maximumf>, %198, %cst_66 [1] : vector<2x8x8xf32> to vector<2x8xf32>
    %200 = tpu.iota {dimensions = array<i32: 1>} : vector<2x8x8xi32>
    %201 = vector.shape_cast %199 : vector<2x8xf32> to vector<2x1x8xf32>
    %202 = vector.broadcast %201 : vector<2x1x8xf32> to vector<2x8x8xf32>
    %203 = arith.cmpf oge, %198, %202 : vector<2x8x8xf32>
    %c8_i32_67 = arith.constant 8 : i32
    %204 = vector.broadcast %c8_i32_67 : i32 to vector<2x8x8xi32>
    %205 = arith.select %203, %200, %204 : vector<2x8x8xi1>, vector<2x8x8xi32>
    %cst_68 = arith.constant dense<2147483647> : vector<2x8xi32>
    %206 = vector.multi_reduction <minsi>, %205, %cst_68 [1] : vector<2x8x8xi32> to vector<2x8xi32>
    %207 = vector.shape_cast %206 : vector<2x8xi32> to vector<1x2x8xi32>
    %c1_i32_69 = arith.constant 1 : i32
    %208 = arith.subi %c7_i32, %c1_i32_69 : i32
    %209 = arith.index_cast %208 : i32 to index
    %c0_70 = arith.constant 0 : index
    %c0_71 = arith.constant 0 : index
    %210 = vector.load %arg7[%209, %c0_70, %c0_71] : memref<8x2x8xi32, #tpu.memory_space<vmem>>, vector<1x2x8xi32>
    tpu.vector_store %arg7[%209, %c0_70, %c0_71], %207 {strides = array<i32>} : memref<8x2x8xi32, #tpu.memory_space<vmem>>, vector<1x2x8xi32>,
    %c0_i32_72 = arith.constant 0 : i32
    %211 = vector.broadcast %c0_i32_72 : i32 to vector<2x1xi32>
    %212 = arith.cmpi sgt, %190, %211 : vector<2x1xi32>
    %213 = vector.shape_cast %212 : vector<2x1xi1> to vector<2x1xi1>
    %214 = vector.broadcast %213 : vector<2x1xi1> to vector<2x8xi1>
    %215 = arith.select %214, %199, %185 : vector<2x8xi1>, vector<2x8xf32>
    %c7_i32_73 = arith.constant 7 : i32
    %c0_74 = arith.constant 0 : index
    %c0_75 = arith.constant 0 : index
    %216 = vector.load %arg4[%c0_74, %c0_75] : memref<1x8xf32, #tpu.memory_space<vmem>>, vector<1x8xf32>
    %217 = vector.broadcast %216 : vector<1x8xf32> to vector<2x8xf32>
    %218 = arith.addf %215, %217 : vector<2x8xf32>
    %219 = tpu.iota {dimensions = array<i32: 1>} : vector<2x8xi32>
    %cst_76 = arith.constant dense<0xFF800000> : vector<2xf32>
    %220 = vector.multi_reduction <maximumf>, %218, %cst_76 [1] : vector<2x8xf32> to vector<2xf32>
    %221 = vector.shape_cast %220 : vector<2xf32> to vector<2x1xf32>
    %222 = vector.broadcast %221 : vector<2x1xf32> to vector<2x8xf32>
    %223 = arith.cmpf oge, %218, %222 : vector<2x8xf32>
    %c8_i32_77 = arith.constant 8 : i32
    %224 = vector.broadcast %c8_i32_77 : i32 to vector<2x8xi32>
    %225 = arith.select %223, %219, %224 : vector<2x8xi1>, vector<2x8xi32>
    %cst_78 = arith.constant dense<2147483647> : vector<2xi32>
    %226 = vector.multi_reduction <minsi>, %225, %cst_78 [1] : vector<2x8xi32> to vector<2xi32>
    %227 = vector.shape_cast %226 : vector<2xi32> to vector<2x1xi32>
    %c0_i32_79 = arith.constant 0 : i32
    %c7_i32_80 = arith.constant 7 : i32
    %228 = arith.subi %c7_i32_80, %c0_i32_79 : i32
    %c0_81 = arith.constant 0 : index
    %229 = arith.index_cast %228 : i32 to index
    %230 = vector.load %arg2[%c0_81, %229] : memref<2x9xi32, #tpu.memory_space<vmem>>, vector<2x1xi32>
    %c1_i32_82 = arith.constant 1 : i32
    %231 = arith.addi %228, %c1_i32_82 : i32
    %c0_83 = arith.constant 0 : index
    %232 = arith.index_cast %231 : i32 to index
    %233 = vector.load %arg2[%c0_83, %232] : memref<2x9xi32, #tpu.memory_space<vmem>>, vector<2x1xi32>
    %234 = arith.index_cast %228 : i32 to index
    %c0_84 = arith.constant 0 : index
    %c0_85 = arith.constant 0 : index
    %235 = vector.load %arg7[%234, %c0_84, %c0_85] : memref<8x2x8xi32, #tpu.memory_space<vmem>>, vector<1x2x8xi32>
    %236 = vector.shape_cast %235 : vector<1x2x8xi32> to vector<2x8xi32>
    %237 = tpu.iota {dimensions = array<i32: 1>} : vector<2x8xi32>
    %238 = vector.broadcast %227 : vector<2x1xi32> to vector<2x8xi32>
    %239 = arith.cmpi eq, %237, %238 : vector<2x8xi32>
    %c0_i32_86 = arith.constant 0 : i32
    %240 = vector.broadcast %c0_i32_86 : i32 to vector<2x8xi32>
    %241 = arith.select %239, %236, %240 : vector<2x8xi1>, vector<2x8xi32>
    %cst_87 = arith.constant dense<0> : vector<2xi32>
    %242 = vector.multi_reduction <add>, %241, %cst_87 [1] : vector<2x8xi32> to vector<2xi32>
    %243 = vector.shape_cast %242 : vector<2xi32> to vector<2x1xi32>
    %c0_i32_88 = arith.constant 0 : i32
    %244 = vector.broadcast %c0_i32_88 : i32 to vector<2x1xi32>
    %245 = arith.cmpi sgt, %230, %244 : vector<2x1xi32>
    %c0_i32_89 = arith.constant 0 : i32
    %246 = vector.broadcast %c0_i32_89 : i32 to vector<2x1xi32>
    %247 = arith.cmpi sgt, %233, %246 : vector<2x1xi32>
    %248 = arith.andi %245, %247 : vector<2x1xi1>
    %249 = arith.select %248, %243, %227 : vector<2x1xi1>, vector<2x1xi32>
    %c0_i32_90 = arith.constant 0 : i32
    %250 = vector.broadcast %c0_i32_90 : i32 to vector<2x1xi32>
    %251 = arith.cmpi sgt, %230, %250 : vector<2x1xi32>
    %c0_i32_91 = arith.constant 0 : i32
    %252 = vector.broadcast %c0_i32_91 : i32 to vector<2x1xi32>
    %253 = arith.select %251, %249, %252 : vector<2x1xi1>, vector<2x1xi32>
    %c0_92 = arith.constant 0 : index
    %254 = arith.index_cast %228 : i32 to index
    %255 = vector.load %arg6[%c0_92, %254] : memref<2x8xi32, #tpu.memory_space<vmem>>, vector<2x1xi32>
    tpu.vector_store %arg6[%c0_92, %254], %253 {strides = array<i32>} : memref<2x8xi32, #tpu.memory_space<vmem>>, vector<2x1xi32>,
    %c1_i32_93 = arith.constant 1 : i32
    %c7_i32_94 = arith.constant 7 : i32
    %256 = arith.subi %c7_i32_94, %c1_i32_93 : i32
    %c0_95 = arith.constant 0 : index
    %257 = arith.index_cast %256 : i32 to index
    %258 = vector.load %arg2[%c0_95, %257] : memref<2x9xi32, #tpu.memory_space<vmem>>, vector<2x1xi32>
    %c1_i32_96 = arith.constant 1 : i32
    %259 = arith.addi %256, %c1_i32_96 : i32
    %c0_97 = arith.constant 0 : index
    %260 = arith.index_cast %259 : i32 to index
    %261 = vector.load %arg2[%c0_97, %260] : memref<2x9xi32, #tpu.memory_space<vmem>>, vector<2x1xi32>
    %262 = arith.index_cast %256 : i32 to index
    %c0_98 = arith.constant 0 : index
    %c0_99 = arith.constant 0 : index
    %263 = vector.load %arg7[%262, %c0_98, %c0_99] : memref<8x2x8xi32, #tpu.memory_space<vmem>>, vector<1x2x8xi32>
    %264 = vector.shape_cast %263 : vector<1x2x8xi32> to vector<2x8xi32>
    %265 = tpu.iota {dimensions = array<i32: 1>} : vector<2x8xi32>
    %266 = vector.broadcast %249 : vector<2x1xi32> to vector<2x8xi32>
    %267 = arith.cmpi eq, %265, %266 : vector<2x8xi32>
    %c0_i32_100 = arith.constant 0 : i32
    %268 = vector.broadcast %c0_i32_100 : i32 to vector<2x8xi32>
    %269 = arith.select %267, %264, %268 : vector<2x8xi1>, vector<2x8xi32>
    %cst_101 = arith.constant dense<0> : vector<2xi32>
    %270 = vector.multi_reduction <add>, %269, %cst_101 [1] : vector<2x8xi32> to vector<2xi32>
    %271 = vector.shape_cast %270 : vector<2xi32> to vector<2x1xi32>
    %c0_i32_102 = arith.constant 0 : i32
    %272 = vector.broadcast %c0_i32_102 : i32 to vector<2x1xi32>
    %273 = arith.cmpi sgt, %258, %272 : vector<2x1xi32>
    %c0_i32_103 = arith.constant 0 : i32
    %274 = vector.broadcast %c0_i32_103 : i32 to vector<2x1xi32>
    %275 = arith.cmpi sgt, %261, %274 : vector<2x1xi32>
    %276 = arith.andi %273, %275 : vector<2x1xi1>
    %277 = arith.select %276, %271, %249 : vector<2x1xi1>, vector<2x1xi32>
    %c0_i32_104 = arith.constant 0 : i32
    %278 = vector.broadcast %c0_i32_104 : i32 to vector<2x1xi32>
    %279 = arith.cmpi sgt, %258, %278 : vector<2x1xi32>
    %c0_i32_105 = arith.constant 0 : i32
    %280 = vector.broadcast %c0_i32_105 : i32 to vector<2x1xi32>
    %281 = arith.select %279, %277, %280 : vector<2x1xi1>, vector<2x1xi32>
    %c0_106 = arith.constant 0 : index
    %282 = arith.index_cast %256 : i32 to index
    %283 = vector.load %arg6[%c0_106, %282] : memref<2x8xi32, #tpu.memory_space<vmem>>, vector<2x1xi32>
    tpu.vector_store %arg6[%c0_106, %282], %281 {strides = array<i32>} : memref<2x8xi32, #tpu.memory_space<vmem>>, vector<2x1xi32>,
    %c2_i32_107 = arith.constant 2 : i32
    %c7_i32_108 = arith.constant 7 : i32
    %284 = arith.subi %c7_i32_108, %c2_i32_107 : i32
    %c0_109 = arith.constant 0 : index
    %285 = arith.index_cast %284 : i32 to index
    %286 = vector.load %arg2[%c0_109, %285] : memref<2x9xi32, #tpu.memory_space<vmem>>, vector<2x1xi32>
    %c1_i32_110 = arith.constant 1 : i32
    %287 = arith.addi %284, %c1_i32_110 : i32
    %c0_111 = arith.constant 0 : index
    %288 = arith.index_cast %287 : i32 to index
    %289 = vector.load %arg2[%c0_111, %288] : memref<2x9xi32, #tpu.memory_space<vmem>>, vector<2x1xi32>
    %290 = arith.index_cast %284 : i32 to index
    %c0_112 = arith.constant 0 : index
    %c0_113 = arith.constant 0 : index
    %291 = vector.load %arg7[%290, %c0_112, %c0_113] : memref<8x2x8xi32, #tpu.memory_space<vmem>>, vector<1x2x8xi32>
    %292 = vector.shape_cast %291 : vector<1x2x8xi32> to vector<2x8xi32>
    %293 = tpu.iota {dimensions = array<i32: 1>} : vector<2x8xi32>
    %294 = vector.broadcast %277 : vector<2x1xi32> to vector<2x8xi32>
    %295 = arith.cmpi eq, %293, %294 : vector<2x8xi32>
    %c0_i32_114 = arith.constant 0 : i32
    %296 = vector.broadcast %c0_i32_114 : i32 to vector<2x8xi32>
    %297 = arith.select %295, %292, %296 : vector<2x8xi1>, vector<2x8xi32>
    %cst_115 = arith.constant dense<0> : vector<2xi32>
    %298 = vector.multi_reduction <add>, %297, %cst_115 [1] : vector<2x8xi32> to vector<2xi32>
    %299 = vector.shape_cast %298 : vector<2xi32> to vector<2x1xi32>
    %c0_i32_116 = arith.constant 0 : i32
    %300 = vector.broadcast %c0_i32_116 : i32 to vector<2x1xi32>
    %301 = arith.cmpi sgt, %286, %300 : vector<2x1xi32>
    %c0_i32_117 = arith.constant 0 : i32
    %302 = vector.broadcast %c0_i32_117 : i32 to vector<2x1xi32>
    %303 = arith.cmpi sgt, %289, %302 : vector<2x1xi32>
    %304 = arith.andi %301, %303 : vector<2x1xi1>
    %305 = arith.select %304, %299, %277 : vector<2x1xi1>, vector<2x1xi32>
    %c0_i32_118 = arith.constant 0 : i32
    %306 = vector.broadcast %c0_i32_118 : i32 to vector<2x1xi32>
    %307 = arith.cmpi sgt, %286, %306 : vector<2x1xi32>
    %c0_i32_119 = arith.constant 0 : i32
    %308 = vector.broadcast %c0_i32_119 : i32 to vector<2x1xi32>
    %309 = arith.select %307, %305, %308 : vector<2x1xi1>, vector<2x1xi32>
    %c0_120 = arith.constant 0 : index
    %310 = arith.index_cast %284 : i32 to index
    %311 = vector.load %arg6[%c0_120, %310] : memref<2x8xi32, #tpu.memory_space<vmem>>, vector<2x1xi32>
    tpu.vector_store %arg6[%c0_120, %310], %309 {strides = array<i32>} : memref<2x8xi32, #tpu.memory_space<vmem>>, vector<2x1xi32>,
    %c3_i32_121 = arith.constant 3 : i32
    %c7_i32_122 = arith.constant 7 : i32
    %312 = arith.subi %c7_i32_122, %c3_i32_121 : i32
    %c0_123 = arith.constant 0 : index
    %313 = arith.index_cast %312 : i32 to index
    %314 = vector.load %arg2[%c0_123, %313] : memref<2x9xi32, #tpu.memory_space<vmem>>, vector<2x1xi32>
    %c1_i32_124 = arith.constant 1 : i32
    %315 = arith.addi %312, %c1_i32_124 : i32
    %c0_125 = arith.constant 0 : index
    %316 = arith.index_cast %315 : i32 to index
    %317 = vector.load %arg2[%c0_125, %316] : memref<2x9xi32, #tpu.memory_space<vmem>>, vector<2x1xi32>
    %318 = arith.index_cast %312 : i32 to index
    %c0_126 = arith.constant 0 : index
    %c0_127 = arith.constant 0 : index
    %319 = vector.load %arg7[%318, %c0_126, %c0_127] : memref<8x2x8xi32, #tpu.memory_space<vmem>>, vector<1x2x8xi32>
    %320 = vector.shape_cast %319 : vector<1x2x8xi32> to vector<2x8xi32>
    %321 = tpu.iota {dimensions = array<i32: 1>} : vector<2x8xi32>
    %322 = vector.broadcast %305 : vector<2x1xi32> to vector<2x8xi32>
    %323 = arith.cmpi eq, %321, %322 : vector<2x8xi32>
    %c0_i32_128 = arith.constant 0 : i32
    %324 = vector.broadcast %c0_i32_128 : i32 to vector<2x8xi32>
    %325 = arith.select %323, %320, %324 : vector<2x8xi1>, vector<2x8xi32>
    %cst_129 = arith.constant dense<0> : vector<2xi32>
    %326 = vector.multi_reduction <add>, %325, %cst_129 [1] : vector<2x8xi32> to vector<2xi32>
    %327 = vector.shape_cast %326 : vector<2xi32> to vector<2x1xi32>
    %c0_i32_130 = arith.constant 0 : i32
    %328 = vector.broadcast %c0_i32_130 : i32 to vector<2x1xi32>
    %329 = arith.cmpi sgt, %314, %328 : vector<2x1xi32>
    %c0_i32_131 = arith.constant 0 : i32
    %330 = vector.broadcast %c0_i32_131 : i32 to vector<2x1xi32>
    %331 = arith.cmpi sgt, %317, %330 : vector<2x1xi32>
    %332 = arith.andi %329, %331 : vector<2x1xi1>
    %333 = arith.select %332, %327, %305 : vector<2x1xi1>, vector<2x1xi32>
    %c0_i32_132 = arith.constant 0 : i32
    %334 = vector.broadcast %c0_i32_132 : i32 to vector<2x1xi32>
    %335 = arith.cmpi sgt, %314, %334 : vector<2x1xi32>
    %c0_i32_133 = arith.constant 0 : i32
    %336 = vector.broadcast %c0_i32_133 : i32 to vector<2x1xi32>
    %337 = arith.select %335, %333, %336 : vector<2x1xi1>, vector<2x1xi32>
    %c0_134 = arith.constant 0 : index
    %338 = arith.index_cast %312 : i32 to index
    %339 = vector.load %arg6[%c0_134, %338] : memref<2x8xi32, #tpu.memory_space<vmem>>, vector<2x1xi32>
    tpu.vector_store %arg6[%c0_134, %338], %337 {strides = array<i32>} : memref<2x8xi32, #tpu.memory_space<vmem>>, vector<2x1xi32>,
    %c4_i32_135 = arith.constant 4 : i32
    %c7_i32_136 = arith.constant 7 : i32
    %340 = arith.subi %c7_i32_136, %c4_i32_135 : i32
    %c0_137 = arith.constant 0 : index
    %341 = arith.index_cast %340 : i32 to index
    %342 = vector.load %arg2[%c0_137, %341] : memref<2x9xi32, #tpu.memory_space<vmem>>, vector<2x1xi32>
    %c1_i32_138 = arith.constant 1 : i32
    %343 = arith.addi %340, %c1_i32_138 : i32
    %c0_139 = arith.constant 0 : index
    %344 = arith.index_cast %343 : i32 to index
    %345 = vector.load %arg2[%c0_139, %344] : memref<2x9xi32, #tpu.memory_space<vmem>>, vector<2x1xi32>
    %346 = arith.index_cast %340 : i32 to index
    %c0_140 = arith.constant 0 : index
    %c0_141 = arith.constant 0 : index
    %347 = vector.load %arg7[%346, %c0_140, %c0_141] : memref<8x2x8xi32, #tpu.memory_space<vmem>>, vector<1x2x8xi32>
    %348 = vector.shape_cast %347 : vector<1x2x8xi32> to vector<2x8xi32>
    %349 = tpu.iota {dimensions = array<i32: 1>} : vector<2x8xi32>
    %350 = vector.broadcast %333 : vector<2x1xi32> to vector<2x8xi32>
    %351 = arith.cmpi eq, %349, %350 : vector<2x8xi32>
    %c0_i32_142 = arith.constant 0 : i32
    %352 = vector.broadcast %c0_i32_142 : i32 to vector<2x8xi32>
    %353 = arith.select %351, %348, %352 : vector<2x8xi1>, vector<2x8xi32>
    %cst_143 = arith.constant dense<0> : vector<2xi32>
    %354 = vector.multi_reduction <add>, %353, %cst_143 [1] : vector<2x8xi32> to vector<2xi32>
    %355 = vector.shape_cast %354 : vector<2xi32> to vector<2x1xi32>
    %c0_i32_144 = arith.constant 0 : i32
    %356 = vector.broadcast %c0_i32_144 : i32 to vector<2x1xi32>
    %357 = arith.cmpi sgt, %342, %356 : vector<2x1xi32>
    %c0_i32_145 = arith.constant 0 : i32
    %358 = vector.broadcast %c0_i32_145 : i32 to vector<2x1xi32>
    %359 = arith.cmpi sgt, %345, %358 : vector<2x1xi32>
    %360 = arith.andi %357, %359 : vector<2x1xi1>
    %361 = arith.select %360, %355, %333 : vector<2x1xi1>, vector<2x1xi32>
    %c0_i32_146 = arith.constant 0 : i32
    %362 = vector.broadcast %c0_i32_146 : i32 to vector<2x1xi32>
    %363 = arith.cmpi sgt, %342, %362 : vector<2x1xi32>
    %c0_i32_147 = arith.constant 0 : i32
    %364 = vector.broadcast %c0_i32_147 : i32 to vector<2x1xi32>
    %365 = arith.select %363, %361, %364 : vector<2x1xi1>, vector<2x1xi32>
    %c0_148 = arith.constant 0 : index
    %366 = arith.index_cast %340 : i32 to index
    %367 = vector.load %arg6[%c0_148, %366] : memref<2x8xi32, #tpu.memory_space<vmem>>, vector<2x1xi32>
    tpu.vector_store %arg6[%c0_148, %366], %365 {strides = array<i32>} : memref<2x8xi32, #tpu.memory_space<vmem>>, vector<2x1xi32>,
    %c5_i32_149 = arith.constant 5 : i32
    %c7_i32_150 = arith.constant 7 : i32
    %368 = arith.subi %c7_i32_150, %c5_i32_149 : i32
    %c0_151 = arith.constant 0 : index
    %369 = arith.index_cast %368 : i32 to index
    %370 = vector.load %arg2[%c0_151, %369] : memref<2x9xi32, #tpu.memory_space<vmem>>, vector<2x1xi32>
    %c1_i32_152 = arith.constant 1 : i32
    %371 = arith.addi %368, %c1_i32_152 : i32
    %c0_153 = arith.constant 0 : index
    %372 = arith.index_cast %371 : i32 to index
    %373 = vector.load %arg2[%c0_153, %372] : memref<2x9xi32, #tpu.memory_space<vmem>>, vector<2x1xi32>
    %374 = arith.index_cast %368 : i32 to index
    %c0_154 = arith.constant 0 : index
    %c0_155 = arith.constant 0 : index
    %375 = vector.load %arg7[%374, %c0_154, %c0_155] : memref<8x2x8xi32, #tpu.memory_space<vmem>>, vector<1x2x8xi32>
    %376 = vector.shape_cast %375 : vector<1x2x8xi32> to vector<2x8xi32>
    %377 = tpu.iota {dimensions = array<i32: 1>} : vector<2x8xi32>
    %378 = vector.broadcast %361 : vector<2x1xi32> to vector<2x8xi32>
    %379 = arith.cmpi eq, %377, %378 : vector<2x8xi32>
    %c0_i32_156 = arith.constant 0 : i32
    %380 = vector.broadcast %c0_i32_156 : i32 to vector<2x8xi32>
    %381 = arith.select %379, %376, %380 : vector<2x8xi1>, vector<2x8xi32>
    %cst_157 = arith.constant dense<0> : vector<2xi32>
    %382 = vector.multi_reduction <add>, %381, %cst_157 [1] : vector<2x8xi32> to vector<2xi32>
    %383 = vector.shape_cast %382 : vector<2xi32> to vector<2x1xi32>
    %c0_i32_158 = arith.constant 0 : i32
    %384 = vector.broadcast %c0_i32_158 : i32 to vector<2x1xi32>
    %385 = arith.cmpi sgt, %370, %384 : vector<2x1xi32>
    %c0_i32_159 = arith.constant 0 : i32
    %386 = vector.broadcast %c0_i32_159 : i32 to vector<2x1xi32>
    %387 = arith.cmpi sgt, %373, %386 : vector<2x1xi32>
    %388 = arith.andi %385, %387 : vector<2x1xi1>
    %389 = arith.select %388, %383, %361 : vector<2x1xi1>, vector<2x1xi32>
    %c0_i32_160 = arith.constant 0 : i32
    %390 = vector.broadcast %c0_i32_160 : i32 to vector<2x1xi32>
    %391 = arith.cmpi sgt, %370, %390 : vector<2x1xi32>
    %c0_i32_161 = arith.constant 0 : i32
    %392 = vector.broadcast %c0_i32_161 : i32 to vector<2x1xi32>
    %393 = arith.select %391, %389, %392 : vector<2x1xi1>, vector<2x1xi32>
    %c0_162 = arith.constant 0 : index
    %394 = arith.index_cast %368 : i32 to index
    %395 = vector.load %arg6[%c0_162, %394] : memref<2x8xi32, #tpu.memory_space<vmem>>, vector<2x1xi32>
    tpu.vector_store %arg6[%c0_162, %394], %393 {strides = array<i32>} : memref<2x8xi32, #tpu.memory_space<vmem>>, vector<2x1xi32>,
    %c6_i32_163 = arith.constant 6 : i32
    %c7_i32_164 = arith.constant 7 : i32
    %396 = arith.subi %c7_i32_164, %c6_i32_163 : i32
    %c0_165 = arith.constant 0 : index
    %397 = arith.index_cast %396 : i32 to index
    %398 = vector.load %arg2[%c0_165, %397] : memref<2x9xi32, #tpu.memory_space<vmem>>, vector<2x1xi32>
    %c1_i32_166 = arith.constant 1 : i32
    %399 = arith.addi %396, %c1_i32_166 : i32
    %c0_167 = arith.constant 0 : index
    %400 = arith.index_cast %399 : i32 to index
    %401 = vector.load %arg2[%c0_167, %400] : memref<2x9xi32, #tpu.memory_space<vmem>>, vector<2x1xi32>
    %402 = arith.index_cast %396 : i32 to index
    %c0_168 = arith.constant 0 : index
    %c0_169 = arith.constant 0 : index
    %403 = vector.load %arg7[%402, %c0_168, %c0_169] : memref<8x2x8xi32, #tpu.memory_space<vmem>>, vector<1x2x8xi32>
    %404 = vector.shape_cast %403 : vector<1x2x8xi32> to vector<2x8xi32>
    %405 = tpu.iota {dimensions = array<i32: 1>} : vector<2x8xi32>
    %406 = vector.broadcast %389 : vector<2x1xi32> to vector<2x8xi32>
    %407 = arith.cmpi eq, %405, %406 : vector<2x8xi32>
    %c0_i32_170 = arith.constant 0 : i32
    %408 = vector.broadcast %c0_i32_170 : i32 to vector<2x8xi32>
    %409 = arith.select %407, %404, %408 : vector<2x8xi1>, vector<2x8xi32>
    %cst_171 = arith.constant dense<0> : vector<2xi32>
    %410 = vector.multi_reduction <add>, %409, %cst_171 [1] : vector<2x8xi32> to vector<2xi32>
    %411 = vector.shape_cast %410 : vector<2xi32> to vector<2x1xi32>
    %c0_i32_172 = arith.constant 0 : i32
    %412 = vector.broadcast %c0_i32_172 : i32 to vector<2x1xi32>
    %413 = arith.cmpi sgt, %398, %412 : vector<2x1xi32>
    %c0_i32_173 = arith.constant 0 : i32
    %414 = vector.broadcast %c0_i32_173 : i32 to vector<2x1xi32>
    %415 = arith.cmpi sgt, %401, %414 : vector<2x1xi32>
    %416 = arith.andi %413, %415 : vector<2x1xi1>
    %417 = arith.select %416, %411, %389 : vector<2x1xi1>, vector<2x1xi32>
    %c0_i32_174 = arith.constant 0 : i32
    %418 = vector.broadcast %c0_i32_174 : i32 to vector<2x1xi32>
    %419 = arith.cmpi sgt, %398, %418 : vector<2x1xi32>
    %c0_i32_175 = arith.constant 0 : i32
    %420 = vector.broadcast %c0_i32_175 : i32 to vector<2x1xi32>
    %421 = arith.select %419, %417, %420 : vector<2x1xi1>, vector<2x1xi32>
    %c0_176 = arith.constant 0 : index
    %422 = arith.index_cast %396 : i32 to index
    %423 = vector.load %arg6[%c0_176, %422] : memref<2x8xi32, #tpu.memory_space<vmem>>, vector<2x1xi32>
    tpu.vector_store %arg6[%c0_176, %422], %421 {strides = array<i32>} : memref<2x8xi32, #tpu.memory_space<vmem>>, vector<2x1xi32>,
    %c7_i32_177 = arith.constant 7 : i32
    %c7_i32_178 = arith.constant 7 : i32
    %424 = arith.subi %c7_i32_178, %c7_i32_177 : i32
    %c0_179 = arith.constant 0 : index
    %425 = arith.index_cast %424 : i32 to index
    %426 = vector.load %arg2[%c0_179, %425] : memref<2x9xi32, #tpu.memory_space<vmem>>, vector<2x1xi32>
    %c1_i32_180 = arith.constant 1 : i32
    %427 = arith.addi %424, %c1_i32_180 : i32
    %c0_181 = arith.constant 0 : index
    %428 = arith.index_cast %427 : i32 to index
    %429 = vector.load %arg2[%c0_181, %428] : memref<2x9xi32, #tpu.memory_space<vmem>>, vector<2x1xi32>
    %430 = arith.index_cast %424 : i32 to index
    %c0_182 = arith.constant 0 : index
    %c0_183 = arith.constant 0 : index
    %431 = vector.load %arg7[%430, %c0_182, %c0_183] : memref<8x2x8xi32, #tpu.memory_space<vmem>>, vector<1x2x8xi32>
    %432 = vector.shape_cast %431 : vector<1x2x8xi32> to vector<2x8xi32>
    %433 = tpu.iota {dimensions = array<i32: 1>} : vector<2x8xi32>
    %434 = vector.broadcast %417 : vector<2x1xi32> to vector<2x8xi32>
    %435 = arith.cmpi eq, %433, %434 : vector<2x8xi32>
    %c0_i32_184 = arith.constant 0 : i32
    %436 = vector.broadcast %c0_i32_184 : i32 to vector<2x8xi32>
    %437 = arith.select %435, %432, %436 : vector<2x8xi1>, vector<2x8xi32>
    %cst_185 = arith.constant dense<0> : vector<2xi32>
    %438 = vector.multi_reduction <add>, %437, %cst_185 [1] : vector<2x8xi32> to vector<2xi32>
    %439 = vector.shape_cast %438 : vector<2xi32> to vector<2x1xi32>
    %c0_i32_186 = arith.constant 0 : i32
    %440 = vector.broadcast %c0_i32_186 : i32 to vector<2x1xi32>
    %441 = arith.cmpi sgt, %426, %440 : vector<2x1xi32>
    %c0_i32_187 = arith.constant 0 : i32
    %442 = vector.broadcast %c0_i32_187 : i32 to vector<2x1xi32>
    %443 = arith.cmpi sgt, %429, %442 : vector<2x1xi32>
    %444 = arith.andi %441, %443 : vector<2x1xi1>
    %445 = arith.select %444, %439, %417 : vector<2x1xi1>, vector<2x1xi32>
    %c0_i32_188 = arith.constant 0 : i32
    %446 = vector.broadcast %c0_i32_188 : i32 to vector<2x1xi32>
    %447 = arith.cmpi sgt, %426, %446 : vector<2x1xi32>
    %c0_i32_189 = arith.constant 0 : i32
    %448 = vector.broadcast %c0_i32_189 : i32 to vector<2x1xi32>
    %449 = arith.select %447, %445, %448 : vector<2x1xi1>, vector<2x1xi32>
    %c0_190 = arith.constant 0 : index
    %450 = arith.index_cast %424 : i32 to index
    %451 = vector.load %arg6[%c0_190, %450] : memref<2x8xi32, #tpu.memory_space<vmem>>, vector<2x1xi32>
    tpu.vector_store %arg6[%c0_190, %450], %449 {strides = array<i32>} : memref<2x8xi32, #tpu.memory_space<vmem>>, vector<2x1xi32>,
    %c8_i32_191 = arith.constant 8 : i32
    return
  }
  func.func @transform_0(%arg0: i32) -> (i32, i32, i32) {
    %c0_i32 = arith.constant 0 : i32
    %c0_i32_0 = arith.constant 0 : i32
    %c0_i32_1 = arith.constant 0 : i32
    return %c0_i32, %arg0, %c0_i32_0 : i32, i32, i32
  }
  func.func @transform_1(%arg0: i32) -> (i32, i32) {
    %c0_i32 = arith.constant 0 : i32
    %c0_i32_0 = arith.constant 0 : i32
    return %arg0, %c0_i32 : i32, i32
  }
  func.func @transform_2(%arg0: i32) -> (i32, i32) {
    %c0_i32 = arith.constant 0 : i32
    %c0_i32_0 = arith.constant 0 : i32
    %c0_i32_1 = arith.constant 0 : i32
    return %c0_i32, %c0_i32_0 : i32, i32
  }
  func.func @transform_3(%arg0: i32) -> (i32, i32) {
    %c0_i32 = arith.constant 0 : i32
    %c0_i32_0 = arith.constant 0 : i32
    %c0_i32_1 = arith.constant 0 : i32
    return %c0_i32, %c0_i32_0 : i32, i32
  }
  func.func @transform_4(%arg0: i32) -> (i32, i32) {
    %c0_i32 = arith.constant 0 : i32
    %c0_i32_0 = arith.constant 0 : i32
    %c0_i32_1 = arith.constant 0 : i32
    return %c0_i32, %c0_i32_0 : i32, i32
  }
  func.func @transform_5(%arg0: i32) -> (i32, i32) {
    %c0_i32 = arith.constant 0 : i32
    %c0_i32_0 = arith.constant 0 : i32
    return %arg0, %c0_i32 : i32, i32
  }
}

module attributes {stable_mosaic.version = 11 : i64} {
  func.func @bilstm_heads_kernel(%arg0: i32, %arg1: memref<8x2x32xf32, #tpu.memory_space<vmem>>, %arg2: memref<32x128xf32, #tpu.memory_space<vmem>>, %arg3: memref<32x128xf32, #tpu.memory_space<vmem>>, %arg4: memref<64x256xf32, #tpu.memory_space<vmem>>, %arg5: memref<1x128xf32, #tpu.memory_space<vmem>>, %arg6: memref<1x128xf32, #tpu.memory_space<vmem>>, %arg7: memref<64x8xf32, #tpu.memory_space<vmem>>, %arg8: memref<1x8xf32, #tpu.memory_space<vmem>>, %arg9: memref<64x2xf32, #tpu.memory_space<vmem>>, %arg10: memref<1x2xf32, #tpu.memory_space<vmem>>, %arg11: memref<8x2x8xf32, #tpu.memory_space<vmem>>, %arg12: memref<2x2xf32, #tpu.memory_space<vmem>>, %arg13: memref<8x2x128xf32, #tpu.memory_space<vmem>>, %arg14: memref<8x2x128xf32, #tpu.memory_space<vmem>>, %arg15: memref<8x2x32xf32, #tpu.memory_space<vmem>>, %arg16: memref<8x2x32xf32, #tpu.memory_space<vmem>>) attributes {dimension_semantics = [#tpu.dimension_semantics<parallel>], iteration_bounds = array<i64: 1>, scalar_prefetch = 0 : i64, scratch_operands = 4 : i64, tpu.core_type = #tpu.core_type<tc>, window_params = [{transform_indices = @transform_0, window_bounds = array<i64: 8, 2, 32>}, {pipeline_mode = #tpu.pipeline_mode<synchronous>, transform_indices = @transform_1, window_bounds = array<i64: 32, 128>}, {pipeline_mode = #tpu.pipeline_mode<synchronous>, transform_indices = @transform_2, window_bounds = array<i64: 32, 128>}, {pipeline_mode = #tpu.pipeline_mode<synchronous>, transform_indices = @transform_3, window_bounds = array<i64: 64, 256>}, {pipeline_mode = #tpu.pipeline_mode<synchronous>, transform_indices = @transform_4, window_bounds = array<i64: 1, 128>}, {pipeline_mode = #tpu.pipeline_mode<synchronous>, transform_indices = @transform_5, window_bounds = array<i64: 1, 128>}, {pipeline_mode = #tpu.pipeline_mode<synchronous>, transform_indices = @transform_6, window_bounds = array<i64: 64, 8>}, {pipeline_mode = #tpu.pipeline_mode<synchronous>, transform_indices = @transform_7, window_bounds = array<i64: 1, 8>}, {pipeline_mode = #tpu.pipeline_mode<synchronous>, transform_indices = @transform_8, window_bounds = array<i64: 64, 2>}, {pipeline_mode = #tpu.pipeline_mode<synchronous>, transform_indices = @transform_9, window_bounds = array<i64: 1, 2>}, {transform_indices = @transform_10, window_bounds = array<i64: 8, 2, 8>}, {transform_indices = @transform_11, window_bounds = array<i64: 2, 2>}]} {
    %c0 = arith.constant 0 : index
    %c0_0 = arith.constant 0 : index
    %c0_1 = arith.constant 0 : index
    %0 = vector.load %arg1[%c0, %c0_0, %c0_1] : memref<8x2x32xf32, #tpu.memory_space<vmem>>, vector<8x2x32xf32>
    %1 = vector.shape_cast %0 : vector<8x2x32xf32> to vector<16x32xf32>
    %c0_2 = arith.constant 0 : index
    %c0_3 = arith.constant 0 : index
    %2 = vector.load %arg2[%c0_2, %c0_3] : memref<32x128xf32, #tpu.memory_space<vmem>>, vector<32x128xf32>
    %cst = arith.constant dense<0.000000e+00> : vector<16x128xf32>
    %3 = tpu.matmul %1, %2, %cst {dimension_numbers = #tpu.dot_dimension_numbers<[1], [0], [0], [1], [0, 0, 1, 1], [], []>} : vector<16x32xf32>, vector<32x128xf32>, vector<16x128xf32> -> vector<16x128xf32>
    %c0_4 = arith.constant 0 : index
    %c0_5 = arith.constant 0 : index
    %4 = vector.load %arg5[%c0_4, %c0_5] : memref<1x128xf32, #tpu.memory_space<vmem>>, vector<1x128xf32>
    %5 = vector.broadcast %4 : vector<1x128xf32> to vector<16x128xf32>
    %6 = arith.addf %3, %5 : vector<16x128xf32>
    %7 = vector.shape_cast %6 : vector<16x128xf32> to vector<8x2x128xf32>
    %c0_6 = arith.constant 0 : index
    %c0_7 = arith.constant 0 : index
    %c0_8 = arith.constant 0 : index
    %8 = vector.load %arg13[%c0_6, %c0_7, %c0_8] : memref<8x2x128xf32, #tpu.memory_space<vmem>>, vector<8x2x128xf32>
    tpu.vector_store %arg13[%c0_6, %c0_7, %c0_8], %7 {strides = array<i32>} : memref<8x2x128xf32, #tpu.memory_space<vmem>>, vector<8x2x128xf32>,
    %c0_9 = arith.constant 0 : index
    %c0_10 = arith.constant 0 : index
    %9 = vector.load %arg3[%c0_9, %c0_10] : memref<32x128xf32, #tpu.memory_space<vmem>>, vector<32x128xf32>
    %cst_11 = arith.constant dense<0.000000e+00> : vector<16x128xf32>
    %10 = tpu.matmul %1, %9, %cst_11 {dimension_numbers = #tpu.dot_dimension_numbers<[1], [0], [0], [1], [0, 0, 1, 1], [], []>} : vector<16x32xf32>, vector<32x128xf32>, vector<16x128xf32> -> vector<16x128xf32>
    %c0_12 = arith.constant 0 : index
    %c0_13 = arith.constant 0 : index
    %11 = vector.load %arg6[%c0_12, %c0_13] : memref<1x128xf32, #tpu.memory_space<vmem>>, vector<1x128xf32>
    %12 = vector.broadcast %11 : vector<1x128xf32> to vector<16x128xf32>
    %13 = arith.addf %10, %12 : vector<16x128xf32>
    %14 = vector.shape_cast %13 : vector<16x128xf32> to vector<8x2x128xf32>
    %c0_14 = arith.constant 0 : index
    %c0_15 = arith.constant 0 : index
    %c0_16 = arith.constant 0 : index
    %15 = vector.load %arg14[%c0_14, %c0_15, %c0_16] : memref<8x2x128xf32, #tpu.memory_space<vmem>>, vector<8x2x128xf32>
    tpu.vector_store %arg14[%c0_14, %c0_15, %c0_16], %14 {strides = array<i32>} : memref<8x2x128xf32, #tpu.memory_space<vmem>>, vector<8x2x128xf32>,
    %c0_17 = arith.constant 0 : index
    %c0_18 = arith.constant 0 : index
    %16 = vector.load %arg4[%c0_17, %c0_18] : memref<64x256xf32, #tpu.memory_space<vmem>>, vector<64x256xf32>
    %cst_19 = arith.constant 0.000000e+00 : f32
    %17 = vector.broadcast %cst_19 : f32 to vector<2x32xf32>
    %c0_i32 = arith.constant 0 : i32
    %c7_i32 = arith.constant 7 : i32
    %18 = arith.subi %c7_i32, %c0_i32 : i32
    %19 = tpu.concatenate %17, %17 in 1 : vector<2x32xf32>, vector<2x32xf32> -> vector<2x64xf32>
    %cst_20 = arith.constant dense<0.000000e+00> : vector<2x256xf32>
    %20 = tpu.matmul %19, %16, %cst_20 {dimension_numbers = #tpu.dot_dimension_numbers<[1], [0], [0], [1], [0, 0, 1, 1], [], []>} : vector<2x64xf32>, vector<64x256xf32>, vector<2x256xf32> -> vector<2x256xf32>
    %21 = arith.index_cast %c0_i32 : i32 to index
    %c0_21 = arith.constant 0 : index
    %c0_22 = arith.constant 0 : index
    %22 = vector.load %arg13[%21, %c0_21, %c0_22] : memref<8x2x128xf32, #tpu.memory_space<vmem>>, vector<1x2x128xf32>
    %23 = vector.shape_cast %22 : vector<1x2x128xf32> to vector<2x128xf32>
    %24 = vector.extract_strided_slice %20 {offsets = [0, 0], sizes = [2, 128], strides = [1, 1]} : vector<2x256xf32> to vector<2x128xf32>
    %25 = arith.addf %23, %24 : vector<2x128xf32>
    %26 = vector.extract_strided_slice %25 {offsets = [0, 0], sizes = [2, 32], strides = [1, 1]} : vector<2x128xf32> to vector<2x32xf32>
    %27 = arith.negf %26 : vector<2x32xf32>
    %28 = math.exp %27 : vector<2x32xf32>
    %cst_23 = arith.constant 1.000000e+00 : f32
    %29 = vector.broadcast %cst_23 : f32 to vector<2x32xf32>
    %30 = arith.addf %29, %28 : vector<2x32xf32>
    %31 = arith.divf %29, %30 : vector<2x32xf32>
    %32 = vector.extract_strided_slice %25 {offsets = [0, 32], sizes = [2, 32], strides = [1, 1]} : vector<2x128xf32> to vector<2x32xf32>
    %33 = arith.negf %32 : vector<2x32xf32>
    %34 = math.exp %33 : vector<2x32xf32>
    %cst_24 = arith.constant 1.000000e+00 : f32
    %35 = vector.broadcast %cst_24 : f32 to vector<2x32xf32>
    %36 = arith.addf %35, %34 : vector<2x32xf32>
    %37 = arith.divf %35, %36 : vector<2x32xf32>
    %38 = vector.extract_strided_slice %25 {offsets = [0, 64], sizes = [2, 32], strides = [1, 1]} : vector<2x128xf32> to vector<2x32xf32>
    %39 = math.tanh %38 : vector<2x32xf32>
    %40 = vector.extract_strided_slice %25 {offsets = [0, 96], sizes = [2, 32], strides = [1, 1]} : vector<2x128xf32> to vector<2x32xf32>
    %41 = arith.negf %40 : vector<2x32xf32>
    %42 = math.exp %41 : vector<2x32xf32>
    %cst_25 = arith.constant 1.000000e+00 : f32
    %43 = vector.broadcast %cst_25 : f32 to vector<2x32xf32>
    %44 = arith.addf %43, %42 : vector<2x32xf32>
    %45 = arith.divf %43, %44 : vector<2x32xf32>
    %46 = arith.mulf %37, %17 : vector<2x32xf32>
    %47 = arith.mulf %31, %39 : vector<2x32xf32>
    %48 = arith.addf %46, %47 : vector<2x32xf32>
    %49 = math.tanh %48 : vector<2x32xf32>
    %50 = arith.mulf %45, %49 : vector<2x32xf32>
    %51 = arith.index_cast %18 : i32 to index
    %c0_26 = arith.constant 0 : index
    %c0_27 = arith.constant 0 : index
    %52 = vector.load %arg14[%51, %c0_26, %c0_27] : memref<8x2x128xf32, #tpu.memory_space<vmem>>, vector<1x2x128xf32>
    %53 = vector.shape_cast %52 : vector<1x2x128xf32> to vector<2x128xf32>
    %54 = vector.extract_strided_slice %20 {offsets = [0, 128], sizes = [2, 128], strides = [1, 1]} : vector<2x256xf32> to vector<2x128xf32>
    %55 = arith.addf %53, %54 : vector<2x128xf32>
    %56 = vector.extract_strided_slice %55 {offsets = [0, 0], sizes = [2, 32], strides = [1, 1]} : vector<2x128xf32> to vector<2x32xf32>
    %57 = arith.negf %56 : vector<2x32xf32>
    %58 = math.exp %57 : vector<2x32xf32>
    %cst_28 = arith.constant 1.000000e+00 : f32
    %59 = vector.broadcast %cst_28 : f32 to vector<2x32xf32>
    %60 = arith.addf %59, %58 : vector<2x32xf32>
    %61 = arith.divf %59, %60 : vector<2x32xf32>
    %62 = vector.extract_strided_slice %55 {offsets = [0, 32], sizes = [2, 32], strides = [1, 1]} : vector<2x128xf32> to vector<2x32xf32>
    %63 = arith.negf %62 : vector<2x32xf32>
    %64 = math.exp %63 : vector<2x32xf32>
    %cst_29 = arith.constant 1.000000e+00 : f32
    %65 = vector.broadcast %cst_29 : f32 to vector<2x32xf32>
    %66 = arith.addf %65, %64 : vector<2x32xf32>
    %67 = arith.divf %65, %66 : vector<2x32xf32>
    %68 = vector.extract_strided_slice %55 {offsets = [0, 64], sizes = [2, 32], strides = [1, 1]} : vector<2x128xf32> to vector<2x32xf32>
    %69 = math.tanh %68 : vector<2x32xf32>
    %70 = vector.extract_strided_slice %55 {offsets = [0, 96], sizes = [2, 32], strides = [1, 1]} : vector<2x128xf32> to vector<2x32xf32>
    %71 = arith.negf %70 : vector<2x32xf32>
    %72 = math.exp %71 : vector<2x32xf32>
    %cst_30 = arith.constant 1.000000e+00 : f32
    %73 = vector.broadcast %cst_30 : f32 to vector<2x32xf32>
    %74 = arith.addf %73, %72 : vector<2x32xf32>
    %75 = arith.divf %73, %74 : vector<2x32xf32>
    %76 = arith.mulf %67, %17 : vector<2x32xf32>
    %77 = arith.mulf %61, %69 : vector<2x32xf32>
    %78 = arith.addf %76, %77 : vector<2x32xf32>
    %79 = math.tanh %78 : vector<2x32xf32>
    %80 = arith.mulf %75, %79 : vector<2x32xf32>
    %81 = vector.shape_cast %50 : vector<2x32xf32> to vector<1x2x32xf32>
    %82 = arith.index_cast %c0_i32 : i32 to index
    %c0_31 = arith.constant 0 : index
    %c0_32 = arith.constant 0 : index
    %83 = vector.load %arg15[%82, %c0_31, %c0_32] : memref<8x2x32xf32, #tpu.memory_space<vmem>>, vector<1x2x32xf32>
    tpu.vector_store %arg15[%82, %c0_31, %c0_32], %81 {strides = array<i32>} : memref<8x2x32xf32, #tpu.memory_space<vmem>>, vector<1x2x32xf32>,
    %84 = vector.shape_cast %80 : vector<2x32xf32> to vector<1x2x32xf32>
    %85 = arith.index_cast %18 : i32 to index
    %c0_33 = arith.constant 0 : index
    %c0_34 = arith.constant 0 : index
    %86 = vector.load %arg16[%85, %c0_33, %c0_34] : memref<8x2x32xf32, #tpu.memory_space<vmem>>, vector<1x2x32xf32>
    tpu.vector_store %arg16[%85, %c0_33, %c0_34], %84 {strides = array<i32>} : memref<8x2x32xf32, #tpu.memory_space<vmem>>, vector<1x2x32xf32>,
    %c1_i32 = arith.constant 1 : i32
    %c7_i32_35 = arith.constant 7 : i32
    %87 = arith.subi %c7_i32_35, %c1_i32 : i32
    %88 = tpu.concatenate %50, %80 in 1 : vector<2x32xf32>, vector<2x32xf32> -> vector<2x64xf32>
    %cst_36 = arith.constant dense<0.000000e+00> : vector<2x256xf32>
    %89 = tpu.matmul %88, %16, %cst_36 {dimension_numbers = #tpu.dot_dimension_numbers<[1], [0], [0], [1], [0, 0, 1, 1], [], []>} : vector<2x64xf32>, vector<64x256xf32>, vector<2x256xf32> -> vector<2x256xf32>
    %90 = arith.index_cast %c1_i32 : i32 to index
    %c0_37 = arith.constant 0 : index
    %c0_38 = arith.constant 0 : index
    %91 = vector.load %arg13[%90, %c0_37, %c0_38] : memref<8x2x128xf32, #tpu.memory_space<vmem>>, vector<1x2x128xf32>
    %92 = vector.shape_cast %91 : vector<1x2x128xf32> to vector<2x128xf32>
    %93 = vector.extract_strided_slice %89 {offsets = [0, 0], sizes = [2, 128], strides = [1, 1]} : vector<2x256xf32> to vector<2x128xf32>
    %94 = arith.addf %92, %93 : vector<2x128xf32>
    %95 = vector.extract_strided_slice %94 {offsets = [0, 0], sizes = [2, 32], strides = [1, 1]} : vector<2x128xf32> to vector<2x32xf32>
    %96 = arith.negf %95 : vector<2x32xf32>
    %97 = math.exp %96 : vector<2x32xf32>
    %cst_39 = arith.constant 1.000000e+00 : f32
    %98 = vector.broadcast %cst_39 : f32 to vector<2x32xf32>
    %99 = arith.addf %98, %97 : vector<2x32xf32>
    %100 = arith.divf %98, %99 : vector<2x32xf32>
    %101 = vector.extract_strided_slice %94 {offsets = [0, 32], sizes = [2, 32], strides = [1, 1]} : vector<2x128xf32> to vector<2x32xf32>
    %102 = arith.negf %101 : vector<2x32xf32>
    %103 = math.exp %102 : vector<2x32xf32>
    %cst_40 = arith.constant 1.000000e+00 : f32
    %104 = vector.broadcast %cst_40 : f32 to vector<2x32xf32>
    %105 = arith.addf %104, %103 : vector<2x32xf32>
    %106 = arith.divf %104, %105 : vector<2x32xf32>
    %107 = vector.extract_strided_slice %94 {offsets = [0, 64], sizes = [2, 32], strides = [1, 1]} : vector<2x128xf32> to vector<2x32xf32>
    %108 = math.tanh %107 : vector<2x32xf32>
    %109 = vector.extract_strided_slice %94 {offsets = [0, 96], sizes = [2, 32], strides = [1, 1]} : vector<2x128xf32> to vector<2x32xf32>
    %110 = arith.negf %109 : vector<2x32xf32>
    %111 = math.exp %110 : vector<2x32xf32>
    %cst_41 = arith.constant 1.000000e+00 : f32
    %112 = vector.broadcast %cst_41 : f32 to vector<2x32xf32>
    %113 = arith.addf %112, %111 : vector<2x32xf32>
    %114 = arith.divf %112, %113 : vector<2x32xf32>
    %115 = arith.mulf %106, %48 : vector<2x32xf32>
    %116 = arith.mulf %100, %108 : vector<2x32xf32>
    %117 = arith.addf %115, %116 : vector<2x32xf32>
    %118 = math.tanh %117 : vector<2x32xf32>
    %119 = arith.mulf %114, %118 : vector<2x32xf32>
    %120 = arith.index_cast %87 : i32 to index
    %c0_42 = arith.constant 0 : index
    %c0_43 = arith.constant 0 : index
    %121 = vector.load %arg14[%120, %c0_42, %c0_43] : memref<8x2x128xf32, #tpu.memory_space<vmem>>, vector<1x2x128xf32>
    %122 = vector.shape_cast %121 : vector<1x2x128xf32> to vector<2x128xf32>
    %123 = vector.extract_strided_slice %89 {offsets = [0, 128], sizes = [2, 128], strides = [1, 1]} : vector<2x256xf32> to vector<2x128xf32>
    %124 = arith.addf %122, %123 : vector<2x128xf32>
    %125 = vector.extract_strided_slice %124 {offsets = [0, 0], sizes = [2, 32], strides = [1, 1]} : vector<2x128xf32> to vector<2x32xf32>
    %126 = arith.negf %125 : vector<2x32xf32>
    %127 = math.exp %126 : vector<2x32xf32>
    %cst_44 = arith.constant 1.000000e+00 : f32
    %128 = vector.broadcast %cst_44 : f32 to vector<2x32xf32>
    %129 = arith.addf %128, %127 : vector<2x32xf32>
    %130 = arith.divf %128, %129 : vector<2x32xf32>
    %131 = vector.extract_strided_slice %124 {offsets = [0, 32], sizes = [2, 32], strides = [1, 1]} : vector<2x128xf32> to vector<2x32xf32>
    %132 = arith.negf %131 : vector<2x32xf32>
    %133 = math.exp %132 : vector<2x32xf32>
    %cst_45 = arith.constant 1.000000e+00 : f32
    %134 = vector.broadcast %cst_45 : f32 to vector<2x32xf32>
    %135 = arith.addf %134, %133 : vector<2x32xf32>
    %136 = arith.divf %134, %135 : vector<2x32xf32>
    %137 = vector.extract_strided_slice %124 {offsets = [0, 64], sizes = [2, 32], strides = [1, 1]} : vector<2x128xf32> to vector<2x32xf32>
    %138 = math.tanh %137 : vector<2x32xf32>
    %139 = vector.extract_strided_slice %124 {offsets = [0, 96], sizes = [2, 32], strides = [1, 1]} : vector<2x128xf32> to vector<2x32xf32>
    %140 = arith.negf %139 : vector<2x32xf32>
    %141 = math.exp %140 : vector<2x32xf32>
    %cst_46 = arith.constant 1.000000e+00 : f32
    %142 = vector.broadcast %cst_46 : f32 to vector<2x32xf32>
    %143 = arith.addf %142, %141 : vector<2x32xf32>
    %144 = arith.divf %142, %143 : vector<2x32xf32>
    %145 = arith.mulf %136, %78 : vector<2x32xf32>
    %146 = arith.mulf %130, %138 : vector<2x32xf32>
    %147 = arith.addf %145, %146 : vector<2x32xf32>
    %148 = math.tanh %147 : vector<2x32xf32>
    %149 = arith.mulf %144, %148 : vector<2x32xf32>
    %150 = vector.shape_cast %119 : vector<2x32xf32> to vector<1x2x32xf32>
    %151 = arith.index_cast %c1_i32 : i32 to index
    %c0_47 = arith.constant 0 : index
    %c0_48 = arith.constant 0 : index
    %152 = vector.load %arg15[%151, %c0_47, %c0_48] : memref<8x2x32xf32, #tpu.memory_space<vmem>>, vector<1x2x32xf32>
    tpu.vector_store %arg15[%151, %c0_47, %c0_48], %150 {strides = array<i32>} : memref<8x2x32xf32, #tpu.memory_space<vmem>>, vector<1x2x32xf32>,
    %153 = vector.shape_cast %149 : vector<2x32xf32> to vector<1x2x32xf32>
    %154 = arith.index_cast %87 : i32 to index
    %c0_49 = arith.constant 0 : index
    %c0_50 = arith.constant 0 : index
    %155 = vector.load %arg16[%154, %c0_49, %c0_50] : memref<8x2x32xf32, #tpu.memory_space<vmem>>, vector<1x2x32xf32>
    tpu.vector_store %arg16[%154, %c0_49, %c0_50], %153 {strides = array<i32>} : memref<8x2x32xf32, #tpu.memory_space<vmem>>, vector<1x2x32xf32>,
    %c2_i32 = arith.constant 2 : i32
    %c7_i32_51 = arith.constant 7 : i32
    %156 = arith.subi %c7_i32_51, %c2_i32 : i32
    %157 = tpu.concatenate %119, %149 in 1 : vector<2x32xf32>, vector<2x32xf32> -> vector<2x64xf32>
    %cst_52 = arith.constant dense<0.000000e+00> : vector<2x256xf32>
    %158 = tpu.matmul %157, %16, %cst_52 {dimension_numbers = #tpu.dot_dimension_numbers<[1], [0], [0], [1], [0, 0, 1, 1], [], []>} : vector<2x64xf32>, vector<64x256xf32>, vector<2x256xf32> -> vector<2x256xf32>
    %159 = arith.index_cast %c2_i32 : i32 to index
    %c0_53 = arith.constant 0 : index
    %c0_54 = arith.constant 0 : index
    %160 = vector.load %arg13[%159, %c0_53, %c0_54] : memref<8x2x128xf32, #tpu.memory_space<vmem>>, vector<1x2x128xf32>
    %161 = vector.shape_cast %160 : vector<1x2x128xf32> to vector<2x128xf32>
    %162 = vector.extract_strided_slice %158 {offsets = [0, 0], sizes = [2, 128], strides = [1, 1]} : vector<2x256xf32> to vector<2x128xf32>
    %163 = arith.addf %161, %162 : vector<2x128xf32>
    %164 = vector.extract_strided_slice %163 {offsets = [0, 0], sizes = [2, 32], strides = [1, 1]} : vector<2x128xf32> to vector<2x32xf32>
    %165 = arith.negf %164 : vector<2x32xf32>
    %166 = math.exp %165 : vector<2x32xf32>
    %cst_55 = arith.constant 1.000000e+00 : f32
    %167 = vector.broadcast %cst_55 : f32 to vector<2x32xf32>
    %168 = arith.addf %167, %166 : vector<2x32xf32>
    %169 = arith.divf %167, %168 : vector<2x32xf32>
    %170 = vector.extract_strided_slice %163 {offsets = [0, 32], sizes = [2, 32], strides = [1, 1]} : vector<2x128xf32> to vector<2x32xf32>
    %171 = arith.negf %170 : vector<2x32xf32>
    %172 = math.exp %171 : vector<2x32xf32>
    %cst_56 = arith.constant 1.000000e+00 : f32
    %173 = vector.broadcast %cst_56 : f32 to vector<2x32xf32>
    %174 = arith.addf %173, %172 : vector<2x32xf32>
    %175 = arith.divf %173, %174 : vector<2x32xf32>
    %176 = vector.extract_strided_slice %163 {offsets = [0, 64], sizes = [2, 32], strides = [1, 1]} : vector<2x128xf32> to vector<2x32xf32>
    %177 = math.tanh %176 : vector<2x32xf32>
    %178 = vector.extract_strided_slice %163 {offsets = [0, 96], sizes = [2, 32], strides = [1, 1]} : vector<2x128xf32> to vector<2x32xf32>
    %179 = arith.negf %178 : vector<2x32xf32>
    %180 = math.exp %179 : vector<2x32xf32>
    %cst_57 = arith.constant 1.000000e+00 : f32
    %181 = vector.broadcast %cst_57 : f32 to vector<2x32xf32>
    %182 = arith.addf %181, %180 : vector<2x32xf32>
    %183 = arith.divf %181, %182 : vector<2x32xf32>
    %184 = arith.mulf %175, %117 : vector<2x32xf32>
    %185 = arith.mulf %169, %177 : vector<2x32xf32>
    %186 = arith.addf %184, %185 : vector<2x32xf32>
    %187 = math.tanh %186 : vector<2x32xf32>
    %188 = arith.mulf %183, %187 : vector<2x32xf32>
    %189 = arith.index_cast %156 : i32 to index
    %c0_58 = arith.constant 0 : index
    %c0_59 = arith.constant 0 : index
    %190 = vector.load %arg14[%189, %c0_58, %c0_59] : memref<8x2x128xf32, #tpu.memory_space<vmem>>, vector<1x2x128xf32>
    %191 = vector.shape_cast %190 : vector<1x2x128xf32> to vector<2x128xf32>
    %192 = vector.extract_strided_slice %158 {offsets = [0, 128], sizes = [2, 128], strides = [1, 1]} : vector<2x256xf32> to vector<2x128xf32>
    %193 = arith.addf %191, %192 : vector<2x128xf32>
    %194 = vector.extract_strided_slice %193 {offsets = [0, 0], sizes = [2, 32], strides = [1, 1]} : vector<2x128xf32> to vector<2x32xf32>
    %195 = arith.negf %194 : vector<2x32xf32>
    %196 = math.exp %195 : vector<2x32xf32>
    %cst_60 = arith.constant 1.000000e+00 : f32
    %197 = vector.broadcast %cst_60 : f32 to vector<2x32xf32>
    %198 = arith.addf %197, %196 : vector<2x32xf32>
    %199 = arith.divf %197, %198 : vector<2x32xf32>
    %200 = vector.extract_strided_slice %193 {offsets = [0, 32], sizes = [2, 32], strides = [1, 1]} : vector<2x128xf32> to vector<2x32xf32>
    %201 = arith.negf %200 : vector<2x32xf32>
    %202 = math.exp %201 : vector<2x32xf32>
    %cst_61 = arith.constant 1.000000e+00 : f32
    %203 = vector.broadcast %cst_61 : f32 to vector<2x32xf32>
    %204 = arith.addf %203, %202 : vector<2x32xf32>
    %205 = arith.divf %203, %204 : vector<2x32xf32>
    %206 = vector.extract_strided_slice %193 {offsets = [0, 64], sizes = [2, 32], strides = [1, 1]} : vector<2x128xf32> to vector<2x32xf32>
    %207 = math.tanh %206 : vector<2x32xf32>
    %208 = vector.extract_strided_slice %193 {offsets = [0, 96], sizes = [2, 32], strides = [1, 1]} : vector<2x128xf32> to vector<2x32xf32>
    %209 = arith.negf %208 : vector<2x32xf32>
    %210 = math.exp %209 : vector<2x32xf32>
    %cst_62 = arith.constant 1.000000e+00 : f32
    %211 = vector.broadcast %cst_62 : f32 to vector<2x32xf32>
    %212 = arith.addf %211, %210 : vector<2x32xf32>
    %213 = arith.divf %211, %212 : vector<2x32xf32>
    %214 = arith.mulf %205, %147 : vector<2x32xf32>
    %215 = arith.mulf %199, %207 : vector<2x32xf32>
    %216 = arith.addf %214, %215 : vector<2x32xf32>
    %217 = math.tanh %216 : vector<2x32xf32>
    %218 = arith.mulf %213, %217 : vector<2x32xf32>
    %219 = vector.shape_cast %188 : vector<2x32xf32> to vector<1x2x32xf32>
    %220 = arith.index_cast %c2_i32 : i32 to index
    %c0_63 = arith.constant 0 : index
    %c0_64 = arith.constant 0 : index
    %221 = vector.load %arg15[%220, %c0_63, %c0_64] : memref<8x2x32xf32, #tpu.memory_space<vmem>>, vector<1x2x32xf32>
    tpu.vector_store %arg15[%220, %c0_63, %c0_64], %219 {strides = array<i32>} : memref<8x2x32xf32, #tpu.memory_space<vmem>>, vector<1x2x32xf32>,
    %222 = vector.shape_cast %218 : vector<2x32xf32> to vector<1x2x32xf32>
    %223 = arith.index_cast %156 : i32 to index
    %c0_65 = arith.constant 0 : index
    %c0_66 = arith.constant 0 : index
    %224 = vector.load %arg16[%223, %c0_65, %c0_66] : memref<8x2x32xf32, #tpu.memory_space<vmem>>, vector<1x2x32xf32>
    tpu.vector_store %arg16[%223, %c0_65, %c0_66], %222 {strides = array<i32>} : memref<8x2x32xf32, #tpu.memory_space<vmem>>, vector<1x2x32xf32>,
    %c3_i32 = arith.constant 3 : i32
    %c7_i32_67 = arith.constant 7 : i32
    %225 = arith.subi %c7_i32_67, %c3_i32 : i32
    %226 = tpu.concatenate %188, %218 in 1 : vector<2x32xf32>, vector<2x32xf32> -> vector<2x64xf32>
    %cst_68 = arith.constant dense<0.000000e+00> : vector<2x256xf32>
    %227 = tpu.matmul %226, %16, %cst_68 {dimension_numbers = #tpu.dot_dimension_numbers<[1], [0], [0], [1], [0, 0, 1, 1], [], []>} : vector<2x64xf32>, vector<64x256xf32>, vector<2x256xf32> -> vector<2x256xf32>
    %228 = arith.index_cast %c3_i32 : i32 to index
    %c0_69 = arith.constant 0 : index
    %c0_70 = arith.constant 0 : index
    %229 = vector.load %arg13[%228, %c0_69, %c0_70] : memref<8x2x128xf32, #tpu.memory_space<vmem>>, vector<1x2x128xf32>
    %230 = vector.shape_cast %229 : vector<1x2x128xf32> to vector<2x128xf32>
    %231 = vector.extract_strided_slice %227 {offsets = [0, 0], sizes = [2, 128], strides = [1, 1]} : vector<2x256xf32> to vector<2x128xf32>
    %232 = arith.addf %230, %231 : vector<2x128xf32>
    %233 = vector.extract_strided_slice %232 {offsets = [0, 0], sizes = [2, 32], strides = [1, 1]} : vector<2x128xf32> to vector<2x32xf32>
    %234 = arith.negf %233 : vector<2x32xf32>
    %235 = math.exp %234 : vector<2x32xf32>
    %cst_71 = arith.constant 1.000000e+00 : f32
    %236 = vector.broadcast %cst_71 : f32 to vector<2x32xf32>
    %237 = arith.addf %236, %235 : vector<2x32xf32>
    %238 = arith.divf %236, %237 : vector<2x32xf32>
    %239 = vector.extract_strided_slice %232 {offsets = [0, 32], sizes = [2, 32], strides = [1, 1]} : vector<2x128xf32> to vector<2x32xf32>
    %240 = arith.negf %239 : vector<2x32xf32>
    %241 = math.exp %240 : vector<2x32xf32>
    %cst_72 = arith.constant 1.000000e+00 : f32
    %242 = vector.broadcast %cst_72 : f32 to vector<2x32xf32>
    %243 = arith.addf %242, %241 : vector<2x32xf32>
    %244 = arith.divf %242, %243 : vector<2x32xf32>
    %245 = vector.extract_strided_slice %232 {offsets = [0, 64], sizes = [2, 32], strides = [1, 1]} : vector<2x128xf32> to vector<2x32xf32>
    %246 = math.tanh %245 : vector<2x32xf32>
    %247 = vector.extract_strided_slice %232 {offsets = [0, 96], sizes = [2, 32], strides = [1, 1]} : vector<2x128xf32> to vector<2x32xf32>
    %248 = arith.negf %247 : vector<2x32xf32>
    %249 = math.exp %248 : vector<2x32xf32>
    %cst_73 = arith.constant 1.000000e+00 : f32
    %250 = vector.broadcast %cst_73 : f32 to vector<2x32xf32>
    %251 = arith.addf %250, %249 : vector<2x32xf32>
    %252 = arith.divf %250, %251 : vector<2x32xf32>
    %253 = arith.mulf %244, %186 : vector<2x32xf32>
    %254 = arith.mulf %238, %246 : vector<2x32xf32>
    %255 = arith.addf %253, %254 : vector<2x32xf32>
    %256 = math.tanh %255 : vector<2x32xf32>
    %257 = arith.mulf %252, %256 : vector<2x32xf32>
    %258 = arith.index_cast %225 : i32 to index
    %c0_74 = arith.constant 0 : index
    %c0_75 = arith.constant 0 : index
    %259 = vector.load %arg14[%258, %c0_74, %c0_75] : memref<8x2x128xf32, #tpu.memory_space<vmem>>, vector<1x2x128xf32>
    %260 = vector.shape_cast %259 : vector<1x2x128xf32> to vector<2x128xf32>
    %261 = vector.extract_strided_slice %227 {offsets = [0, 128], sizes = [2, 128], strides = [1, 1]} : vector<2x256xf32> to vector<2x128xf32>
    %262 = arith.addf %260, %261 : vector<2x128xf32>
    %263 = vector.extract_strided_slice %262 {offsets = [0, 0], sizes = [2, 32], strides = [1, 1]} : vector<2x128xf32> to vector<2x32xf32>
    %264 = arith.negf %263 : vector<2x32xf32>
    %265 = math.exp %264 : vector<2x32xf32>
    %cst_76 = arith.constant 1.000000e+00 : f32
    %266 = vector.broadcast %cst_76 : f32 to vector<2x32xf32>
    %267 = arith.addf %266, %265 : vector<2x32xf32>
    %268 = arith.divf %266, %267 : vector<2x32xf32>
    %269 = vector.extract_strided_slice %262 {offsets = [0, 32], sizes = [2, 32], strides = [1, 1]} : vector<2x128xf32> to vector<2x32xf32>
    %270 = arith.negf %269 : vector<2x32xf32>
    %271 = math.exp %270 : vector<2x32xf32>
    %cst_77 = arith.constant 1.000000e+00 : f32
    %272 = vector.broadcast %cst_77 : f32 to vector<2x32xf32>
    %273 = arith.addf %272, %271 : vector<2x32xf32>
    %274 = arith.divf %272, %273 : vector<2x32xf32>
    %275 = vector.extract_strided_slice %262 {offsets = [0, 64], sizes = [2, 32], strides = [1, 1]} : vector<2x128xf32> to vector<2x32xf32>
    %276 = math.tanh %275 : vector<2x32xf32>
    %277 = vector.extract_strided_slice %262 {offsets = [0, 96], sizes = [2, 32], strides = [1, 1]} : vector<2x128xf32> to vector<2x32xf32>
    %278 = arith.negf %277 : vector<2x32xf32>
    %279 = math.exp %278 : vector<2x32xf32>
    %cst_78 = arith.constant 1.000000e+00 : f32
    %280 = vector.broadcast %cst_78 : f32 to vector<2x32xf32>
    %281 = arith.addf %280, %279 : vector<2x32xf32>
    %282 = arith.divf %280, %281 : vector<2x32xf32>
    %283 = arith.mulf %274, %216 : vector<2x32xf32>
    %284 = arith.mulf %268, %276 : vector<2x32xf32>
    %285 = arith.addf %283, %284 : vector<2x32xf32>
    %286 = math.tanh %285 : vector<2x32xf32>
    %287 = arith.mulf %282, %286 : vector<2x32xf32>
    %288 = vector.shape_cast %257 : vector<2x32xf32> to vector<1x2x32xf32>
    %289 = arith.index_cast %c3_i32 : i32 to index
    %c0_79 = arith.constant 0 : index
    %c0_80 = arith.constant 0 : index
    %290 = vector.load %arg15[%289, %c0_79, %c0_80] : memref<8x2x32xf32, #tpu.memory_space<vmem>>, vector<1x2x32xf32>
    tpu.vector_store %arg15[%289, %c0_79, %c0_80], %288 {strides = array<i32>} : memref<8x2x32xf32, #tpu.memory_space<vmem>>, vector<1x2x32xf32>,
    %291 = vector.shape_cast %287 : vector<2x32xf32> to vector<1x2x32xf32>
    %292 = arith.index_cast %225 : i32 to index
    %c0_81 = arith.constant 0 : index
    %c0_82 = arith.constant 0 : index
    %293 = vector.load %arg16[%292, %c0_81, %c0_82] : memref<8x2x32xf32, #tpu.memory_space<vmem>>, vector<1x2x32xf32>
    tpu.vector_store %arg16[%292, %c0_81, %c0_82], %291 {strides = array<i32>} : memref<8x2x32xf32, #tpu.memory_space<vmem>>, vector<1x2x32xf32>,
    %c4_i32 = arith.constant 4 : i32
    %c7_i32_83 = arith.constant 7 : i32
    %294 = arith.subi %c7_i32_83, %c4_i32 : i32
    %295 = tpu.concatenate %257, %287 in 1 : vector<2x32xf32>, vector<2x32xf32> -> vector<2x64xf32>
    %cst_84 = arith.constant dense<0.000000e+00> : vector<2x256xf32>
    %296 = tpu.matmul %295, %16, %cst_84 {dimension_numbers = #tpu.dot_dimension_numbers<[1], [0], [0], [1], [0, 0, 1, 1], [], []>} : vector<2x64xf32>, vector<64x256xf32>, vector<2x256xf32> -> vector<2x256xf32>
    %297 = arith.index_cast %c4_i32 : i32 to index
    %c0_85 = arith.constant 0 : index
    %c0_86 = arith.constant 0 : index
    %298 = vector.load %arg13[%297, %c0_85, %c0_86] : memref<8x2x128xf32, #tpu.memory_space<vmem>>, vector<1x2x128xf32>
    %299 = vector.shape_cast %298 : vector<1x2x128xf32> to vector<2x128xf32>
    %300 = vector.extract_strided_slice %296 {offsets = [0, 0], sizes = [2, 128], strides = [1, 1]} : vector<2x256xf32> to vector<2x128xf32>
    %301 = arith.addf %299, %300 : vector<2x128xf32>
    %302 = vector.extract_strided_slice %301 {offsets = [0, 0], sizes = [2, 32], strides = [1, 1]} : vector<2x128xf32> to vector<2x32xf32>
    %303 = arith.negf %302 : vector<2x32xf32>
    %304 = math.exp %303 : vector<2x32xf32>
    %cst_87 = arith.constant 1.000000e+00 : f32
    %305 = vector.broadcast %cst_87 : f32 to vector<2x32xf32>
    %306 = arith.addf %305, %304 : vector<2x32xf32>
    %307 = arith.divf %305, %306 : vector<2x32xf32>
    %308 = vector.extract_strided_slice %301 {offsets = [0, 32], sizes = [2, 32], strides = [1, 1]} : vector<2x128xf32> to vector<2x32xf32>
    %309 = arith.negf %308 : vector<2x32xf32>
    %310 = math.exp %309 : vector<2x32xf32>
    %cst_88 = arith.constant 1.000000e+00 : f32
    %311 = vector.broadcast %cst_88 : f32 to vector<2x32xf32>
    %312 = arith.addf %311, %310 : vector<2x32xf32>
    %313 = arith.divf %311, %312 : vector<2x32xf32>
    %314 = vector.extract_strided_slice %301 {offsets = [0, 64], sizes = [2, 32], strides = [1, 1]} : vector<2x128xf32> to vector<2x32xf32>
    %315 = math.tanh %314 : vector<2x32xf32>
    %316 = vector.extract_strided_slice %301 {offsets = [0, 96], sizes = [2, 32], strides = [1, 1]} : vector<2x128xf32> to vector<2x32xf32>
    %317 = arith.negf %316 : vector<2x32xf32>
    %318 = math.exp %317 : vector<2x32xf32>
    %cst_89 = arith.constant 1.000000e+00 : f32
    %319 = vector.broadcast %cst_89 : f32 to vector<2x32xf32>
    %320 = arith.addf %319, %318 : vector<2x32xf32>
    %321 = arith.divf %319, %320 : vector<2x32xf32>
    %322 = arith.mulf %313, %255 : vector<2x32xf32>
    %323 = arith.mulf %307, %315 : vector<2x32xf32>
    %324 = arith.addf %322, %323 : vector<2x32xf32>
    %325 = math.tanh %324 : vector<2x32xf32>
    %326 = arith.mulf %321, %325 : vector<2x32xf32>
    %327 = arith.index_cast %294 : i32 to index
    %c0_90 = arith.constant 0 : index
    %c0_91 = arith.constant 0 : index
    %328 = vector.load %arg14[%327, %c0_90, %c0_91] : memref<8x2x128xf32, #tpu.memory_space<vmem>>, vector<1x2x128xf32>
    %329 = vector.shape_cast %328 : vector<1x2x128xf32> to vector<2x128xf32>
    %330 = vector.extract_strided_slice %296 {offsets = [0, 128], sizes = [2, 128], strides = [1, 1]} : vector<2x256xf32> to vector<2x128xf32>
    %331 = arith.addf %329, %330 : vector<2x128xf32>
    %332 = vector.extract_strided_slice %331 {offsets = [0, 0], sizes = [2, 32], strides = [1, 1]} : vector<2x128xf32> to vector<2x32xf32>
    %333 = arith.negf %332 : vector<2x32xf32>
    %334 = math.exp %333 : vector<2x32xf32>
    %cst_92 = arith.constant 1.000000e+00 : f32
    %335 = vector.broadcast %cst_92 : f32 to vector<2x32xf32>
    %336 = arith.addf %335, %334 : vector<2x32xf32>
    %337 = arith.divf %335, %336 : vector<2x32xf32>
    %338 = vector.extract_strided_slice %331 {offsets = [0, 32], sizes = [2, 32], strides = [1, 1]} : vector<2x128xf32> to vector<2x32xf32>
    %339 = arith.negf %338 : vector<2x32xf32>
    %340 = math.exp %339 : vector<2x32xf32>
    %cst_93 = arith.constant 1.000000e+00 : f32
    %341 = vector.broadcast %cst_93 : f32 to vector<2x32xf32>
    %342 = arith.addf %341, %340 : vector<2x32xf32>
    %343 = arith.divf %341, %342 : vector<2x32xf32>
    %344 = vector.extract_strided_slice %331 {offsets = [0, 64], sizes = [2, 32], strides = [1, 1]} : vector<2x128xf32> to vector<2x32xf32>
    %345 = math.tanh %344 : vector<2x32xf32>
    %346 = vector.extract_strided_slice %331 {offsets = [0, 96], sizes = [2, 32], strides = [1, 1]} : vector<2x128xf32> to vector<2x32xf32>
    %347 = arith.negf %346 : vector<2x32xf32>
    %348 = math.exp %347 : vector<2x32xf32>
    %cst_94 = arith.constant 1.000000e+00 : f32
    %349 = vector.broadcast %cst_94 : f32 to vector<2x32xf32>
    %350 = arith.addf %349, %348 : vector<2x32xf32>
    %351 = arith.divf %349, %350 : vector<2x32xf32>
    %352 = arith.mulf %343, %285 : vector<2x32xf32>
    %353 = arith.mulf %337, %345 : vector<2x32xf32>
    %354 = arith.addf %352, %353 : vector<2x32xf32>
    %355 = math.tanh %354 : vector<2x32xf32>
    %356 = arith.mulf %351, %355 : vector<2x32xf32>
    %357 = vector.shape_cast %326 : vector<2x32xf32> to vector<1x2x32xf32>
    %358 = arith.index_cast %c4_i32 : i32 to index
    %c0_95 = arith.constant 0 : index
    %c0_96 = arith.constant 0 : index
    %359 = vector.load %arg15[%358, %c0_95, %c0_96] : memref<8x2x32xf32, #tpu.memory_space<vmem>>, vector<1x2x32xf32>
    tpu.vector_store %arg15[%358, %c0_95, %c0_96], %357 {strides = array<i32>} : memref<8x2x32xf32, #tpu.memory_space<vmem>>, vector<1x2x32xf32>,
    %360 = vector.shape_cast %356 : vector<2x32xf32> to vector<1x2x32xf32>
    %361 = arith.index_cast %294 : i32 to index
    %c0_97 = arith.constant 0 : index
    %c0_98 = arith.constant 0 : index
    %362 = vector.load %arg16[%361, %c0_97, %c0_98] : memref<8x2x32xf32, #tpu.memory_space<vmem>>, vector<1x2x32xf32>
    tpu.vector_store %arg16[%361, %c0_97, %c0_98], %360 {strides = array<i32>} : memref<8x2x32xf32, #tpu.memory_space<vmem>>, vector<1x2x32xf32>,
    %c5_i32 = arith.constant 5 : i32
    %c7_i32_99 = arith.constant 7 : i32
    %363 = arith.subi %c7_i32_99, %c5_i32 : i32
    %364 = tpu.concatenate %326, %356 in 1 : vector<2x32xf32>, vector<2x32xf32> -> vector<2x64xf32>
    %cst_100 = arith.constant dense<0.000000e+00> : vector<2x256xf32>
    %365 = tpu.matmul %364, %16, %cst_100 {dimension_numbers = #tpu.dot_dimension_numbers<[1], [0], [0], [1], [0, 0, 1, 1], [], []>} : vector<2x64xf32>, vector<64x256xf32>, vector<2x256xf32> -> vector<2x256xf32>
    %366 = arith.index_cast %c5_i32 : i32 to index
    %c0_101 = arith.constant 0 : index
    %c0_102 = arith.constant 0 : index
    %367 = vector.load %arg13[%366, %c0_101, %c0_102] : memref<8x2x128xf32, #tpu.memory_space<vmem>>, vector<1x2x128xf32>
    %368 = vector.shape_cast %367 : vector<1x2x128xf32> to vector<2x128xf32>
    %369 = vector.extract_strided_slice %365 {offsets = [0, 0], sizes = [2, 128], strides = [1, 1]} : vector<2x256xf32> to vector<2x128xf32>
    %370 = arith.addf %368, %369 : vector<2x128xf32>
    %371 = vector.extract_strided_slice %370 {offsets = [0, 0], sizes = [2, 32], strides = [1, 1]} : vector<2x128xf32> to vector<2x32xf32>
    %372 = arith.negf %371 : vector<2x32xf32>
    %373 = math.exp %372 : vector<2x32xf32>
    %cst_103 = arith.constant 1.000000e+00 : f32
    %374 = vector.broadcast %cst_103 : f32 to vector<2x32xf32>
    %375 = arith.addf %374, %373 : vector<2x32xf32>
    %376 = arith.divf %374, %375 : vector<2x32xf32>
    %377 = vector.extract_strided_slice %370 {offsets = [0, 32], sizes = [2, 32], strides = [1, 1]} : vector<2x128xf32> to vector<2x32xf32>
    %378 = arith.negf %377 : vector<2x32xf32>
    %379 = math.exp %378 : vector<2x32xf32>
    %cst_104 = arith.constant 1.000000e+00 : f32
    %380 = vector.broadcast %cst_104 : f32 to vector<2x32xf32>
    %381 = arith.addf %380, %379 : vector<2x32xf32>
    %382 = arith.divf %380, %381 : vector<2x32xf32>
    %383 = vector.extract_strided_slice %370 {offsets = [0, 64], sizes = [2, 32], strides = [1, 1]} : vector<2x128xf32> to vector<2x32xf32>
    %384 = math.tanh %383 : vector<2x32xf32>
    %385 = vector.extract_strided_slice %370 {offsets = [0, 96], sizes = [2, 32], strides = [1, 1]} : vector<2x128xf32> to vector<2x32xf32>
    %386 = arith.negf %385 : vector<2x32xf32>
    %387 = math.exp %386 : vector<2x32xf32>
    %cst_105 = arith.constant 1.000000e+00 : f32
    %388 = vector.broadcast %cst_105 : f32 to vector<2x32xf32>
    %389 = arith.addf %388, %387 : vector<2x32xf32>
    %390 = arith.divf %388, %389 : vector<2x32xf32>
    %391 = arith.mulf %382, %324 : vector<2x32xf32>
    %392 = arith.mulf %376, %384 : vector<2x32xf32>
    %393 = arith.addf %391, %392 : vector<2x32xf32>
    %394 = math.tanh %393 : vector<2x32xf32>
    %395 = arith.mulf %390, %394 : vector<2x32xf32>
    %396 = arith.index_cast %363 : i32 to index
    %c0_106 = arith.constant 0 : index
    %c0_107 = arith.constant 0 : index
    %397 = vector.load %arg14[%396, %c0_106, %c0_107] : memref<8x2x128xf32, #tpu.memory_space<vmem>>, vector<1x2x128xf32>
    %398 = vector.shape_cast %397 : vector<1x2x128xf32> to vector<2x128xf32>
    %399 = vector.extract_strided_slice %365 {offsets = [0, 128], sizes = [2, 128], strides = [1, 1]} : vector<2x256xf32> to vector<2x128xf32>
    %400 = arith.addf %398, %399 : vector<2x128xf32>
    %401 = vector.extract_strided_slice %400 {offsets = [0, 0], sizes = [2, 32], strides = [1, 1]} : vector<2x128xf32> to vector<2x32xf32>
    %402 = arith.negf %401 : vector<2x32xf32>
    %403 = math.exp %402 : vector<2x32xf32>
    %cst_108 = arith.constant 1.000000e+00 : f32
    %404 = vector.broadcast %cst_108 : f32 to vector<2x32xf32>
    %405 = arith.addf %404, %403 : vector<2x32xf32>
    %406 = arith.divf %404, %405 : vector<2x32xf32>
    %407 = vector.extract_strided_slice %400 {offsets = [0, 32], sizes = [2, 32], strides = [1, 1]} : vector<2x128xf32> to vector<2x32xf32>
    %408 = arith.negf %407 : vector<2x32xf32>
    %409 = math.exp %408 : vector<2x32xf32>
    %cst_109 = arith.constant 1.000000e+00 : f32
    %410 = vector.broadcast %cst_109 : f32 to vector<2x32xf32>
    %411 = arith.addf %410, %409 : vector<2x32xf32>
    %412 = arith.divf %410, %411 : vector<2x32xf32>
    %413 = vector.extract_strided_slice %400 {offsets = [0, 64], sizes = [2, 32], strides = [1, 1]} : vector<2x128xf32> to vector<2x32xf32>
    %414 = math.tanh %413 : vector<2x32xf32>
    %415 = vector.extract_strided_slice %400 {offsets = [0, 96], sizes = [2, 32], strides = [1, 1]} : vector<2x128xf32> to vector<2x32xf32>
    %416 = arith.negf %415 : vector<2x32xf32>
    %417 = math.exp %416 : vector<2x32xf32>
    %cst_110 = arith.constant 1.000000e+00 : f32
    %418 = vector.broadcast %cst_110 : f32 to vector<2x32xf32>
    %419 = arith.addf %418, %417 : vector<2x32xf32>
    %420 = arith.divf %418, %419 : vector<2x32xf32>
    %421 = arith.mulf %412, %354 : vector<2x32xf32>
    %422 = arith.mulf %406, %414 : vector<2x32xf32>
    %423 = arith.addf %421, %422 : vector<2x32xf32>
    %424 = math.tanh %423 : vector<2x32xf32>
    %425 = arith.mulf %420, %424 : vector<2x32xf32>
    %426 = vector.shape_cast %395 : vector<2x32xf32> to vector<1x2x32xf32>
    %427 = arith.index_cast %c5_i32 : i32 to index
    %c0_111 = arith.constant 0 : index
    %c0_112 = arith.constant 0 : index
    %428 = vector.load %arg15[%427, %c0_111, %c0_112] : memref<8x2x32xf32, #tpu.memory_space<vmem>>, vector<1x2x32xf32>
    tpu.vector_store %arg15[%427, %c0_111, %c0_112], %426 {strides = array<i32>} : memref<8x2x32xf32, #tpu.memory_space<vmem>>, vector<1x2x32xf32>,
    %429 = vector.shape_cast %425 : vector<2x32xf32> to vector<1x2x32xf32>
    %430 = arith.index_cast %363 : i32 to index
    %c0_113 = arith.constant 0 : index
    %c0_114 = arith.constant 0 : index
    %431 = vector.load %arg16[%430, %c0_113, %c0_114] : memref<8x2x32xf32, #tpu.memory_space<vmem>>, vector<1x2x32xf32>
    tpu.vector_store %arg16[%430, %c0_113, %c0_114], %429 {strides = array<i32>} : memref<8x2x32xf32, #tpu.memory_space<vmem>>, vector<1x2x32xf32>,
    %c6_i32 = arith.constant 6 : i32
    %c7_i32_115 = arith.constant 7 : i32
    %432 = arith.subi %c7_i32_115, %c6_i32 : i32
    %433 = tpu.concatenate %395, %425 in 1 : vector<2x32xf32>, vector<2x32xf32> -> vector<2x64xf32>
    %cst_116 = arith.constant dense<0.000000e+00> : vector<2x256xf32>
    %434 = tpu.matmul %433, %16, %cst_116 {dimension_numbers = #tpu.dot_dimension_numbers<[1], [0], [0], [1], [0, 0, 1, 1], [], []>} : vector<2x64xf32>, vector<64x256xf32>, vector<2x256xf32> -> vector<2x256xf32>
    %435 = arith.index_cast %c6_i32 : i32 to index
    %c0_117 = arith.constant 0 : index
    %c0_118 = arith.constant 0 : index
    %436 = vector.load %arg13[%435, %c0_117, %c0_118] : memref<8x2x128xf32, #tpu.memory_space<vmem>>, vector<1x2x128xf32>
    %437 = vector.shape_cast %436 : vector<1x2x128xf32> to vector<2x128xf32>
    %438 = vector.extract_strided_slice %434 {offsets = [0, 0], sizes = [2, 128], strides = [1, 1]} : vector<2x256xf32> to vector<2x128xf32>
    %439 = arith.addf %437, %438 : vector<2x128xf32>
    %440 = vector.extract_strided_slice %439 {offsets = [0, 0], sizes = [2, 32], strides = [1, 1]} : vector<2x128xf32> to vector<2x32xf32>
    %441 = arith.negf %440 : vector<2x32xf32>
    %442 = math.exp %441 : vector<2x32xf32>
    %cst_119 = arith.constant 1.000000e+00 : f32
    %443 = vector.broadcast %cst_119 : f32 to vector<2x32xf32>
    %444 = arith.addf %443, %442 : vector<2x32xf32>
    %445 = arith.divf %443, %444 : vector<2x32xf32>
    %446 = vector.extract_strided_slice %439 {offsets = [0, 32], sizes = [2, 32], strides = [1, 1]} : vector<2x128xf32> to vector<2x32xf32>
    %447 = arith.negf %446 : vector<2x32xf32>
    %448 = math.exp %447 : vector<2x32xf32>
    %cst_120 = arith.constant 1.000000e+00 : f32
    %449 = vector.broadcast %cst_120 : f32 to vector<2x32xf32>
    %450 = arith.addf %449, %448 : vector<2x32xf32>
    %451 = arith.divf %449, %450 : vector<2x32xf32>
    %452 = vector.extract_strided_slice %439 {offsets = [0, 64], sizes = [2, 32], strides = [1, 1]} : vector<2x128xf32> to vector<2x32xf32>
    %453 = math.tanh %452 : vector<2x32xf32>
    %454 = vector.extract_strided_slice %439 {offsets = [0, 96], sizes = [2, 32], strides = [1, 1]} : vector<2x128xf32> to vector<2x32xf32>
    %455 = arith.negf %454 : vector<2x32xf32>
    %456 = math.exp %455 : vector<2x32xf32>
    %cst_121 = arith.constant 1.000000e+00 : f32
    %457 = vector.broadcast %cst_121 : f32 to vector<2x32xf32>
    %458 = arith.addf %457, %456 : vector<2x32xf32>
    %459 = arith.divf %457, %458 : vector<2x32xf32>
    %460 = arith.mulf %451, %393 : vector<2x32xf32>
    %461 = arith.mulf %445, %453 : vector<2x32xf32>
    %462 = arith.addf %460, %461 : vector<2x32xf32>
    %463 = math.tanh %462 : vector<2x32xf32>
    %464 = arith.mulf %459, %463 : vector<2x32xf32>
    %465 = arith.index_cast %432 : i32 to index
    %c0_122 = arith.constant 0 : index
    %c0_123 = arith.constant 0 : index
    %466 = vector.load %arg14[%465, %c0_122, %c0_123] : memref<8x2x128xf32, #tpu.memory_space<vmem>>, vector<1x2x128xf32>
    %467 = vector.shape_cast %466 : vector<1x2x128xf32> to vector<2x128xf32>
    %468 = vector.extract_strided_slice %434 {offsets = [0, 128], sizes = [2, 128], strides = [1, 1]} : vector<2x256xf32> to vector<2x128xf32>
    %469 = arith.addf %467, %468 : vector<2x128xf32>
    %470 = vector.extract_strided_slice %469 {offsets = [0, 0], sizes = [2, 32], strides = [1, 1]} : vector<2x128xf32> to vector<2x32xf32>
    %471 = arith.negf %470 : vector<2x32xf32>
    %472 = math.exp %471 : vector<2x32xf32>
    %cst_124 = arith.constant 1.000000e+00 : f32
    %473 = vector.broadcast %cst_124 : f32 to vector<2x32xf32>
    %474 = arith.addf %473, %472 : vector<2x32xf32>
    %475 = arith.divf %473, %474 : vector<2x32xf32>
    %476 = vector.extract_strided_slice %469 {offsets = [0, 32], sizes = [2, 32], strides = [1, 1]} : vector<2x128xf32> to vector<2x32xf32>
    %477 = arith.negf %476 : vector<2x32xf32>
    %478 = math.exp %477 : vector<2x32xf32>
    %cst_125 = arith.constant 1.000000e+00 : f32
    %479 = vector.broadcast %cst_125 : f32 to vector<2x32xf32>
    %480 = arith.addf %479, %478 : vector<2x32xf32>
    %481 = arith.divf %479, %480 : vector<2x32xf32>
    %482 = vector.extract_strided_slice %469 {offsets = [0, 64], sizes = [2, 32], strides = [1, 1]} : vector<2x128xf32> to vector<2x32xf32>
    %483 = math.tanh %482 : vector<2x32xf32>
    %484 = vector.extract_strided_slice %469 {offsets = [0, 96], sizes = [2, 32], strides = [1, 1]} : vector<2x128xf32> to vector<2x32xf32>
    %485 = arith.negf %484 : vector<2x32xf32>
    %486 = math.exp %485 : vector<2x32xf32>
    %cst_126 = arith.constant 1.000000e+00 : f32
    %487 = vector.broadcast %cst_126 : f32 to vector<2x32xf32>
    %488 = arith.addf %487, %486 : vector<2x32xf32>
    %489 = arith.divf %487, %488 : vector<2x32xf32>
    %490 = arith.mulf %481, %423 : vector<2x32xf32>
    %491 = arith.mulf %475, %483 : vector<2x32xf32>
    %492 = arith.addf %490, %491 : vector<2x32xf32>
    %493 = math.tanh %492 : vector<2x32xf32>
    %494 = arith.mulf %489, %493 : vector<2x32xf32>
    %495 = vector.shape_cast %464 : vector<2x32xf32> to vector<1x2x32xf32>
    %496 = arith.index_cast %c6_i32 : i32 to index
    %c0_127 = arith.constant 0 : index
    %c0_128 = arith.constant 0 : index
    %497 = vector.load %arg15[%496, %c0_127, %c0_128] : memref<8x2x32xf32, #tpu.memory_space<vmem>>, vector<1x2x32xf32>
    tpu.vector_store %arg15[%496, %c0_127, %c0_128], %495 {strides = array<i32>} : memref<8x2x32xf32, #tpu.memory_space<vmem>>, vector<1x2x32xf32>,
    %498 = vector.shape_cast %494 : vector<2x32xf32> to vector<1x2x32xf32>
    %499 = arith.index_cast %432 : i32 to index
    %c0_129 = arith.constant 0 : index
    %c0_130 = arith.constant 0 : index
    %500 = vector.load %arg16[%499, %c0_129, %c0_130] : memref<8x2x32xf32, #tpu.memory_space<vmem>>, vector<1x2x32xf32>
    tpu.vector_store %arg16[%499, %c0_129, %c0_130], %498 {strides = array<i32>} : memref<8x2x32xf32, #tpu.memory_space<vmem>>, vector<1x2x32xf32>,
    %c7_i32_131 = arith.constant 7 : i32
    %c7_i32_132 = arith.constant 7 : i32
    %501 = arith.subi %c7_i32_132, %c7_i32_131 : i32
    %502 = tpu.concatenate %464, %494 in 1 : vector<2x32xf32>, vector<2x32xf32> -> vector<2x64xf32>
    %cst_133 = arith.constant dense<0.000000e+00> : vector<2x256xf32>
    %503 = tpu.matmul %502, %16, %cst_133 {dimension_numbers = #tpu.dot_dimension_numbers<[1], [0], [0], [1], [0, 0, 1, 1], [], []>} : vector<2x64xf32>, vector<64x256xf32>, vector<2x256xf32> -> vector<2x256xf32>
    %504 = arith.index_cast %c7_i32_131 : i32 to index
    %c0_134 = arith.constant 0 : index
    %c0_135 = arith.constant 0 : index
    %505 = vector.load %arg13[%504, %c0_134, %c0_135] : memref<8x2x128xf32, #tpu.memory_space<vmem>>, vector<1x2x128xf32>
    %506 = vector.shape_cast %505 : vector<1x2x128xf32> to vector<2x128xf32>
    %507 = vector.extract_strided_slice %503 {offsets = [0, 0], sizes = [2, 128], strides = [1, 1]} : vector<2x256xf32> to vector<2x128xf32>
    %508 = arith.addf %506, %507 : vector<2x128xf32>
    %509 = vector.extract_strided_slice %508 {offsets = [0, 0], sizes = [2, 32], strides = [1, 1]} : vector<2x128xf32> to vector<2x32xf32>
    %510 = arith.negf %509 : vector<2x32xf32>
    %511 = math.exp %510 : vector<2x32xf32>
    %cst_136 = arith.constant 1.000000e+00 : f32
    %512 = vector.broadcast %cst_136 : f32 to vector<2x32xf32>
    %513 = arith.addf %512, %511 : vector<2x32xf32>
    %514 = arith.divf %512, %513 : vector<2x32xf32>
    %515 = vector.extract_strided_slice %508 {offsets = [0, 32], sizes = [2, 32], strides = [1, 1]} : vector<2x128xf32> to vector<2x32xf32>
    %516 = arith.negf %515 : vector<2x32xf32>
    %517 = math.exp %516 : vector<2x32xf32>
    %cst_137 = arith.constant 1.000000e+00 : f32
    %518 = vector.broadcast %cst_137 : f32 to vector<2x32xf32>
    %519 = arith.addf %518, %517 : vector<2x32xf32>
    %520 = arith.divf %518, %519 : vector<2x32xf32>
    %521 = vector.extract_strided_slice %508 {offsets = [0, 64], sizes = [2, 32], strides = [1, 1]} : vector<2x128xf32> to vector<2x32xf32>
    %522 = math.tanh %521 : vector<2x32xf32>
    %523 = vector.extract_strided_slice %508 {offsets = [0, 96], sizes = [2, 32], strides = [1, 1]} : vector<2x128xf32> to vector<2x32xf32>
    %524 = arith.negf %523 : vector<2x32xf32>
    %525 = math.exp %524 : vector<2x32xf32>
    %cst_138 = arith.constant 1.000000e+00 : f32
    %526 = vector.broadcast %cst_138 : f32 to vector<2x32xf32>
    %527 = arith.addf %526, %525 : vector<2x32xf32>
    %528 = arith.divf %526, %527 : vector<2x32xf32>
    %529 = arith.mulf %520, %462 : vector<2x32xf32>
    %530 = arith.mulf %514, %522 : vector<2x32xf32>
    %531 = arith.addf %529, %530 : vector<2x32xf32>
    %532 = math.tanh %531 : vector<2x32xf32>
    %533 = arith.mulf %528, %532 : vector<2x32xf32>
    %534 = arith.index_cast %501 : i32 to index
    %c0_139 = arith.constant 0 : index
    %c0_140 = arith.constant 0 : index
    %535 = vector.load %arg14[%534, %c0_139, %c0_140] : memref<8x2x128xf32, #tpu.memory_space<vmem>>, vector<1x2x128xf32>
    %536 = vector.shape_cast %535 : vector<1x2x128xf32> to vector<2x128xf32>
    %537 = vector.extract_strided_slice %503 {offsets = [0, 128], sizes = [2, 128], strides = [1, 1]} : vector<2x256xf32> to vector<2x128xf32>
    %538 = arith.addf %536, %537 : vector<2x128xf32>
    %539 = vector.extract_strided_slice %538 {offsets = [0, 0], sizes = [2, 32], strides = [1, 1]} : vector<2x128xf32> to vector<2x32xf32>
    %540 = arith.negf %539 : vector<2x32xf32>
    %541 = math.exp %540 : vector<2x32xf32>
    %cst_141 = arith.constant 1.000000e+00 : f32
    %542 = vector.broadcast %cst_141 : f32 to vector<2x32xf32>
    %543 = arith.addf %542, %541 : vector<2x32xf32>
    %544 = arith.divf %542, %543 : vector<2x32xf32>
    %545 = vector.extract_strided_slice %538 {offsets = [0, 32], sizes = [2, 32], strides = [1, 1]} : vector<2x128xf32> to vector<2x32xf32>
    %546 = arith.negf %545 : vector<2x32xf32>
    %547 = math.exp %546 : vector<2x32xf32>
    %cst_142 = arith.constant 1.000000e+00 : f32
    %548 = vector.broadcast %cst_142 : f32 to vector<2x32xf32>
    %549 = arith.addf %548, %547 : vector<2x32xf32>
    %550 = arith.divf %548, %549 : vector<2x32xf32>
    %551 = vector.extract_strided_slice %538 {offsets = [0, 64], sizes = [2, 32], strides = [1, 1]} : vector<2x128xf32> to vector<2x32xf32>
    %552 = math.tanh %551 : vector<2x32xf32>
    %553 = vector.extract_strided_slice %538 {offsets = [0, 96], sizes = [2, 32], strides = [1, 1]} : vector<2x128xf32> to vector<2x32xf32>
    %554 = arith.negf %553 : vector<2x32xf32>
    %555 = math.exp %554 : vector<2x32xf32>
    %cst_143 = arith.constant 1.000000e+00 : f32
    %556 = vector.broadcast %cst_143 : f32 to vector<2x32xf32>
    %557 = arith.addf %556, %555 : vector<2x32xf32>
    %558 = arith.divf %556, %557 : vector<2x32xf32>
    %559 = arith.mulf %550, %492 : vector<2x32xf32>
    %560 = arith.mulf %544, %552 : vector<2x32xf32>
    %561 = arith.addf %559, %560 : vector<2x32xf32>
    %562 = math.tanh %561 : vector<2x32xf32>
    %563 = arith.mulf %558, %562 : vector<2x32xf32>
    %564 = vector.shape_cast %533 : vector<2x32xf32> to vector<1x2x32xf32>
    %565 = arith.index_cast %c7_i32_131 : i32 to index
    %c0_144 = arith.constant 0 : index
    %c0_145 = arith.constant 0 : index
    %566 = vector.load %arg15[%565, %c0_144, %c0_145] : memref<8x2x32xf32, #tpu.memory_space<vmem>>, vector<1x2x32xf32>
    tpu.vector_store %arg15[%565, %c0_144, %c0_145], %564 {strides = array<i32>} : memref<8x2x32xf32, #tpu.memory_space<vmem>>, vector<1x2x32xf32>,
    %567 = vector.shape_cast %563 : vector<2x32xf32> to vector<1x2x32xf32>
    %568 = arith.index_cast %501 : i32 to index
    %c0_146 = arith.constant 0 : index
    %c0_147 = arith.constant 0 : index
    %569 = vector.load %arg16[%568, %c0_146, %c0_147] : memref<8x2x32xf32, #tpu.memory_space<vmem>>, vector<1x2x32xf32>
    tpu.vector_store %arg16[%568, %c0_146, %c0_147], %567 {strides = array<i32>} : memref<8x2x32xf32, #tpu.memory_space<vmem>>, vector<1x2x32xf32>,
    %c8_i32 = arith.constant 8 : i32
    %c0_148 = arith.constant 0 : index
    %c0_149 = arith.constant 0 : index
    %c0_150 = arith.constant 0 : index
    %570 = vector.load %arg15[%c0_148, %c0_149, %c0_150] : memref<8x2x32xf32, #tpu.memory_space<vmem>>, vector<8x2x32xf32>
    %c0_151 = arith.constant 0 : index
    %c0_152 = arith.constant 0 : index
    %c0_153 = arith.constant 0 : index
    %571 = vector.load %arg16[%c0_151, %c0_152, %c0_153] : memref<8x2x32xf32, #tpu.memory_space<vmem>>, vector<8x2x32xf32>
    %c0_154 = arith.constant 0 : index
    %c0_155 = arith.constant 0 : index
    %572 = vector.load %arg7[%c0_154, %c0_155] : memref<64x8xf32, #tpu.memory_space<vmem>>, vector<64x8xf32>
    %573 = vector.shape_cast %570 : vector<8x2x32xf32> to vector<16x32xf32>
    %574 = vector.extract_strided_slice %572 {offsets = [0, 0], sizes = [32, 8], strides = [1, 1]} : vector<64x8xf32> to vector<32x8xf32>
    %cst_156 = arith.constant dense<0.000000e+00> : vector<16x8xf32>
    %575 = tpu.matmul %573, %574, %cst_156 {dimension_numbers = #tpu.dot_dimension_numbers<[1], [0], [0], [1], [0, 0, 1, 1], [], []>} : vector<16x32xf32>, vector<32x8xf32>, vector<16x8xf32> -> vector<16x8xf32>
    %576 = vector.shape_cast %571 : vector<8x2x32xf32> to vector<16x32xf32>
    %577 = vector.extract_strided_slice %572 {offsets = [32, 0], sizes = [32, 8], strides = [1, 1]} : vector<64x8xf32> to vector<32x8xf32>
    %cst_157 = arith.constant dense<0.000000e+00> : vector<16x8xf32>
    %578 = tpu.matmul %576, %577, %cst_157 {dimension_numbers = #tpu.dot_dimension_numbers<[1], [0], [0], [1], [0, 0, 1, 1], [], []>} : vector<16x32xf32>, vector<32x8xf32>, vector<16x8xf32> -> vector<16x8xf32>
    %579 = arith.addf %575, %578 : vector<16x8xf32>
    %c0_158 = arith.constant 0 : index
    %c0_159 = arith.constant 0 : index
    %580 = vector.load %arg8[%c0_158, %c0_159] : memref<1x8xf32, #tpu.memory_space<vmem>>, vector<1x8xf32>
    %581 = vector.broadcast %580 : vector<1x8xf32> to vector<16x8xf32>
    %582 = arith.addf %579, %581 : vector<16x8xf32>
    %583 = vector.shape_cast %582 : vector<16x8xf32> to vector<8x2x8xf32>
    %c0_160 = arith.constant 0 : index
    %c0_161 = arith.constant 0 : index
    %c0_162 = arith.constant 0 : index
    %584 = vector.load %arg11[%c0_160, %c0_161, %c0_162] : memref<8x2x8xf32, #tpu.memory_space<vmem>>, vector<8x2x8xf32>
    tpu.vector_store %arg11[%c0_160, %c0_161, %c0_162], %583 {strides = array<i32>} : memref<8x2x8xf32, #tpu.memory_space<vmem>>, vector<8x2x8xf32>,
    %cst_163 = arith.constant dense<0.000000e+00> : vector<2x32xf32>
    %585 = vector.multi_reduction <add>, %570, %cst_163 [0] : vector<8x2x32xf32> to vector<2x32xf32>
    %cst_164 = arith.constant 8.000000e+00 : f32
    %586 = vector.broadcast %cst_164 : f32 to vector<2x32xf32>
    %587 = arith.divf %585, %586 : vector<2x32xf32>
    %cst_165 = arith.constant dense<0.000000e+00> : vector<2x32xf32>
    %588 = vector.multi_reduction <add>, %571, %cst_165 [0] : vector<8x2x32xf32> to vector<2x32xf32>
    %cst_166 = arith.constant 8.000000e+00 : f32
    %589 = vector.broadcast %cst_166 : f32 to vector<2x32xf32>
    %590 = arith.divf %588, %589 : vector<2x32xf32>
    %c0_167 = arith.constant 0 : index
    %c0_168 = arith.constant 0 : index
    %591 = vector.load %arg9[%c0_167, %c0_168] : memref<64x2xf32, #tpu.memory_space<vmem>>, vector<64x2xf32>
    %592 = vector.extract_strided_slice %591 {offsets = [0, 0], sizes = [32, 2], strides = [1, 1]} : vector<64x2xf32> to vector<32x2xf32>
    %cst_169 = arith.constant dense<0.000000e+00> : vector<2x2xf32>
    %593 = tpu.matmul %587, %592, %cst_169 {dimension_numbers = #tpu.dot_dimension_numbers<[1], [0], [0], [1], [0, 0, 1, 1], [], []>} : vector<2x32xf32>, vector<32x2xf32>, vector<2x2xf32> -> vector<2x2xf32>
    %594 = vector.extract_strided_slice %591 {offsets = [32, 0], sizes = [32, 2], strides = [1, 1]} : vector<64x2xf32> to vector<32x2xf32>
    %cst_170 = arith.constant dense<0.000000e+00> : vector<2x2xf32>
    %595 = tpu.matmul %590, %594, %cst_170 {dimension_numbers = #tpu.dot_dimension_numbers<[1], [0], [0], [1], [0, 0, 1, 1], [], []>} : vector<2x32xf32>, vector<32x2xf32>, vector<2x2xf32> -> vector<2x2xf32>
    %596 = arith.addf %593, %595 : vector<2x2xf32>
    %c0_171 = arith.constant 0 : index
    %c0_172 = arith.constant 0 : index
    %597 = vector.load %arg10[%c0_171, %c0_172] : memref<1x2xf32, #tpu.memory_space<vmem>>, vector<1x2xf32>
    %598 = vector.broadcast %597 : vector<1x2xf32> to vector<2x2xf32>
    %599 = arith.addf %596, %598 : vector<2x2xf32>
    %c0_173 = arith.constant 0 : index
    %c0_174 = arith.constant 0 : index
    %600 = vector.load %arg12[%c0_173, %c0_174] : memref<2x2xf32, #tpu.memory_space<vmem>>, vector<2x2xf32>
    tpu.vector_store %arg12[%c0_173, %c0_174], %599 {strides = array<i32>} : memref<2x2xf32, #tpu.memory_space<vmem>>, vector<2x2xf32>,
    return
  }
  func.func @transform_0(%arg0: i32) -> (i32, i32, i32) {
    %c0_i32 = arith.constant 0 : i32
    %c0_i32_0 = arith.constant 0 : i32
    %c0_i32_1 = arith.constant 0 : i32
    return %c0_i32, %arg0, %c0_i32_0 : i32, i32, i32
  }
  func.func @transform_1(%arg0: i32) -> (i32, i32) {
    %c0_i32 = arith.constant 0 : i32
    %c0_i32_0 = arith.constant 0 : i32
    %c0_i32_1 = arith.constant 0 : i32
    return %c0_i32, %c0_i32_0 : i32, i32
  }
  func.func @transform_2(%arg0: i32) -> (i32, i32) {
    %c0_i32 = arith.constant 0 : i32
    %c0_i32_0 = arith.constant 0 : i32
    %c0_i32_1 = arith.constant 0 : i32
    return %c0_i32, %c0_i32_0 : i32, i32
  }
  func.func @transform_3(%arg0: i32) -> (i32, i32) {
    %c0_i32 = arith.constant 0 : i32
    %c0_i32_0 = arith.constant 0 : i32
    %c0_i32_1 = arith.constant 0 : i32
    return %c0_i32, %c0_i32_0 : i32, i32
  }
  func.func @transform_4(%arg0: i32) -> (i32, i32) {
    %c0_i32 = arith.constant 0 : i32
    %c0_i32_0 = arith.constant 0 : i32
    %c0_i32_1 = arith.constant 0 : i32
    return %c0_i32, %c0_i32_0 : i32, i32
  }
  func.func @transform_5(%arg0: i32) -> (i32, i32) {
    %c0_i32 = arith.constant 0 : i32
    %c0_i32_0 = arith.constant 0 : i32
    %c0_i32_1 = arith.constant 0 : i32
    return %c0_i32, %c0_i32_0 : i32, i32
  }
  func.func @transform_6(%arg0: i32) -> (i32, i32) {
    %c0_i32 = arith.constant 0 : i32
    %c0_i32_0 = arith.constant 0 : i32
    %c0_i32_1 = arith.constant 0 : i32
    return %c0_i32, %c0_i32_0 : i32, i32
  }
  func.func @transform_7(%arg0: i32) -> (i32, i32) {
    %c0_i32 = arith.constant 0 : i32
    %c0_i32_0 = arith.constant 0 : i32
    %c0_i32_1 = arith.constant 0 : i32
    return %c0_i32, %c0_i32_0 : i32, i32
  }
  func.func @transform_8(%arg0: i32) -> (i32, i32) {
    %c0_i32 = arith.constant 0 : i32
    %c0_i32_0 = arith.constant 0 : i32
    %c0_i32_1 = arith.constant 0 : i32
    return %c0_i32, %c0_i32_0 : i32, i32
  }
  func.func @transform_9(%arg0: i32) -> (i32, i32) {
    %c0_i32 = arith.constant 0 : i32
    %c0_i32_0 = arith.constant 0 : i32
    %c0_i32_1 = arith.constant 0 : i32
    return %c0_i32, %c0_i32_0 : i32, i32
  }
  func.func @transform_10(%arg0: i32) -> (i32, i32, i32) {
    %c0_i32 = arith.constant 0 : i32
    %c0_i32_0 = arith.constant 0 : i32
    %c0_i32_1 = arith.constant 0 : i32
    return %c0_i32, %arg0, %c0_i32_0 : i32, i32, i32
  }
  func.func @transform_11(%arg0: i32) -> (i32, i32) {
    %c0_i32 = arith.constant 0 : i32
    %c0_i32_0 = arith.constant 0 : i32
    return %arg0, %c0_i32 : i32, i32
  }
}

</mosaic_0001>

<bundles_post_ra>
// kernel: bilstm_crf_forward.3
= control target key start
LH: loop header
LB: loop body
LE: loop exit
PB: predicated region body
PF: predicated region fallthrough
CT: control target
= control target key end

     0   :  { %v34_v2 = vlaneseq  ;;  %v1139_v3 = vmov 1   ;;  %v1140_v7 = vmov 0   ;;  %s1517_s0 = inlined_call_operand.vmem [shape: f32[8,2,8], index: 0, kind: input, shape index: {}]   ;;  %s1518_s1 = inlined_call_operand.vmem [shape: s32[2,9], index: 1, kind: input, shape index: {}]   ;;  %s1519_s2 = inlined_call_operand.vmem [shape: f32[1,8], index: 2, kind: input, shape index: {}]   ;;  %s1520_s3 = inlined_call_operand.vmem [shape: f32[1,8], index: 3, kind: input, shape index: {}]   ;;  %s1521_s4 = inlined_call_operand.vmem [shape: f32[8,8], index: 4, kind: input, shape index: {}]   ;;  %s1522_s5 = inlined_call_operand.hbm [shape: s32[2,8], index: 5, kind: output, shape index: {}]  }
   0x1   :  { %v1073_v0 = vld [vmem:[%s1519_s2] ss:$0 sm:$0xff]  ;;  %1100 = vset.pattern.permute.xlu1 %v1139_v3 }
   0x2   :  { %v23_v1 = vld [vmem:[%s1517_s0] sm:$0x3]  ;;  %v1191_v6 = vshrl.u32 %v34_v2, 7 }
   0x3   :  { %v33_v4 = vld [vmem:[%s1518_s1] sm:$0x3]  ;;  %v30_v5 = vadd.f32 %v1073_v0, %v23_v1 }
   0x4   :  { %vm130_vm0 = vcmp.gt.s32.totalorder %v33_v4, 0 }
   0x5   :  { %v131_v8 = vsel %vm130_vm0, 1, %v1140_v7 }
   0x6   :  { %10 = vsyncpa [#allocation4], 0  ;;  %v1195_v9 = vsub.s32 0, %v1191_v6  ;;  %v1198_v10 = vsub.s32 1, %v1191_v6  ;;  %133 = vperm.xlu1 %1100, %v131_v8   ;;  %v1141_v13 = vmov 2   ;;  %v1213_v21 = vld [vmem:[%s1521_s4] sm:$0xff] }
   0x7   :  { %v1142_v14 = vmov 1966171168   ;;  %v1075_v18 = vld.sshfl [vmem:[%s1517_s0 + $0x2] sm:$0x11 pattern:$0x75316420] }
   0x8   :  { %v37_v11 = vrot.slane %v30_v5, %v1195_v9  ;;  %v44_v12 = vrot.slane %v30_v5, %v1198_v10  ;;  %v60_v15 = vunpack.c.l.s4 %v1142_v14  ;;  %v58_v20 = vcombine.high %v1075_v18, %v1075_v18  ;;  %v143_v48 = vld [vmem:[%s1518_s1] sm:$0x3]  ;;  %s1148_s26 = smov 127   ;;  %s1149_s15 = smov [#allocation3]  }
   0x9   :  { %vm85_vm1 = vcmask 64512   ;;  %vm126_vm3 = vcmask 1041409   ;;  %vm236_vm7 = vcmp.gt.s32.totalorder %v143_v48, 0  ;;  %vm128_vm12 = vcmask 58368   ;;  %s1065_s16 = sshll.u32 %s1149_s15, 4  ;;  %s1066_s16 = int_to_ptr.vmem [resolvable:$true] %s1065_s16 }
   0xa   :  { %39 = vbcast.lane.b32.xlu0 %v37_v11, 256  ;;  %1101 = vset.pattern.permute.xlu1 %v1141_v13  ;;  %v61_v16 = vunpack.c.0.s8 %v60_v15  ;;  %v237_v59 = vsel %vm236_vm7, 1, %v1140_v7  ;;  %v1143_v11 = vmov 3   ;;  %p1120_p1 = scmp.lt.s32.totalorder %s1066_s16, %s1066_s16 }
   0xb   :  { %1102 = vset.pattern.permute.xlu0 %v1143_v11 }
   0xc   :  { %v1204_v17 = vsub.s32 %v61_v16, %v1191_v6 }
   0xe   :  { %46 = vbcast.lane.b32.xlu0 %v44_v12, 256  ;;  %v65_v19 = vrot.slane %v1075_v18, %v1204_v17  ;;  %v72_v23 = vrot.slane %v58_v20, %v1204_v17  ;;  %v1077_v12 = vld.sshfl [vmem:[%s1517_s0 + $0x4] sm:$0x11 pattern:$0x75316420] }
   0xf   :  { %v168_v14 = vcombine.high %v1077_v12, %v1077_v12  ;;  %v175_v16 = vrot.slane %v1077_v12, %v1204_v17 }
  0x10   :  { %v76_v22 = vrot.slane %v65_v19, %v1195_v9  ;;  %v80_v27 = vrot.slane %v72_v23, %v1195_v9 }
  0x11   :  { %v182_v15 = vrot.slane %v168_v14, %v1204_v17  ;;  %v186_v19 = vrot.slane %v175_v16, %v1195_v9 }
  0x13   :  { %v190_v18 = vrot.slane %v182_v15, %v1195_v9 }
  0x7c   :  { %v40_v24 = vpop.permute.xlu0 %39 }
  0x7d   :  { %v48_v25 = vadd.f32 %v40_v24, %v1213_v21 }
  0x7f   :  { %v83_v26 = vadd.f32 %v76_v22, %v48_v25 }
  0x80   :  { %v47_v28 = vpop.permute.xlu0 %46 }
  0x81   :  { %v86_v29 = vsel %vm85_vm1, %v83_v26, -inf  ;;  %v49_v30 = vadd.f32 %v47_v28, %v1213_v21 }
  0x82   :  { %v87_v31 = vrot.slane %v86_v29, 4 }
  0x83   :  { %v84_v32 = vadd.f32 %v80_v27, %v49_v30 }
  0x84   :  { %v88_v33 = vmax.f32 %v86_v29, %v87_v31 }
  0x85   :  { %v93_v34 = vsel %vm85_vm1, %v84_v32, -inf  ;;  %v134_v43 = vpop.permute.xlu1 %133 }
  0x86   :  { %v89_v35 = vrot.slane %v88_v33, 2  ;;  %v94_v36 = vrot.slane %v93_v34, 4  ;;  %vm135_vm4 = vcmp.eq.s32.totalorder %v134_v43, 1 }
  0x88   :  { %v90_v37 = vmax.f32 %v88_v33, %v89_v35  ;;  %v95_v38 = vmax.f32 %v93_v34, %v94_v36 }
  0x8a   :  { %v91_v39 = vrot.slane %v90_v37, 1  ;;  %v96_v40 = vrot.slane %v95_v38, 2 }
  0x8c   :  { %v92_v41 = vmax.f32 %v90_v37, %v91_v39  ;;  %v97_v42 = vmax.f32 %v95_v38, %v96_v40 }
  0x8e   :  { %vm102_vm2 = vcmp.ge.f32.partialorder %v83_v26, %v92_v41  ;;  %v98_v44 = vrot.slane %v97_v42, 1 }
  0x8f   :  { %v104_v45 = vsel %vm102_vm2, %v1191_v6, 8 }
  0x90   :  { %v106_v46 = vsel %vm85_vm1, %v104_v45, 2147483647  ;;  %v99_v47 = vmax.f32 %v97_v42, %v98_v44 }
  0x91   :  { %v107_v49 = vrot.slane %v106_v46, 4 }
  0x92   :  { %vm103_vm5 = vcmp.ge.f32.partialorder %v84_v32, %v99_v47  ;;  %v138_v50 = vsel %vm126_vm3, %v99_v47, %v92_v41  ;;  %v249_v41 = vld [vmem:[%s1518_s1] sm:$0x3] }
  0x93   :  { %vm108_vm6 = vcmp.lt.s32.totalorder %v106_v46, %v107_v49  ;;  %v105_v51 = vsel %vm103_vm5, %v1191_v6, 8  ;;  %v1229_v52 = vsel %vm135_vm4, %v138_v50, %v30_v5  ;;  %vm342_vm2 = vcmp.gt.s32.totalorder %v249_v41, 0 }
  0x94   :  { %v109_v53 = vsel %vm108_vm6, %v106_v46, %v107_v49  ;;  %v116_v54 = vsel %vm85_vm1, %v105_v51, 2147483647  ;;  %v154_v55 = vrot.slane %v1229_v52, %v1198_v10  ;;  %v147_v56 = vrot.slane %v1229_v52, %v1195_v9 }
  0x95   :  { %v110_v57 = vrot.slane %v109_v53, 2  ;;  %v117_v58 = vrot.slane %v116_v54, 4 }
  0x96   :  { %156 = vbcast.lane.b32.xlu0 %v154_v55, 256  ;;  %149 = vbcast.lane.b32.xlu1 %v147_v56, 256 }
  0x97   :  { %vm111_vm8 = vcmp.lt.s32.totalorder %v109_v53, %v110_v57  ;;  %vm118_vm9 = vcmp.lt.s32.totalorder %v116_v54, %v117_v58 }
  0x98   :  { %v112_v60 = vsel %vm111_vm8, %v109_v53, %v110_v57  ;;  %v119_v61 = vsel %vm118_vm9, %v116_v54, %v117_v58 }
  0x99   :  { %v113_v62 = vrot.slane %v112_v60, 1  ;;  %v120_v63 = vrot.slane %v119_v61, 2 }
  0x9a   :  { %239 = vperm.xlu1 %1101, %v237_v59  }
  0x9b   :  { %vm121_vm10 = vcmp.lt.s32.totalorder %v119_v61, %v120_v63  ;;  %vm114_vm11 = vcmp.lt.s32.totalorder %v112_v60, %v113_v62 }
  0x9c   :  { %v122_v0 = vsel %vm121_vm10, %v119_v61, %v120_v63  ;;  %v115_v4 = vsel %vm114_vm11, %v112_v60, %v113_v62 }
  0x9d   :  { %v123_v1 = vrot.slane %v122_v0, 1 }
  0x9f   :  { %vm124_vm13 = vcmp.lt.s32.totalorder %v122_v0, %v123_v1 }
  0xa0   :  { %v125_v5 = vsel %vm124_vm13, %v122_v0, %v123_v1  ;;  %v355_v1 = vld [vmem:[%s1518_s1] sm:$0x3] }
  0xa1   :  { %v127_v8 = vsel %vm126_vm3, %v125_v5, %v115_v4  ;;  %vm448_vm10 = vcmp.gt.s32.totalorder %v355_v1, 0  ;;  %v1144_v4 = vmov 4   ;;  %v1081_v1 = vld.sshfl [vmem:[%s1517_s0 + $0x8] sm:$0x11 pattern:$0x75316420] }
  0xa2   :  { %129 = vst.msk [vmem:[#allocation2] sm:$0x3] %vm128_vm12, %v127_v8  ;;  %v449_v5 = vsel %vm448_vm10, 1, %v1140_v7 }
  0xa3   :  { %v1079_v8 = vld.sshfl [vmem:[%s1517_s0 + $0x6] sm:$0x11 pattern:$0x75316420] }
  0xa4   :  { %v274_v12 = vcombine.high %v1079_v8, %v1079_v8  ;;  %v281_v15 = vrot.slane %v1079_v8, %v1204_v17  ;;  %v380_v8 = vcombine.high %v1081_v1, %v1081_v1 }
  0xa6   :  { %v288_v14 = vrot.slane %v274_v12, %v1204_v17 }
  0xa8   :  { %v296_v16 = vrot.slane %v288_v14, %v1195_v9  ;;  %v394_v14 = vrot.slane %v380_v8, %v1204_v17 }
 0x108   :  { %v157_v20 = vpop.permute.xlu0 %156  ;;  %v150_v22 = vpop.permute.xlu1 %149 }
 0x109   :  { %v159_v23 = vadd.f32 %v157_v20, %v1213_v21  ;;  %v158_v24 = vadd.f32 %v150_v22, %v1213_v21 }
 0x10b   :  { %v194_v25 = vadd.f32 %v190_v18, %v159_v23  ;;  %v193_v26 = vadd.f32 %v186_v19, %v158_v24  ;;  %v292_v18 = vrot.slane %v281_v15, %v1195_v9 }
 0x10d   :  { %v202_v27 = vsel %vm85_vm1, %v194_v25, -inf  ;;  %v195_v28 = vsel %vm85_vm1, %v193_v26, -inf }
 0x10e   :  { %v203_v29 = vrot.slane %v202_v27, 4  ;;  %v196_v30 = vrot.slane %v195_v28, 4 }
 0x110   :  { %v204_v31 = vmax.f32 %v202_v27, %v203_v29  ;;  %v197_v32 = vmax.f32 %v195_v28, %v196_v30 }
 0x112   :  { %v205_v33 = vrot.slane %v204_v31, 2  ;;  %v198_v34 = vrot.slane %v197_v32, 2 }
 0x114   :  { %v206_v35 = vmax.f32 %v204_v31, %v205_v33  ;;  %v199_v36 = vmax.f32 %v197_v32, %v198_v34 }
 0x116   :  { %v207_v37 = vrot.slane %v206_v35, 1  ;;  %v200_v38 = vrot.slane %v199_v36, 1 }
 0x118   :  { %v208_v39 = vmax.f32 %v206_v35, %v207_v37  ;;  %v201_v40 = vmax.f32 %v199_v36, %v200_v38 }
 0x119   :  { %v240_v42 = vpop.permute.xlu1 %239 }
 0x11a   :  { %vm210_vm14 = vcmp.ge.f32.partialorder %v194_v25, %v208_v39  ;;  %vm209_vm15 = vcmp.ge.f32.partialorder %v193_v26, %v201_v40  ;;  %v244_v43 = vsel %vm126_vm3, %v208_v39, %v201_v40  ;;  %vm241_vm0 = vcmp.eq.s32.totalorder %v240_v42, 1 }
 0x11b   :  { %v212_v44 = vsel %vm210_vm14, %v1191_v6, 8  ;;  %v211_v45 = vsel %vm209_vm15, %v1191_v6, 8  ;;  %v1258_v46 = vsel %vm241_vm0, %v244_v43, %v1229_v52  ;;  %v343_v52 = vsel %vm342_vm2, 1, %v1140_v7 }
 0x11c   :  { %v223_v47 = vsel %vm85_vm1, %v212_v44, 2147483647  ;;  %v213_v48 = vsel %vm85_vm1, %v211_v45, 2147483647  ;;  %v260_v49 = vrot.slane %v1258_v46, %v1198_v10  ;;  %v253_v50 = vrot.slane %v1258_v46, %v1195_v9 }
 0x11d   :  { %v224_v51 = vrot.slane %v223_v47, 4  ;;  %v214_v53 = vrot.slane %v213_v48, 4 }
 0x11e   :  { %262 = vbcast.lane.b32.xlu1 %v260_v49, 256  ;;  %255 = vbcast.lane.b32.xlu0 %v253_v50, 256 }
 0x11f   :  { %vm225_vm4 = vcmp.lt.s32.totalorder %v223_v47, %v224_v51  ;;  %vm215_vm5 = vcmp.lt.s32.totalorder %v213_v48, %v214_v53 }
 0x120   :  { %v226_v54 = vsel %vm225_vm4, %v223_v47, %v224_v51  ;;  %v216_v55 = vsel %vm215_vm5, %v213_v48, %v214_v53 }
 0x121   :  { %v227_v56 = vrot.slane %v226_v54, 2  ;;  %v217_v57 = vrot.slane %v216_v55, 2 }
 0x122   :  { %345 = vperm.xlu0 %1102, %v343_v52  }
 0x123   :  { %vm228_vm6 = vcmp.lt.s32.totalorder %v226_v54, %v227_v56  ;;  %vm218_vm7 = vcmp.lt.s32.totalorder %v216_v55, %v217_v57 }
 0x124   :  { %v229_v58 = vsel %vm228_vm6, %v226_v54, %v227_v56  ;;  %v219_v59 = vsel %vm218_vm7, %v216_v55, %v217_v57 }
 0x125   :  { %v230_v60 = vrot.slane %v229_v58, 1  ;;  %v220_v61 = vrot.slane %v219_v59, 1 }
 0x126   :  { %1103 = vset.pattern.permute.xlu0 %v1144_v4 }
 0x127   :  { %vm231_vm8 = vcmp.lt.s32.totalorder %v229_v58, %v230_v60  ;;  %vm221_vm9 = vcmp.lt.s32.totalorder %v219_v59, %v220_v61  ;;  %451 = vperm.xlu0 %1103, %v449_v5   ;;  %v387_v5 = vrot.slane %v1081_v1, %v1204_v17 }
 0x128   :  { %v232_v62 = vsel %vm231_vm8, %v229_v58, %v230_v60  ;;  %v222_v63 = vsel %vm221_vm9, %v219_v59, %v220_v61 }
 0x129   :  { %v233_v0 = vsel %vm126_vm3, %v232_v62, %v222_v63  ;;  %v461_v62 = vld [vmem:[%s1518_s1] sm:$0x3]  ;;  %v1145_v63 = vmov 5   ;;  %v398_v12 = vrot.slane %v387_v5, %v1195_v9 }
 0x12a   :  { %235 = vst.msk [vmem:[#allocation2 + $0x2] sm:$0x3] %vm128_vm12, %v233_v0  ;;  %vm554_vm7 = vcmp.gt.s32.totalorder %v461_v62, 0 }
 0x12b   :  { %1104 = vset.pattern.permute.xlu0 %v1145_v63  ;;  %v555_v0 = vsel %vm554_vm7, 1, %v1140_v7 }
 0x12c   :  { %557 = vperm.xlu0 %1104, %v555_v0   ;;  %v1083_v0 = vld.sshfl [vmem:[%s1517_s0 + $0xa] sm:$0x11 pattern:$0x75316420] }
 0x12d   :  { %v493_v1 = vrot.slane %v1083_v0, %v1204_v17  ;;  %v486_v5 = vcombine.high %v1083_v0, %v1083_v0  ;;  %v1085_v0 = vld.sshfl [vmem:[%s1517_s0 + $0xc] sm:$0x11 pattern:$0x75316420] }
 0x12f   :  { %v504_v8 = vrot.slane %v493_v1, %v1195_v9  ;;  %v599_v1 = vrot.slane %v1085_v0, %v1204_v17 }
 0x190   :  { %v263_v19 = vpop.permute.xlu1 %262  ;;  %v256_v20 = vpop.permute.xlu0 %255 }
 0x191   :  { %v265_v22 = vadd.f32 %v263_v19, %v1213_v21  ;;  %v264_v23 = vadd.f32 %v256_v20, %v1213_v21  ;;  %v402_v19 = vrot.slane %v394_v14, %v1195_v9 }
 0x193   :  { %v300_v24 = vadd.f32 %v296_v16, %v265_v22  ;;  %v299_v25 = vadd.f32 %v292_v18, %v264_v23 }
 0x195   :  { %v308_v26 = vsel %vm85_vm1, %v300_v24, -inf  ;;  %v301_v27 = vsel %vm85_vm1, %v299_v25, -inf }
 0x196   :  { %v309_v28 = vrot.slane %v308_v26, 4  ;;  %v302_v29 = vrot.slane %v301_v27, 4 }
 0x198   :  { %v310_v30 = vmax.f32 %v308_v26, %v309_v28  ;;  %v303_v31 = vmax.f32 %v301_v27, %v302_v29 }
 0x19a   :  { %v311_v32 = vrot.slane %v310_v30, 2  ;;  %v304_v33 = vrot.slane %v303_v31, 2 }
 0x19c   :  { %v312_v34 = vmax.f32 %v310_v30, %v311_v32  ;;  %v305_v35 = vmax.f32 %v303_v31, %v304_v33 }
 0x19e   :  { %v313_v36 = vrot.slane %v312_v34, 1  ;;  %v306_v37 = vrot.slane %v305_v35, 1 }
 0x1a0   :  { %v314_v38 = vmax.f32 %v312_v34, %v313_v36  ;;  %v307_v39 = vmax.f32 %v305_v35, %v306_v37 }
 0x1a1   :  { %v346_v40 = vpop.permute.xlu0 %345 }
 0x1a2   :  { %vm316_vm11 = vcmp.ge.f32.partialorder %v300_v24, %v314_v38  ;;  %vm315_vm13 = vcmp.ge.f32.partialorder %v299_v25, %v307_v39  ;;  %v350_v41 = vsel %vm126_vm3, %v314_v38, %v307_v39  ;;  %vm347_vm14 = vcmp.eq.s32.totalorder %v346_v40, 1 }
 0x1a3   :  { %v318_v42 = vsel %vm316_vm11, %v1191_v6, 8  ;;  %v317_v43 = vsel %vm315_vm13, %v1191_v6, 8  ;;  %v1289_v44 = vsel %vm347_vm14, %v350_v41, %v1258_v46 }
 0x1a4   :  { %v329_v45 = vsel %vm85_vm1, %v318_v42, 2147483647  ;;  %v319_v47 = vsel %vm85_vm1, %v317_v43, 2147483647  ;;  %v359_v48 = vrot.slane %v1289_v44, %v1195_v9  ;;  %v366_v52 = vrot.slane %v1289_v44, %v1198_v10 }
 0x1a5   :  { %v330_v49 = vrot.slane %v329_v45, 4  ;;  %v320_v50 = vrot.slane %v319_v47, 4 }
 0x1a6   :  { %361 = vbcast.lane.b32.xlu1 %v359_v48, 256  ;;  %v452_v36 = vpop.permute.xlu0 %451 }
 0x1a7   :  { %vm331_vm15 = vcmp.lt.s32.totalorder %v329_v45, %v330_v49  ;;  %vm321_vm0 = vcmp.lt.s32.totalorder %v319_v47, %v320_v50  ;;  %vm453_vm9 = vcmp.eq.s32.totalorder %v452_v36, 1 }
 0x1a8   :  { %v332_v51 = vsel %vm331_vm15, %v329_v45, %v330_v49  ;;  %v322_v53 = vsel %vm321_vm0, %v319_v47, %v320_v50 }
 0x1a9   :  { %v333_v54 = vrot.slane %v332_v51, 2  ;;  %v323_v46 = vrot.slane %v322_v53, 2 }
 0x1aa   :  { %368 = vbcast.lane.b32.xlu1 %v366_v52, 256 }
 0x1ab   :  { %vm334_vm2 = vcmp.lt.s32.totalorder %v332_v51, %v333_v54  ;;  %vm324_vm4 = vcmp.lt.s32.totalorder %v322_v53, %v323_v46 }
 0x1ac   :  { %v335_v55 = vsel %vm334_vm2, %v332_v51, %v333_v54  ;;  %v325_v56 = vsel %vm324_vm4, %v322_v53, %v323_v46 }
 0x1ad   :  { %v336_v57 = vrot.slane %v335_v55, 1  ;;  %v326_v58 = vrot.slane %v325_v56, 1 }
 0x1af   :  { %vm337_vm5 = vcmp.lt.s32.totalorder %v335_v55, %v336_v57  ;;  %vm327_vm6 = vcmp.lt.s32.totalorder %v325_v56, %v326_v58 }
 0x1b0   :  { %v338_v59 = vsel %vm337_vm5, %v335_v55, %v336_v57  ;;  %v328_v60 = vsel %vm327_vm6, %v325_v56, %v326_v58 }
 0x1b1   :  { %v339_v61 = vsel %vm126_vm3, %v338_v59, %v328_v60  ;;  %v567_v60 = vld [vmem:[%s1518_s1] sm:$0x3] }
 0x1b2   :  { %341 = vst.msk [vmem:[#allocation2 + $0x4] sm:$0x3] %vm128_vm12, %v339_v61  ;;  %vm660_vm4 = vcmp.gt.s32.totalorder %v567_v60, 0  ;;  %v1146_v61 = vmov 6   ;;  %v1147_v60 = vmov 7  }
 0x1b3   :  { %1105 = vset.pattern.permute.xlu0 %v1146_v61  ;;  %v661_v62 = vsel %vm660_vm4, 1, %v1140_v7  ;;  %1107 = vset.pattern.permute.xlu1 %v1147_v60 }
 0x1b4   :  { %663 = vperm.xlu0 %1105, %v661_v62  }
 0x1b8   :  { %1106 = vset.pattern.permute.xlu0 %v1147_v60 }
 0x218   :  { %v362_v15 = vpop.permute.xlu1 %361 }
 0x219   :  { %v370_v16 = vadd.f32 %v362_v15, %v1213_v21 }
 0x21b   :  { %v405_v18 = vadd.f32 %v398_v12, %v370_v16  ;;  %v500_v12 = vrot.slane %v486_v5, %v1204_v17  ;;  %v592_v5 = vcombine.high %v1085_v0, %v1085_v0 }
 0x21c   :  { %v369_v20 = vpop.permute.xlu1 %368 }
 0x21d   :  { %v407_v22 = vsel %vm85_vm1, %v405_v18, -inf  ;;  %v371_v23 = vadd.f32 %v369_v20, %v1213_v21 }
 0x21e   :  { %v408_v24 = vrot.slane %v407_v22, 4 }
 0x21f   :  { %v406_v25 = vadd.f32 %v402_v19, %v371_v23 }
 0x220   :  { %v409_v26 = vmax.f32 %v407_v22, %v408_v24 }
 0x221   :  { %v414_v27 = vsel %vm85_vm1, %v406_v25, -inf }
 0x222   :  { %v410_v28 = vrot.slane %v409_v26, 2  ;;  %v415_v29 = vrot.slane %v414_v27, 4 }
 0x224   :  { %v411_v30 = vmax.f32 %v409_v26, %v410_v28  ;;  %v416_v31 = vmax.f32 %v414_v27, %v415_v29 }
 0x226   :  { %v412_v32 = vrot.slane %v411_v30, 1  ;;  %v417_v33 = vrot.slane %v416_v31, 2 }
 0x228   :  { %v413_v34 = vmax.f32 %v411_v30, %v412_v32  ;;  %v418_v35 = vmax.f32 %v416_v31, %v417_v33 }
 0x22a   :  { %vm421_vm8 = vcmp.ge.f32.partialorder %v405_v18, %v413_v34  ;;  %v419_v37 = vrot.slane %v418_v35, 1  ;;  %v508_v18 = vrot.slane %v500_v12, %v1195_v9  ;;  %v606_v12 = vrot.slane %v592_v5, %v1204_v17 }
 0x22b   :  { %v423_v38 = vsel %vm421_vm8, %v1191_v6, 8 }
 0x22c   :  { %v425_v39 = vsel %vm85_vm1, %v423_v38, 2147483647  ;;  %v420_v40 = vmax.f32 %v418_v35, %v419_v37  ;;  %v558_v35 = vpop.permute.xlu0 %557 }
 0x22d   :  { %v426_v41 = vrot.slane %v425_v39, 4  ;;  %vm559_vm6 = vcmp.eq.s32.totalorder %v558_v35, 1 }
 0x22e   :  { %vm422_vm10 = vcmp.ge.f32.partialorder %v406_v25, %v420_v40  ;;  %v456_v42 = vsel %vm126_vm3, %v420_v40, %v413_v34 }
 0x22f   :  { %vm427_vm11 = vcmp.lt.s32.totalorder %v425_v39, %v426_v41  ;;  %v424_v43 = vsel %vm422_vm10, %v1191_v6, 8  ;;  %v1320_v45 = vsel %vm453_vm9, %v456_v42, %v1289_v44 }
 0x230   :  { %v428_v47 = vsel %vm427_vm11, %v425_v39, %v426_v41  ;;  %v435_v48 = vsel %vm85_vm1, %v424_v43, 2147483647  ;;  %v465_v49 = vrot.slane %v1320_v45, %v1195_v9  ;;  %v472_v54 = vrot.slane %v1320_v45, %v1198_v10 }
 0x231   :  { %v429_v50 = vrot.slane %v428_v47, 2  ;;  %v436_v51 = vrot.slane %v435_v48, 4 }
 0x232   :  { %467 = vbcast.lane.b32.xlu1 %v465_v49, 256 }
 0x233   :  { %vm430_vm13 = vcmp.lt.s32.totalorder %v428_v47, %v429_v50  ;;  %vm437_vm14 = vcmp.lt.s32.totalorder %v435_v48, %v436_v51 }
 0x234   :  { %v431_v53 = vsel %vm430_vm13, %v428_v47, %v429_v50  ;;  %v438_v52 = vsel %vm437_vm14, %v435_v48, %v436_v51 }
 0x235   :  { %v432_v46 = vrot.slane %v431_v53, 1  ;;  %v439_v55 = vrot.slane %v438_v52, 2 }
 0x236   :  { %474 = vbcast.lane.b32.xlu1 %v472_v54, 256 }
 0x237   :  { %vm440_vm15 = vcmp.lt.s32.totalorder %v438_v52, %v439_v55  ;;  %vm433_vm0 = vcmp.lt.s32.totalorder %v431_v53, %v432_v46 }
 0x238   :  { %v441_v44 = vsel %vm440_vm15, %v438_v52, %v439_v55  ;;  %v434_v57 = vsel %vm433_vm0, %v431_v53, %v432_v46 }
 0x239   :  { %v442_v56 = vrot.slane %v441_v44, 1 }
 0x23b   :  { %vm443_vm2 = vcmp.lt.s32.totalorder %v441_v44, %v442_v56 }
 0x23c   :  { %v444_v58 = vsel %vm443_vm2, %v441_v44, %v442_v56 }
 0x23d   :  { %v445_v59 = vsel %vm126_vm3, %v444_v58, %v434_v57 }
 0x23e   :  { %447 = vst.msk [vmem:[#allocation2 + $0x6] sm:$0x3] %vm128_vm12, %v445_v59  ;;  %v673_v59 = vld [vmem:[%s1518_s1] sm:$0x3] }
 0x23f   :  { %vm766_vm15 = vcmp.gt.s32.totalorder %v673_v59, 0 }
 0x240   :  { %v767_v62 = vsel %vm766_vm15, 1, %v1140_v7 }
 0x241   :  { %769 = vperm.xlu0 %1106, %v767_v62  }
 0x245   :  { %1109 = vset.pattern.permute.xlu0 %v1145_v63 }
 0x2a4   :  { %v468_v14 = vpop.permute.xlu1 %467 }
 0x2a5   :  { %v476_v15 = vadd.f32 %v468_v14, %v1213_v21 }
 0x2a7   :  { %v511_v16 = vadd.f32 %v504_v8, %v476_v15  ;;  %v610_v8 = vrot.slane %v599_v1, %v1195_v9 }
 0x2a8   :  { %v475_v19 = vpop.permute.xlu1 %474 }
 0x2a9   :  { %v513_v20 = vsel %vm85_vm1, %v511_v16, -inf  ;;  %v477_v22 = vadd.f32 %v475_v19, %v1213_v21 }
 0x2aa   :  { %v514_v23 = vrot.slane %v513_v20, 4 }
 0x2ab   :  { %v512_v24 = vadd.f32 %v508_v18, %v477_v22  ;;  %v614_v18 = vrot.slane %v606_v12, %v1195_v9 }
 0x2ac   :  { %v515_v25 = vmax.f32 %v513_v20, %v514_v23 }
 0x2ad   :  { %v520_v26 = vsel %vm85_vm1, %v512_v24, -inf }
 0x2ae   :  { %v516_v27 = vrot.slane %v515_v25, 2  ;;  %v521_v28 = vrot.slane %v520_v26, 4 }
 0x2b0   :  { %v517_v29 = vmax.f32 %v515_v25, %v516_v27  ;;  %v522_v30 = vmax.f32 %v520_v26, %v521_v28 }
 0x2b2   :  { %v518_v31 = vrot.slane %v517_v29, 1  ;;  %v523_v32 = vrot.slane %v522_v30, 2 }
 0x2b4   :  { %v519_v33 = vmax.f32 %v517_v29, %v518_v31  ;;  %v524_v34 = vmax.f32 %v522_v30, %v523_v32 }
 0x2b6   :  { %vm527_vm5 = vcmp.ge.f32.partialorder %v511_v16, %v519_v33  ;;  %v525_v36 = vrot.slane %v524_v34, 1 }
 0x2b7   :  { %v529_v37 = vsel %vm527_vm5, %v1191_v6, 8 }
 0x2b8   :  { %v531_v38 = vsel %vm85_vm1, %v529_v37, 2147483647  ;;  %v526_v39 = vmax.f32 %v524_v34, %v525_v36  ;;  %v664_v34 = vpop.permute.xlu0 %663 }
 0x2b9   :  { %v532_v40 = vrot.slane %v531_v38, 4  ;;  %vm665_vm2 = vcmp.eq.s32.totalorder %v664_v34, 1 }
 0x2ba   :  { %vm528_vm7 = vcmp.ge.f32.partialorder %v512_v24, %v526_v39  ;;  %v562_v41 = vsel %vm126_vm3, %v526_v39, %v519_v33 }
 0x2bb   :  { %vm533_vm8 = vcmp.lt.s32.totalorder %v531_v38, %v532_v40  ;;  %v530_v42 = vsel %vm528_vm7, %v1191_v6, 8  ;;  %v1350_v43 = vsel %vm559_vm6, %v562_v41, %v1320_v45 }
 0x2bc   :  { %v534_v47 = vsel %vm533_vm8, %v531_v38, %v532_v40  ;;  %v541_v48 = vsel %vm85_vm1, %v530_v42, 2147483647  ;;  %v571_v49 = vrot.slane %v1350_v43, %v1195_v9  ;;  %v578_v54 = vrot.slane %v1350_v43, %v1198_v10 }
 0x2bd   :  { %v535_v50 = vrot.slane %v534_v47, 2  ;;  %v542_v51 = vrot.slane %v541_v48, 4 }
 0x2be   :  { %573 = vbcast.lane.b32.xlu1 %v571_v49, 256 }
 0x2bf   :  { %vm536_vm9 = vcmp.lt.s32.totalorder %v534_v47, %v535_v50  ;;  %vm543_vm10 = vcmp.lt.s32.totalorder %v541_v48, %v542_v51 }
 0x2c0   :  { %v537_v53 = vsel %vm536_vm9, %v534_v47, %v535_v50  ;;  %v544_v52 = vsel %vm543_vm10, %v541_v48, %v542_v51 }
 0x2c1   :  { %v538_v46 = vrot.slane %v537_v53, 1  ;;  %v545_v55 = vrot.slane %v544_v52, 2 }
 0x2c2   :  { %580 = vbcast.lane.b32.xlu1 %v578_v54, 256 }
 0x2c3   :  { %vm546_vm11 = vcmp.lt.s32.totalorder %v544_v52, %v545_v55  ;;  %vm539_vm13 = vcmp.lt.s32.totalorder %v537_v53, %v538_v46 }
 0x2c4   :  { %v547_v45 = vsel %vm546_vm11, %v544_v52, %v545_v55  ;;  %v540_v56 = vsel %vm539_vm13, %v537_v53, %v538_v46 }
 0x2c5   :  { %v548_v44 = vrot.slane %v547_v45, 1 }
 0x2c7   :  { %vm549_vm14 = vcmp.lt.s32.totalorder %v547_v45, %v548_v44 }
 0x2c8   :  { %v550_v57 = vsel %vm549_vm14, %v547_v45, %v548_v44 }
 0x2c9   :  { %v551_v58 = vsel %vm126_vm3, %v550_v57, %v540_v56 }
 0x2ca   :  { %553 = vst.msk [vmem:[#allocation2 + $0x8] sm:$0x3] %vm128_vm12, %v551_v58  ;;  %v1087_v58 = vld.sshfl [vmem:[%s1517_s0 + $0xe] sm:$0x11 pattern:$0x75316420] }
 0x2cb   :  { %v698_v59 = vcombine.high %v1087_v58, %v1087_v58 }
 0x2cd   :  { %v712_v62 = vrot.slane %v698_v59, %v1204_v17 }
 0x330   :  { %v574_v14 = vpop.permute.xlu1 %573 }
 0x331   :  { %v582_v15 = vadd.f32 %v574_v14, %v1213_v21 }
 0x333   :  { %v617_v16 = vadd.f32 %v610_v8, %v582_v15  ;;  %v720_v8 = vrot.slane %v712_v62, %v1195_v9 }
 0x334   :  { %v581_v19 = vpop.permute.xlu1 %580 }
 0x335   :  { %v619_v63 = vsel %vm85_vm1, %v617_v16, -inf  ;;  %v583_v20 = vadd.f32 %v581_v19, %v1213_v21 }
 0x336   :  { %v620_v22 = vrot.slane %v619_v63, 4 }
 0x337   :  { %v618_v23 = vadd.f32 %v614_v18, %v583_v20 }
 0x338   :  { %v621_v24 = vmax.f32 %v619_v63, %v620_v22 }
 0x339   :  { %v626_v25 = vsel %vm85_vm1, %v618_v23, -inf }
 0x33a   :  { %v622_v26 = vrot.slane %v621_v24, 2  ;;  %v627_v27 = vrot.slane %v626_v25, 4 }
 0x33c   :  { %v623_v28 = vmax.f32 %v621_v24, %v622_v26  ;;  %v628_v29 = vmax.f32 %v626_v25, %v627_v27 }
 0x33e   :  { %v624_v30 = vrot.slane %v623_v28, 1  ;;  %v629_v31 = vrot.slane %v628_v29, 2 }
 0x340   :  { %v625_v32 = vmax.f32 %v623_v28, %v624_v30  ;;  %v630_v33 = vmax.f32 %v628_v29, %v629_v31  ;;  %v770_v28 = vpop.permute.xlu0 %769 }
 0x341   :  { %vm771_vm13 = vcmp.eq.s32.totalorder %v770_v28, 1 }
 0x342   :  { %vm633_vm0 = vcmp.ge.f32.partialorder %v617_v16, %v625_v32  ;;  %v631_v35 = vrot.slane %v630_v33, 1 }
 0x343   :  { %v635_v36 = vsel %vm633_vm0, %v1191_v6, 8 }
 0x344   :  { %v637_v37 = vsel %vm85_vm1, %v635_v36, 2147483647  ;;  %v632_v38 = vmax.f32 %v630_v33, %v631_v35 }
 0x345   :  { %v638_v39 = vrot.slane %v637_v37, 4 }
 0x346   :  { %vm634_vm4 = vcmp.ge.f32.partialorder %v618_v23, %v632_v38  ;;  %v668_v40 = vsel %vm126_vm3, %v632_v38, %v625_v32  ;;  %v1088_v32 = vld [vmem:[%s1520_s3] ss:$0 sm:$0xff] }
 0x347   :  { %vm639_vm5 = vcmp.lt.s32.totalorder %v637_v37, %v638_v39  ;;  %v636_v41 = vsel %vm634_vm4, %v1191_v6, 8  ;;  %v670_v42 = vsel %vm665_vm2, %v668_v40, %v1350_v43 }
 0x348   :  { %v640_v47 = vsel %vm639_vm5, %v637_v37, %v638_v39  ;;  %v647_v48 = vsel %vm85_vm1, %v636_v41, 2147483647  ;;  %v677_v49 = vrot.slane %v670_v42, %v1195_v9  ;;  %v684_v54 = vrot.slane %v670_v42, %v1198_v10 }
 0x349   :  { %v641_v50 = vrot.slane %v640_v47, 2  ;;  %v648_v51 = vrot.slane %v647_v48, 4  ;;  %v705_v10 = vrot.slane %v1087_v58, %v1204_v17 }
 0x34a   :  { %679 = vbcast.lane.b32.xlu1 %v677_v49, 256 }
 0x34b   :  { %vm642_vm6 = vcmp.lt.s32.totalorder %v640_v47, %v641_v50  ;;  %vm649_vm7 = vcmp.lt.s32.totalorder %v647_v48, %v648_v51  ;;  %v716_v60 = vrot.slane %v705_v10, %v1195_v9 }
 0x34c   :  { %v643_v53 = vsel %vm642_vm6, %v640_v47, %v641_v50  ;;  %v650_v52 = vsel %vm649_vm7, %v647_v48, %v648_v51 }
 0x34d   :  { %v644_v46 = vrot.slane %v643_v53, 1  ;;  %v651_v55 = vrot.slane %v650_v52, 2 }
 0x34e   :  { %686 = vbcast.lane.b32.xlu1 %v684_v54, 256  ;;  %v1408_v54 = vand.u32 127, %v34_v2 }
 0x34f   :  { %vm652_vm8 = vcmp.lt.s32.totalorder %v650_v52, %v651_v55  ;;  %vm645_vm9 = vcmp.lt.s32.totalorder %v643_v53, %v644_v46 }
 0x350   :  { %v653_v45 = vsel %vm652_vm8, %v650_v52, %v651_v55  ;;  %v646_v44 = vsel %vm645_vm9, %v643_v53, %v644_v46 }
 0x351   :  { %v654_v43 = vrot.slane %v653_v45, 1 }
 0x353   :  { %vm655_vm10 = vcmp.lt.s32.totalorder %v653_v45, %v654_v43 }
 0x354   :  { %v656_v56 = vsel %vm655_vm10, %v653_v45, %v654_v43 }
 0x355   :  { %v657_v57 = vsel %vm126_vm3, %v656_v56, %v646_v44 }
 0x356   :  { %659 = vst.msk [vmem:[#allocation2 + $0xa] sm:$0x3] %vm128_vm12, %v657_v57 }
 0x3bc   :  { %v680_v0 = vpop.permute.xlu1 %679 }
 0x3bd   :  { %v688_v1 = vadd.f32 %v680_v0, %v1213_v21 }
 0x3bf   :  { %v723_v5 = vadd.f32 %v716_v60, %v688_v1  ;;  %v809_v1 = vld [vmem:[#allocation2 + $0xe] sm:$0x3] }
 0x3c0   :  { %v687_v12 = vpop.permute.xlu1 %686 }
 0x3c1   :  { %v725_v14 = vsel %vm85_vm1, %v723_v5, -inf  ;;  %v689_v15 = vadd.f32 %v687_v12, %v1213_v21 }
 0x3c2   :  { %v726_v16 = vrot.slane %v725_v14, 4 }
 0x3c3   :  { %v724_v18 = vadd.f32 %v720_v8, %v689_v15 }
 0x3c4   :  { %v727_v19 = vmax.f32 %v725_v14, %v726_v16 }
 0x3c5   :  { %v732_v63 = vsel %vm85_vm1, %v724_v18, -inf }
 0x3c6   :  { %v728_v20 = vrot.slane %v727_v19, 2  ;;  %v733_v22 = vrot.slane %v732_v63, 4 }
 0x3c8   :  { %v729_v23 = vmax.f32 %v727_v19, %v728_v20  ;;  %v734_v17 = vmax.f32 %v732_v63, %v733_v22 }
 0x3ca   :  { %v730_v24 = vrot.slane %v729_v23, 1  ;;  %v735_v25 = vrot.slane %v734_v17, 2 }
 0x3cc   :  { %v731_v26 = vmax.f32 %v729_v23, %v730_v24  ;;  %v736_v27 = vmax.f32 %v734_v17, %v735_v25 }
 0x3ce   :  { %vm739_vm11 = vcmp.ge.f32.partialorder %v723_v5, %v731_v26  ;;  %v737_v9 = vrot.slane %v736_v27, 1 }
 0x3cf   :  { %v741_v29 = vsel %vm739_vm11, %v1191_v6, 8  ;;  %vm833_vm11 = vcmask 58424  }
 0x3d0   :  { %v743_v21 = vsel %vm85_vm1, %v741_v29, 2147483647  ;;  %v738_v30 = vmax.f32 %v736_v27, %v737_v9 }
 0x3d1   :  { %v744_v31 = vrot.slane %v743_v21, 4 }
 0x3d2   :  { %vm740_vm14 = vcmp.ge.f32.partialorder %v724_v18, %v738_v30  ;;  %v774_v33 = vsel %vm126_vm3, %v738_v30, %v731_v26  ;;  %v807_v18 = vld [vmem:[%s1518_s1] sm:$0x3] }
 0x3d3   :  { %vm745_vm15 = vcmp.lt.s32.totalorder %v743_v21, %v744_v31  ;;  %v742_v34 = vsel %vm740_vm14, %v1191_v6, 8  ;;  %v776_v35 = vsel %vm771_vm13, %v774_v33, %v670_v42  ;;  %vm825_vm8 = vcmp.gt.s32.totalorder %v807_v18, 0  ;;  %v899_v18 = vld [vmem:[%s1518_s1] sm:$0x3] }
 0x3d4   :  { %v746_v36 = vsel %vm745_vm15, %v743_v21, %v744_v31  ;;  %v753_v37 = vsel %vm85_vm1, %v742_v34, 2147483647  ;;  %v784_v38 = vadd.f32 %v1088_v32, %v776_v35  ;;  %v826_v19 = vsel %vm825_vm8, 1, %v1140_v7  ;;  %v835_v34 = vld [vmem:[%s1518_s1] sm:$0x3] }
 0x3d5   :  { %v747_v39 = vrot.slane %v746_v36, 2  ;;  %v754_v40 = vrot.slane %v753_v37, 4  ;;  %vm855_vm14 = vcmp.gt.s32.totalorder %v835_v34, 0  ;;  %v931_v34 = vld [vmem:[%s1518_s1] sm:$0x3] }
 0x3d6   :  { %v787_v41 = vsel %vm128_vm12, %v784_v38, -inf }
 0x3d7   :  { %vm748_vm0 = vcmp.lt.s32.totalorder %v746_v36, %v747_v39  ;;  %vm755_vm2 = vcmp.lt.s32.totalorder %v753_v37, %v754_v40  ;;  %788 = vmax.xlane.f32.xlu1 %v787_v41 }
 0x3d8   :  { %v749_v47 = vsel %vm748_vm0, %v746_v36, %v747_v39  ;;  %v756_v48 = vsel %vm755_vm2, %v753_v37, %v754_v40  ;;  %vm865_vm2 = vcmask 50224  }
 0x3d9   :  { %v750_v49 = vrot.slane %v749_v47, 1  ;;  %v757_v50 = vrot.slane %v756_v48, 2 }
 0x3db   :  { %vm758_vm4 = vcmp.lt.s32.totalorder %v756_v48, %v757_v50  ;;  %vm751_vm5 = vcmp.lt.s32.totalorder %v749_v47, %v750_v49 }
 0x3dc   :  { %v759_v51 = vsel %vm758_vm4, %v756_v48, %v757_v50  ;;  %v752_v42 = vsel %vm751_vm5, %v749_v47, %v750_v49 }
 0x3dd   :  { %v760_v6 = vrot.slane %v759_v51, 1 }
 0x3df   :  { %vm761_vm6 = vcmp.lt.s32.totalorder %v759_v51, %v760_v6 }
 0x3e0   :  { %v762_v53 = vsel %vm761_vm6, %v759_v51, %v760_v6  ;;  %v868_v51 = vld [vmem:[#allocation2 + $0xa] sm:$0x3] }
 0x3e1   :  { %v763_v52 = vsel %vm126_vm3, %v762_v53, %v752_v42 }
 0x3e2   :  { %765 = vst.msk [vmem:[#allocation2 + $0xc] sm:$0x3] %vm128_vm12, %v763_v52 }
 0x3e9   :  { %v836_v9 = vld [vmem:[#allocation2 + $0xc] sm:$0x3] }
 0x464   :  { %v789_v46 = vpop.xlane.xlu1 %788 }
 0x465   :  { %vm790_vm1 = vcmp.ge.f32.partialorder %v784_v38, %v789_v46 }
 0x466   :  { %v791_v55 = vsel %vm790_vm1, %v1408_v54, 8 }
 0x467   :  { %v792_v45 = vsel %vm128_vm12, %v791_v55, 2147483647 }
 0x468   :  { %v794_v43 = vshra.s32 %v792_v45, 16  ;;  %v793_v56 = vand.u32 65535, %v792_v45  ;;  %v867_v45 = vld [vmem:[%s1518_s1] sm:$0x3] }
 0x469   :  { %vm887_vm5 = vcmp.gt.s32.totalorder %v867_v45, 0 }
 0x46a   :  { %v796_v44 = vcvt.s32.f32 %v794_v43  ;;  %v795_v58 = vcvt.s32.f32 %v793_v56 }
 0x46c   :  { %797 = vmin.xlane.f32.xlu0 %v796_v44 }
 0x4f9   :  { %v798_v57 = vpop.xlane.xlu0 %797 }
 0x4fa   :  { %vm799_vm7 = vcmp.eq.f32.partialorder %v796_v44, %v798_v57  ;;  %v804_v59 = vcvt.f32.s32 %v798_v57 }
 0x4fb   :  { %v800_v10 = vsel %vm799_vm7, %v795_v58, inf  ;;  %vm897_vm7 = vcmask 42024  }
 0x4fc   :  { %801 = vmin.xlane.f32.xlu1 %v800_v10  ;;  %v805_v62 = vshll.u32 %v804_v59, 16 }
 0x589   :  { %v802_v60 = vpop.xlane.xlu1 %801 }
 0x58a   :  { %v803_v2 = vcvt.f32.s32 %v802_v60 }
 0x58c   :  { %v806_v0 = vadd.s32 %v805_v62, %v803_v2 }
 0x58e   :  { %vm810_vm3 = vcmp.eq.s32.totalorder %v1408_v54, %v806_v0 }
 0x58f   :  { %v811_v5 = vsel %vm810_vm3, %v809_v1, 0  ;;  %v900_v1 = vld [vmem:[#allocation2 + $0x8] sm:$0x3] }
 0x590   :  { %v812_v8 = vsel %vm128_vm12, %v811_v5, 0 }
 0x591   :  { %v814_v12 = vshrl.u32 %v812_v8, 16  ;;  %v813_v14 = vand.u32 65535, %v812_v8 }
 0x593   :  { %v816_v15 = vcvt.s32.f32 %v814_v12  ;;  %v815_v16 = vcvt.s32.f32 %v813_v14 }
 0x595   :  { %819 = vadd.xlane.f32.xlu0 %v816_v15  ;;  %817 = vadd.xlane.f32.xlu1 %v815_v16 }
 0x5ab   :  { %827 = vrot.lane.b32.xlu0 %v826_v19, %s1148_s26 }
 0x622   :  { %v820_v63 = vpop.xlane.xlu0 %819  ;;  %v818_v20 = vpop.xlane.xlu1 %817 }
 0x623   :  { %v822_v22 = vcvt.f32.s32 %v820_v63  ;;  %v821_v17 = vcvt.f32.s32 %v818_v20 }
 0x625   :  { %v823_v23 = vshll.u32 %v822_v22, 16 }
 0x626   :  { %v828_v24 = vpop.permute.xlu0 %827 }
 0x627   :  { %v824_v25 = vadd.s32 %v823_v23, %v821_v17  ;;  %vm829_vm9 = vcmp.ne.s32.totalorder %v828_v24, 0 }
 0x628   :  { %vm830_vm10 = vmand %vm825_vm8, %vm829_vm9 }
 0x629   :  { %v831_v26 = vsel %vm830_vm10, %v824_v25, %v806_v0 }
 0x62a   :  { %838 = vperm.xlu1 %1107, %v831_v26   ;;  %v832_v27 = vsel %vm825_vm8, %v831_v26, 0  ;;  %vm919_vm8 = vcmp.gt.s32.totalorder %v899_v18, 0 }
 0x62b   :  { %834 = vst.msk [vmem:[#allocation3] sm:$0x3] %vm833_vm11, %v832_v27  ;;  %vm929_vm11 = vcmask 33824  }
 0x62e   :  { %1108 = vset.pattern.permute.xlu1 %v1146_v61  ;;  %v856_v61 = vsel %vm855_vm14, 1, %v1140_v7 }
 0x6a9   :  { %v839_v28 = vpop.permute.xlu1 %838 }
 0x6aa   :  { %vm840_vm13 = vcmp.eq.s32.totalorder %v1408_v54, %v839_v28 }
 0x6ab   :  { %v841_v29 = vsel %vm840_vm13, %v836_v9, 0  ;;  %v932_v9 = vld [vmem:[#allocation2 + $0x6] sm:$0x3] }
 0x6ac   :  { %v842_v21 = vsel %vm128_vm12, %v841_v29, 0 }
 0x6ad   :  { %v844_v30 = vshrl.u32 %v842_v21, 16  ;;  %v843_v31 = vand.u32 65535, %v842_v21 }
 0x6af   :  { %v846_v32 = vcvt.s32.f32 %v844_v30  ;;  %v845_v33 = vcvt.s32.f32 %v843_v31 }
 0x6b1   :  { %849 = vadd.xlane.f32.xlu1 %v846_v32  ;;  %847 = vadd.xlane.f32.xlu0 %v845_v33 }
 0x6c2   :  { %861 = vrot.lane.b32.xlu1 %v831_v26, %s1148_s26 }
 0x6c7   :  { %857 = vrot.lane.b32.xlu0 %v856_v61, %s1148_s26 }
 0x73e   :  { %v850_v35 = vpop.xlane.xlu1 %849  ;;  %v848_v36 = vpop.xlane.xlu0 %847 }
 0x73f   :  { %v852_v37 = vcvt.f32.s32 %v850_v35  ;;  %v851_v39 = vcvt.f32.s32 %v848_v36 }
 0x741   :  { %v853_v38 = vshll.u32 %v852_v37, 16 }
 0x742   :  { %v858_v40 = vpop.permute.xlu0 %857  ;;  %v862_v47 = vpop.permute.xlu1 %861 }
 0x743   :  { %v854_v41 = vadd.s32 %v853_v38, %v851_v39  ;;  %vm859_vm15 = vcmp.ne.s32.totalorder %v858_v40, 0 }
 0x744   :  { %vm860_vm0 = vmand %vm855_vm14, %vm859_vm15 }
 0x745   :  { %v863_v48 = vsel %vm860_vm0, %v854_v41, %v862_v47 }
 0x746   :  { %870 = vperm.xlu1 %1108, %v863_v48   ;;  %v864_v49 = vsel %vm855_vm14, %v863_v48, 0  ;;  %vm951_vm14 = vcmp.gt.s32.totalorder %v931_v34, 0 }
 0x747   :  { %866 = vst.msk [vmem:[#allocation3] sm:$0x3] %vm865_vm2, %v864_v49  ;;  %vm961_vm2 = vcmask 25624  }
 0x74a   :  { %1110 = vset.pattern.permute.xlu1 %v1144_v4  ;;  %v888_v4 = vsel %vm887_vm5, 1, %v1140_v7 }
 0x7c5   :  { %v871_v50 = vpop.permute.xlu1 %870 }
 0x7c6   :  { %vm872_vm4 = vcmp.eq.s32.totalorder %v1408_v54, %v871_v50  ;;  %v964_v50 = vld [vmem:[#allocation2 + $0x4] sm:$0x3] }
 0x7c7   :  { %v873_v6 = vsel %vm872_vm4, %v868_v51, 0 }
 0x7c8   :  { %v874_v42 = vsel %vm128_vm12, %v873_v6, 0 }
 0x7c9   :  { %v876_v53 = vshrl.u32 %v874_v42, 16  ;;  %v875_v52 = vand.u32 65535, %v874_v42 }
 0x7cb   :  { %v878_v46 = vcvt.s32.f32 %v876_v53  ;;  %v877_v55 = vcvt.s32.f32 %v875_v52 }
 0x7cd   :  { %881 = vadd.xlane.f32.xlu0 %v878_v46  ;;  %879 = vadd.xlane.f32.xlu1 %v877_v55  ;;  %v963_v55 = vld [vmem:[%s1518_s1] sm:$0x3] }
 0x7de   :  { %893 = vrot.lane.b32.xlu1 %v863_v48, %s1148_s26 }
 0x7e3   :  { %889 = vrot.lane.b32.xlu0 %v888_v4, %s1148_s26 }
 0x85a   :  { %v882_v43 = vpop.xlane.xlu0 %881  ;;  %v880_v44 = vpop.xlane.xlu1 %879 }
 0x85b   :  { %v884_v56 = vcvt.f32.s32 %v882_v43  ;;  %v883_v58 = vcvt.f32.s32 %v880_v44 }
 0x85d   :  { %v885_v57 = vshll.u32 %v884_v56, 16 }
 0x85e   :  { %v890_v10 = vpop.permute.xlu0 %889  ;;  %v894_v60 = vpop.permute.xlu1 %893 }
 0x85f   :  { %v886_v59 = vadd.s32 %v885_v57, %v883_v58  ;;  %vm891_vm6 = vcmp.ne.s32.totalorder %v890_v10, 0 }
 0x860   :  { %vm892_vm1 = vmand %vm887_vm5, %vm891_vm6 }
 0x861   :  { %v895_v62 = vsel %vm892_vm1, %v886_v59, %v894_v60 }
 0x862   :  { %902 = vperm.xlu0 %1109, %v895_v62   ;;  %v896_v2 = vsel %vm887_vm5, %v895_v62, 0  ;;  %vm983_vm5 = vcmp.gt.s32.totalorder %v963_v55, 0 }
 0x863   :  { %898 = vst.msk [vmem:[#allocation3] sm:$0x3] %vm897_vm7, %v896_v2  ;;  %v984_v45 = vsel %vm983_vm5, 1, %v1140_v7  ;;  %vm993_vm7 = vcmask 17424  }
 0x866   :  { %1112 = vset.pattern.permute.xlu0 %v1141_v13  ;;  %v920_v13 = vsel %vm919_vm8, 1, %v1140_v7 }
 0x8e1   :  { %v903_v0 = vpop.permute.xlu0 %902 }
 0x8e2   :  { %vm904_vm3 = vcmp.eq.s32.totalorder %v1408_v54, %v903_v0  ;;  %v996_v0 = vld [vmem:[#allocation2 + $0x2] sm:$0x3] }
 0x8e3   :  { %v905_v5 = vsel %vm904_vm3, %v900_v1, 0 }
 0x8e4   :  { %v906_v8 = vsel %vm128_vm12, %v905_v5, 0 }
 0x8e5   :  { %v908_v12 = vshrl.u32 %v906_v8, 16  ;;  %v907_v14 = vand.u32 65535, %v906_v8 }
 0x8e7   :  { %v910_v15 = vcvt.s32.f32 %v908_v12  ;;  %v909_v16 = vcvt.s32.f32 %v907_v14 }
 0x8e9   :  { %913 = vadd.xlane.f32.xlu1 %v910_v15  ;;  %911 = vadd.xlane.f32.xlu0 %v909_v16  ;;  %v995_v16 = vld [vmem:[%s1518_s1] sm:$0x3] }
 0x8fa   :  { %921 = vrot.lane.b32.xlu1 %v920_v13, %s1148_s26 }
 0x8ff   :  { %925 = vrot.lane.b32.xlu0 %v895_v62, %s1148_s26 }
 0x976   :  { %v914_v19 = vpop.xlane.xlu1 %913  ;;  %v912_v63 = vpop.xlane.xlu0 %911 }
 0x977   :  { %v916_v20 = vcvt.f32.s32 %v914_v19  ;;  %v915_v23 = vcvt.f32.s32 %v912_v63 }
 0x979   :  { %v917_v22 = vshll.u32 %v916_v20, 16 }
 0x97a   :  { %v922_v17 = vpop.permute.xlu1 %921  ;;  %v926_v25 = vpop.permute.xlu0 %925 }
 0x97b   :  { %v918_v24 = vadd.s32 %v917_v22, %v915_v23  ;;  %vm923_vm9 = vcmp.ne.s32.totalorder %v922_v17, 0 }
 0x97c   :  { %vm924_vm10 = vmand %vm919_vm8, %vm923_vm9 }
 0x97d   :  { %v927_v26 = vsel %vm924_vm10, %v918_v24, %v926_v25 }
 0x97e   :  { %934 = vperm.xlu1 %1110, %v927_v26   ;;  %v928_v27 = vsel %vm919_vm8, %v927_v26, 0  ;;  %vm1015_vm8 = vcmp.gt.s32.totalorder %v995_v16, 0 }
 0x97f   :  { %930 = vst.msk [vmem:[#allocation3] sm:$0x3] %vm929_vm11, %v928_v27  ;;  %vm1025_vm11 = vcmask 9224   ;;  %v1028_v27 = vld [vmem:[#allocation2] sm:$0x3] }
 0x982   :  { %1111 = vset.pattern.permute.xlu1 %v1143_v11  ;;  %v952_v11 = vsel %vm951_vm14, 1, %v1140_v7 }
 0x9fd   :  { %v935_v28 = vpop.permute.xlu1 %934 }
 0x9fe   :  { %vm936_vm13 = vcmp.eq.s32.totalorder %v1408_v54, %v935_v28 }
 0x9ff   :  { %v937_v29 = vsel %vm936_vm13, %v932_v9, 0 }
 0xa00   :  { %v938_v21 = vsel %vm128_vm12, %v937_v29, 0 }
 0xa01   :  { %v940_v30 = vshrl.u32 %v938_v21, 16  ;;  %v939_v31 = vand.u32 65535, %v938_v21 }
 0xa03   :  { %v942_v32 = vcvt.s32.f32 %v940_v30  ;;  %v941_v33 = vcvt.s32.f32 %v939_v31 }
 0xa05   :  { %945 = vadd.xlane.f32.xlu1 %v942_v32  ;;  %943 = vadd.xlane.f32.xlu0 %v941_v33  ;;  %v1027_v32 = vld [vmem:[%s1518_s1] sm:$0x3]  ;;  %s1115_s1 = scalar_lea.vmem %s1066_s16, 32 }
 0xa06   :  { %p1116_p0 = scmp.ne.s32.totalorder %s1066_s16, %s1115_s1  ;;  %p1121_p2 = scmp.lt.s32.totalorder %s1115_s1, %s1115_s1 }
 0xa08   :  { %p1122_p3 = por %p1121_p2, %p1120_p1 }
 0xa0a   :  { %p1123_p4 = pnand %p1122_p3, %p1116_p0 }
 0xa16   :  { %957 = vrot.lane.b32.xlu1 %v927_v26, %s1148_s26 }
 0xa1b   :  { %953 = vrot.lane.b32.xlu0 %v952_v11, %s1148_s26 }
 0xa92   :  { %v946_v61 = vpop.xlane.xlu1 %945  ;;  %v944_v35 = vpop.xlane.xlu0 %943 }
 0xa93   :  { %v948_v36 = vcvt.f32.s32 %v946_v61  ;;  %v947_v38 = vcvt.f32.s32 %v944_v35 }
 0xa95   :  { %v949_v37 = vshll.u32 %v948_v36, 16 }
 0xa96   :  { %v954_v39 = vpop.permute.xlu0 %953  ;;  %v958_v41 = vpop.permute.xlu1 %957 }
 0xa97   :  { %v950_v40 = vadd.s32 %v949_v37, %v947_v38  ;;  %vm955_vm15 = vcmp.ne.s32.totalorder %v954_v39, 0 }
 0xa98   :  { %vm956_vm0 = vmand %vm951_vm14, %vm955_vm15 }
 0xa99   :  { %v959_v47 = vsel %vm956_vm0, %v950_v40, %v958_v41  ;;  %vm1057_vm0 = vcmask 1024  }
 0xa9a   :  { %966 = vperm.xlu1 %1111, %v959_v47   ;;  %v960_v48 = vsel %vm951_vm14, %v959_v47, 0  ;;  %vm1047_vm14 = vcmp.gt.s32.totalorder %v1027_v32, 0 }
 0xa9b   :  { %962 = vst.msk [vmem:[#allocation3] sm:$0x3] %vm961_vm2, %v960_v48  ;;  %v1048_v33 = vsel %vm1047_vm14, 1, %v1140_v7 }
 0xa9e   :  { %1113 = vset.pattern.permute.xlu1 %v1139_v3 }
 0xb19   :  { %v967_v49 = vpop.permute.xlu1 %966 }
 0xb1a   :  { %vm968_vm4 = vcmp.eq.s32.totalorder %v1408_v54, %v967_v49 }
 0xb1b   :  { %v969_v51 = vsel %vm968_vm4, %v964_v50, 0 }
 0xb1c   :  { %v970_v6 = vsel %vm128_vm12, %v969_v51, 0 }
 0xb1d   :  { %v972_v42 = vshrl.u32 %v970_v6, 16  ;;  %v971_v53 = vand.u32 65535, %v970_v6 }
 0xb1f   :  { %v974_v52 = vcvt.s32.f32 %v972_v42  ;;  %v973_v46 = vcvt.s32.f32 %v971_v53 }
 0xb21   :  { %977 = vadd.xlane.f32.xlu0 %v974_v52  ;;  %975 = vadd.xlane.f32.xlu1 %v973_v46 }
 0xb32   :  { %989 = vrot.lane.b32.xlu1 %v959_v47, %s1148_s26 }
 0xb37   :  { %985 = vrot.lane.b32.xlu0 %v984_v45, %s1148_s26 }
 0xbae   :  { %v978_v4 = vpop.xlane.xlu0 %977  ;;  %v976_v43 = vpop.xlane.xlu1 %975 }
 0xbaf   :  { %v980_v44 = vcvt.f32.s32 %v978_v4  ;;  %v979_v57 = vcvt.f32.s32 %v976_v43 }
 0xbb1   :  { %v981_v56 = vshll.u32 %v980_v44, 16 }
 0xbb2   :  { %v986_v58 = vpop.permute.xlu0 %985  ;;  %v990_v59 = vpop.permute.xlu1 %989 }
 0xbb3   :  { %v982_v10 = vadd.s32 %v981_v56, %v979_v57  ;;  %vm987_vm6 = vcmp.ne.s32.totalorder %v986_v58, 0 }
 0xbb4   :  { %vm988_vm1 = vmand %vm983_vm5, %vm987_vm6 }
 0xbb5   :  { %v991_v60 = vsel %vm988_vm1, %v982_v10, %v990_v59 }
 0xbb6   :  { %998 = vperm.xlu0 %1112, %v991_v60   ;;  %v992_v62 = vsel %vm983_vm5, %v991_v60, 0 }
 0xbb7   :  { %994 = vst.msk [vmem:[#allocation3] sm:$0x3] %vm993_vm7, %v992_v62 }
 0xbba   :  { %1114 = vset.pattern.permute.xlu0 %v1139_v3  ;;  %v1016_v3 = vsel %vm1015_vm8, 1, %v1140_v7 }
 0xc35   :  { %v999_v2 = vpop.permute.xlu0 %998 }
 0xc36   :  { %vm1000_vm3 = vcmp.eq.s32.totalorder %v1408_v54, %v999_v2 }
 0xc37   :  { %v1001_v1 = vsel %vm1000_vm3, %v996_v0, 0 }
 0xc38   :  { %v1002_v5 = vsel %vm128_vm12, %v1001_v1, 0 }
 0xc39   :  { %v1004_v8 = vshrl.u32 %v1002_v5, 16  ;;  %v1003_v12 = vand.u32 65535, %v1002_v5 }
 0xc3b   :  { %v1006_v14 = vcvt.s32.f32 %v1004_v8  ;;  %v1005_v15 = vcvt.s32.f32 %v1003_v12 }
 0xc3d   :  { %1009 = vadd.xlane.f32.xlu1 %v1006_v14  ;;  %1007 = vadd.xlane.f32.xlu0 %v1005_v15 }
 0xc4e   :  { %1017 = vrot.lane.b32.xlu1 %v1016_v3, %s1148_s26 }
 0xc53   :  { %1021 = vrot.lane.b32.xlu0 %v991_v60, %s1148_s26 }
 0xcca   :  { %v1010_v18 = vpop.xlane.xlu1 %1009  ;;  %v1008_v13 = vpop.xlane.xlu0 %1007 }
 0xccb   :  { %v1012_v19 = vcvt.f32.s32 %v1010_v18  ;;  %v1011_v20 = vcvt.f32.s32 %v1008_v13 }
 0xccd   :  { %v1013_v63 = vshll.u32 %v1012_v19, 16 }
 0xcce   :  { %v1018_v22 = vpop.permute.xlu1 %1017  ;;  %v1022_v17 = vpop.permute.xlu0 %1021 }
 0xccf   :  { %v1014_v23 = vadd.s32 %v1013_v63, %v1011_v20  ;;  %vm1019_vm9 = vcmp.ne.s32.totalorder %v1018_v22, 0 }
 0xcd0   :  { %vm1020_vm10 = vmand %vm1015_vm8, %vm1019_vm9 }
 0xcd1   :  { %v1023_v24 = vsel %vm1020_vm10, %v1014_v23, %v1022_v17 }
 0xcd2   :  { %1030 = vperm.xlu1 %1113, %v1023_v24   ;;  %v1024_v25 = vsel %vm1015_vm8, %v1023_v24, 0 }
 0xcd3   :  { %1026 = vst.msk [vmem:[#allocation3] sm:$0x3] %vm1025_vm11, %v1024_v25 }
 0xd51   :  { %v1031_v26 = vpop.permute.xlu1 %1030 }
 0xd52   :  { %vm1032_vm13 = vcmp.eq.s32.totalorder %v1408_v54, %v1031_v26 }
 0xd53   :  { %v1033_v28 = vsel %vm1032_vm13, %v1028_v27, 0 }
 0xd54   :  { %v1034_v9 = vsel %vm128_vm12, %v1033_v28, 0 }
 0xd55   :  { %v1036_v29 = vshrl.u32 %v1034_v9, 16  ;;  %v1035_v21 = vand.u32 65535, %v1034_v9 }
 0xd57   :  { %v1038_v30 = vcvt.s32.f32 %v1036_v29  ;;  %v1037_v31 = vcvt.s32.f32 %v1035_v21 }
 0xd59   :  { %1041 = vadd.xlane.f32.xlu1 %v1038_v30  ;;  %1039 = vadd.xlane.f32.xlu0 %v1037_v31 }
 0xd6a   :  { %1053 = vrot.lane.b32.xlu1 %v1023_v24, %s1148_s26 }
 0xd6f   :  { %1049 = vrot.lane.b32.xlu0 %v1048_v33, %s1148_s26 }
 0xde6   :  { %v1042_v54 = vpop.xlane.xlu1 %1041  ;;  %v1040_v34 = vpop.xlane.xlu0 %1039 }
 0xde7   :  { %v1044_v11 = vcvt.f32.s32 %v1042_v54  ;;  %v1043_v35 = vcvt.f32.s32 %v1040_v34 }
 0xde9   :  { %v1045_v61 = vshll.u32 %v1044_v11, 16 }
 0xdea   :  { %v1050_v36 = vpop.permute.xlu0 %1049  ;;  %v1054_v38 = vpop.permute.xlu1 %1053 }
 0xdeb   :  { %v1046_v37 = vadd.s32 %v1045_v61, %v1043_v35  ;;  %vm1051_vm12 = vcmp.ne.s32.totalorder %v1050_v36, 0 }
 0xdec   :  { %vm1052_vm15 = vmand %vm1047_vm14, %vm1051_vm12 }
 0xded   :  { %v1055_v39 = vsel %vm1052_vm15, %v1046_v37, %v1054_v38 }
 0xdee   :  { %v1056_v7 = vsel %vm1047_vm14, %v1055_v39, 0 }
 0xdef   :  { %1058 = vst.msk [vmem:[#allocation3] sm:$0x3] %vm1057_vm0, %v1056_v7 }
 0xdf0   :  { %1126 = shalt.err (!%p1123_p4)
}
 0xdf1   :  { %s1127_s19 = scalar_lea.hbm %s1522_s5, 32 }
 0xdf2   :  { %p1128_p5 = scmp.ne.s32.totalorder %s1522_s5, %s1127_s19  ;;  %p1131_p6 = scmp.lt.u32.totalorder %s1127_s19, %s1522_s5 }
 0xdf4   :  { %p1133_p7 = pnand %p1131_p6, %p1128_p5 }
 0xdf6   :  { %1136 = shalt.err (!%p1133_p7)
}
 0xdf7   :  { %1068 = dma.vmem_to_hbm [thread:$0]  %s1066_s16, 32, %s1522_s5, [#allocation4]  }
 0xdf8   :  { %1137 = dma.done.wait [#allocation4], 32  }
 0xdf9   :  { %1138 = vsyncadd [#allocation4], 4294967264 }
 0xdfa   :  { %1072 = vsyncpa [#allocation4], 1 }

// kernel: bilstm_crf_forward.2
= control target key start
LH: loop header
LB: loop body
LE: loop exit
PB: predicated region body
PF: predicated region fallthrough
CT: control target
= control target key end

     0   :  { %v70_v3 = vlaneseq  ;;  %v2552_v8 = vmov 1983009808   ;;  %vm99_vm0 = vcmask 261120   ;;  %s3097_s0 = inlined_call_operand.vmem [shape: f32[8,2,32], index: 0, kind: input, shape index: {}]   ;;  %s3098_s1 = inlined_call_operand.vmem [shape: f32[32,128], index: 1, kind: input, shape index: {}]   ;;  %s3099_s2 = inlined_call_operand.vmem [shape: f32[32,128], index: 2, kind: input, shape index: {}]   ;;  %s3100_s3 = inlined_call_operand.vmem [shape: f32[64,256], index: 3, kind: input, shape index: {}]   ;;  %s3101_s4 = inlined_call_operand.vmem [shape: f32[1,128], index: 4, kind: input, shape index: {}]   ;;  %s3102_s5 = inlined_call_operand.vmem [shape: f32[1,128], index: 5, kind: input, shape index: {}]   ;;  %s3103_s6 = inlined_call_operand.vmem [shape: f32[64,8], index: 6, kind: input, shape index: {}]   ;;  %s3104_s7 = inlined_call_operand.vmem [shape: f32[1,8], index: 7, kind: input, shape index: {}]   ;;  %s3105_s8 = inlined_call_operand.vmem [shape: f32[64,2], index: 8, kind: input, shape index: {}]   ;;  %s3106_s9 = inlined_call_operand.vmem [shape: f32[1,2], index: 9, kind: input, shape index: {}]   ;;  %s3107_s10 = inlined_call_operand.vmem [shape: f32[8,2,8], index: 10, kind: output, shape index: {0}]   ;;  %s3108_s11 = inlined_call_operand.hbm [shape: f32[2,2], index: 11, kind: output, shape index: {1}]  }
   0x1   :  { %v46_v0 = vld [vmem:[%s3098_s1] sm:$0xff]  ;;  %v47_v1 = vld [vmem:[%s3098_s1 + $0x8] sm:$0xff]  ;;  %v48_v6 = vld [vmem:[%s3098_s1 + $0x10] sm:$0xff]  ;;  %v68_v9 = vunpack.c.l.s4 %v2552_v8 }
   0x2   :  { %v231_v2 = vld [vmem:[%s3099_s2] sm:$0xff]  ;;  %v2219_v4 = vpack.c.bf16 %v47_v1, %v46_v0  ;;  %v232_v5 = vld [vmem:[%s3099_s2 + $0x8] sm:$0xff]  ;;  %v49_v7 = vld [vmem:[%s3098_s1 + $0x18] sm:$0xff]  ;;  %v71_v15 = vshrl.u32 %v70_v3, 7 }
   0x3   :  { %v2227_v10 = vpack.c.bf16 %v232_v5, %v231_v2  ;;  %v2223_v11 = vpack.c.bf16 %v49_v7, %v48_v6  ;;  %v233_v12 = vld [vmem:[%s3099_s2 + $0x10] sm:$0xff]  ;;  %v234_v13 = vld [vmem:[%s3099_s2 + $0x18] sm:$0xff]  ;;  %v38_v14 = vld [vmem:[%s3097_s0] sm:$0x3]  ;;  %v69_v20 = vunpack.c.0.s8 %v68_v9 }
   0x4   :  { %2220 = vmatprep.subr.bf16.mxu0 %v2219_v4  ;;  %v2231_v16 = vpack.c.bf16 %v234_v13, %v233_v12  ;;  %v39_v17 = vld [vmem:[%s3097_s0 + $0x2] sm:$0x3]  ;;  %v40_v18 = vld [vmem:[%s3097_s0 + $0x4] sm:$0x3]  ;;  %v41_v19 = vld [vmem:[%s3097_s0 + $0x6] sm:$0x3] }
   0x5   :  { %2222 = vmatpush3.bf16.msra.mxu0 %v2219_v4  ;;  %2228 = vmatprep.subr.bf16.mxu1 %v2227_v10  ;;  %v65_v21 = vcombine.low %v38_v14, %v39_v17  ;;  %v66_v22 = vcombine.low %v40_v18, %v41_v19  ;;  %v370_v23 = vld [vmem:[%s3100_s3 + $0x8] sm:$0xff]  ;;  %v372_v24 = vld [vmem:[%s3100_s3 + $0x18] sm:$0xff]  ;;  %v2664_v26 = vsub.s32 %v69_v20, %v71_v15  ;;  %v369_v33 = vld [vmem:[%s3100_s3] sm:$0xff] }
   0x6   :  { %v42_v25 = vld [vmem:[%s3097_s0 + $0x8] sm:$0x3]  ;;  %2230 = vmatpush3.bf16.msra.mxu1 %v2227_v10  ;;  %2224 = vmatprep.subr.bf16.mxu0 %v2223_v11  ;;  %v2666_v27 = vpack.c.bf16 %v372_v24, %v370_v23  ;;  %v43_v28 = vld [vmem:[%s3097_s0 + $0xa] sm:$0x3]  ;;  %v44_v29 = vld [vmem:[%s3097_s0 + $0xc] sm:$0x3] }
   0x7   :  { %v45_v30 = vld [vmem:[%s3097_s0 + $0xe] sm:$0x3]  ;;  %2232 = vmatprep.subr.bf16.mxu1 %v2231_v16  ;;  %v82_v31 = vcombine.low %v42_v25, %v43_v28  ;;  %v371_v34 = vld [vmem:[%s3100_s3 + $0x10] sm:$0xff]  ;;  %v73_v35 = vrot.slane %v65_v21, %v2664_v26  ;;  %v80_v36 = vrot.slane %v66_v22, %v2664_v26  ;;  %v376_v38 = vld [vmem:[%s3100_s3 + $0x38] sm:$0xff] }
   0x8   :  { %v83_v32 = vcombine.low %v44_v29, %v45_v30  ;;  %v374_v37 = vld [vmem:[%s3100_s3 + $0x28] sm:$0xff]  ;;  %v2694_v42 = vpack.c.bf16 %v371_v34, %v369_v33  ;;  %v373_v45 = vld [vmem:[%s3100_s3 + $0x20] sm:$0xff]  ;;  %v375_v46 = vld [vmem:[%s3100_s3 + $0x30] sm:$0xff] }
   0x9   :  { %2226 = vmatpush3.bf16.msra.mxu0 %v2223_v11  ;;  %v90_v39 = vrot.slane %v82_v31, %v2664_v26  ;;  %v81_v41 = vcombine.low %v73_v35, %v80_v36  ;;  %v2696_v44 = vpack.c.bf16 %v376_v38, %v374_v37 }
   0xa   :  { %v97_v40 = vrot.slane %v83_v32, %v2664_v26  ;;  %2234 = vmatpush3.bf16.msra.mxu1 %v2231_v16  ;;  %2236 = vmatprep.subr.bf16.mxu0 %v2666_v27 }
   0xb   :  { %2252 = vmatprep.subr.bf16.mxu1 %v2666_v27 }
   0xc   :  { %v98_v43 = vcombine.low %v90_v39, %v97_v40 }
   0xd   :  { %17 = vsyncpa [#allocation7], 0  ;;  %2161 = vmatprep.mubr.msk.f32.mxu0 %vm99_vm0, %v81_v41  ;;  %2172 = vmatprep.mubr.msk.f32.mxu1 %vm99_vm0, %v81_v41  ;;  %v378_v47 = vld [vmem:[%s3100_s3 + $0x48] sm:$0xff]  ;;  %v380_v48 = vld [vmem:[%s3100_s3 + $0x58] sm:$0xff]  ;;  %v2716_v49 = vpack.c.bf16 %v375_v46, %v373_v45  ;;  %v2553_v50 = vmov 0.0   ;;  %vm517_vm1 = vcmask 254976  }
   0xe   :  { %2162 = vmatmul.mubr.msk.f32.vlgmr.msra.gmra.mrb[0].mxu0 %vm99_vm0, %v98_v43  ;;  %2173 = vmatmul.mubr.msk.f32.vlgmr.msra.gmra.mrb[0].mxu1 %vm99_vm0, %v98_v43  ;;  %v2720_v51 = vpack.c.bf16 %v380_v48, %v378_v47  ;;  %v377_v52 = vld [vmem:[%s3100_s3 + $0x40] sm:$0xff]  ;;  %v379_v53 = vld [vmem:[%s3100_s3 + $0x50] sm:$0xff]  ;;  %v382_v54 = vld [vmem:[%s3100_s3 + $0x68] sm:$0xff]  ;;  %vm385_vm2 = vcmask 523264   ;;  %vm2557_vm3 = vmmov 0   ;;  %vm1850_vm4 = vcmask 58368  }
   0xf   :  { %2238 = vmatpush1.bf16.msra.mxu0 %v2694_v42  ;;  %453 = vmatprep.mubr.f32.mxu0 %v2553_v50  ;;  %v384_v55 = vld [vmem:[%s3100_s3 + $0x78] sm:$0xff]  ;;  %v2738_v56 = vpack.c.bf16 %v379_v53, %v377_v52  ;;  %v381_v58 = vld [vmem:[%s3100_s3 + $0x60] sm:$0xff]  ;;  %v383_v59 = vld [vmem:[%s3100_s3 + $0x70] sm:$0xff]  ;;  %s2558_s29 = smov [#allocation6]   ;;  %vm2054_vm5 = vcmask 9216  }
  0x10   :  { %2240 = vmatprep.subr.bf16.mxu0 %v2696_v44  ;;  %2254 = vmatpush1.bf16.msra.mxu1 %v2694_v42  ;;  %v2741_v57 = vpack.c.bf16 %v384_v55, %v382_v54  ;;  %v2752_v60 = vpack.c.bf16 %v383_v59, %v381_v58  ;;  %v2074_v61 = vld [vmem:[%s3101_s4] ss:$0 sm:$0xff]  ;;  %s2554_s4 = smov 64   ;;  %s2064_s30 = sshll.u32 %s2558_s29, 4  ;;  %s2065_s30 = int_to_ptr.vmem [resolvable:$true] %s2064_s30 }
  0x11   :  { %2256 = vmatprep.subr.bf16.mxu1 %v2696_v44  ;;  %596 = vmatprep.mubr.f32.mxu1 %v2553_v50  ;;  %v2081_v62 = vld [vmem:[%s3102_s5] ss:$0 sm:$0xff]  ;;  %s2555_s5 = smov 32   ;;  %p2533_p1 = scmp.lt.s32.totalorder %s2065_s30, %s2065_s30 }
  0x13   :  { %2242 = vmatpush1.bf16.msra.mxu0 %v2716_v49 }
  0x14   :  { %2244 = vmatprep.subr.bf16.mxu0 %v2720_v51  ;;  %2258 = vmatpush1.bf16.msra.mxu1 %v2716_v49 }
  0x15   :  { %2260 = vmatprep.subr.bf16.mxu1 %v2720_v51 }
  0x17   :  { %2246 = vmatpush1.bf16.msra.mxu0 %v2738_v56 }
  0x18   :  { %2248 = vmatprep.subr.bf16.mxu0 %v2741_v57  ;;  %2262 = vmatpush1.bf16.msra.mxu1 %v2738_v56 }
  0x19   :  { %2264 = vmatprep.subr.bf16.mxu1 %v2741_v57 }
  0x1b   :  { %2250 = vmatpush1.bf16.msra.mxu0 %v2752_v60 }
  0x1c   :  { %2266 = vmatpush1.bf16.msra.mxu1 %v2752_v60  ;;  %2268 = vmatprep.subr.bf16.mxu0 %v2666_v27 }
  0x1d   :  { %2284 = vmatprep.subr.bf16.mxu1 %v2666_v27 }
  0x1e   :  { %454 = vmatmul.mubr.f32.vlgmr.msra.gmra.mrb[2].mxu0 %v2553_v50 }
  0x1f   :  { %2270 = vmatpush1.bf16.msra.mxu0 %v2694_v42  ;;  %740 = vmatprep.mubr.f32.mxu0 %v2553_v50 }
  0x20   :  { %2272 = vmatprep.subr.bf16.mxu0 %v2696_v44 }
  0x23   :  { %2274 = vmatpush1.bf16.msra.mxu0 %v2716_v49 }
  0x24   :  { %2276 = vmatprep.subr.bf16.mxu0 %v2720_v51 }
  0x27   :  { %2278 = vmatpush1.bf16.msra.mxu0 %v2738_v56 }
  0x28   :  { %2280 = vmatprep.subr.bf16.mxu0 %v2741_v57 }
  0x2b   :  { %2282 = vmatpush1.bf16.msra.mxu0 %v2752_v60 }
  0x2c   :  { %2300 = vmatprep.subr.bf16.mxu0 %v2666_v27 }
  0xe1   :  { %v2163_v63 = vpop.f32.mrb[0].mxu0  ;;  %v2174_v0 = vpop.f32.mrb[0].mxu1 }
  0xe2   :  { %v176_v1 = vadd.f32 %v2163_v63, %v2074_v61  ;;  %v314_v2 = vadd.f32 %v2174_v0, %v2081_v62  ;;  %v170_v3 = vpop.f32.mrb[1].mxu0  ;;  %v308_v4 = vpop.f32.mrb[1].mxu1 }
  0xe3   :  { %v171_v5 = vadd.f32 %v2074_v61, %v170_v3  ;;  %v309_v6 = vadd.f32 %v2081_v62, %v308_v4 }
  0xe4   :  { %v198_v7 = vcombine.high %v176_v1, %v176_v1  ;;  %v205_v8 = vrot.slane %v176_v1, %v2664_v26  ;;  %2079 = vst.sshfl [vmem:[#allocation2 + $0x8] sm:$0x3 pattern:$0x76325410] %v176_v1  ;;  %v336_v9 = vcombine.high %v314_v2, %v314_v2  ;;  %v343_v10 = vrot.slane %v314_v2, %v2664_v26 }
  0xe5   :  { %2086 = vst.sshfl [vmem:[#allocation3 + $0x8] sm:$0x3 pattern:$0x76325410] %v314_v2  ;;  %v181_v11 = vcombine.high %v171_v5, %v171_v5  ;;  %v188_v12 = vrot.slane %v171_v5, %v2664_v26  ;;  %v319_v13 = vcombine.high %v309_v6, %v309_v6  ;;  %v326_v14 = vrot.slane %v309_v6, %v2664_v26 }
  0xe6   :  { %2077 = vst.sshfl [vmem:[#allocation2] sm:$0x3 pattern:$0x76325410] %v171_v5  ;;  %v212_v15 = vrot.slane %v198_v7, %v2664_v26  ;;  %v213_v16 = vcombine.high %v205_v8, %v205_v8  ;;  %v350_v17 = vrot.slane %v336_v9, %v2664_v26  ;;  %v351_v18 = vcombine.high %v343_v10, %v343_v10 }
  0xe7   :  { %2084 = vst.sshfl [vmem:[#allocation3] sm:$0x3 pattern:$0x76325410] %v309_v6  ;;  %v195_v19 = vrot.slane %v181_v11, %v2664_v26  ;;  %v196_v20 = vcombine.high %v188_v12, %v188_v12  ;;  %v333_v21 = vrot.slane %v319_v13, %v2664_v26  ;;  %v334_v22 = vcombine.high %v326_v14, %v326_v14 }
  0xe8   :  { %2080 = vst.sshfl [vmem:[#allocation2 + $0xc] sm:$0x3 pattern:$0x76325410] %v198_v7  ;;  %v214_v23 = vcombine.high %v212_v15, %v212_v15  ;;  %228 = vst [vmem:[#allocation2 + $0xa] sm:$0x3] %v213_v16  ;;  %v352_v24 = vcombine.high %v350_v17, %v350_v17 }
  0xe9   :  { %2087 = vst.sshfl [vmem:[#allocation3 + $0xc] sm:$0x3 pattern:$0x76325410] %v336_v9  ;;  %366 = vst [vmem:[#allocation3 + $0xa] sm:$0x3] %v351_v18  ;;  %v197_v25 = vcombine.high %v195_v19, %v195_v19  ;;  %v335_v28 = vcombine.high %v333_v21, %v333_v21 }
  0xea   :  { %2078 = vst.sshfl [vmem:[#allocation2 + $0x4] sm:$0x3 pattern:$0x76325410] %v181_v11  ;;  %224 = vst [vmem:[#allocation2 + $0x2] sm:$0x3] %v196_v20 }
  0xeb   :  { %2085 = vst.sshfl [vmem:[#allocation3 + $0x4] sm:$0x3 pattern:$0x76325410] %v319_v13  ;;  %362 = vst [vmem:[#allocation3 + $0x2] sm:$0x3] %v334_v22 }
  0xec   :  { %230 = vst [vmem:[#allocation2 + $0xe] sm:$0x3] %v214_v23  ;;  %368 = vst [vmem:[#allocation3 + $0xe] sm:$0x3] %v352_v24 }
  0xed   :  { %226 = vst [vmem:[#allocation2 + $0x6] sm:$0x3] %v197_v25  ;;  %364 = vst [vmem:[#allocation3 + $0x6] sm:$0x3] %v335_v28  ;;  %v460_v30 = vld [vmem:[#allocation2] sm:$0x3] }
  0xf0   :  { %v631_v12 = vld [vmem:[#allocation3 + $0xc] sm:$0x3] }
  0xf1   :  { %v455_v29 = vpop.f32.mrb[2].mxu0  ;;  %v604_v9 = vld [vmem:[#allocation2 + $0x2] sm:$0x3] }
  0xf2   :  { %v461_v32 = vadd.f32 %v460_v30, %v455_v29  ;;  %v457_v33 = vpop.f32.mrb[3].mxu0 }
  0xf3   :  { %v487_v31 = vld [vmem:[#allocation3 + $0xe] sm:$0x3] }
  0xf4   :  { %2400 = vtanh.f32 %v461_v32  ;;  %v488_v34 = vadd.f32 %v487_v31, %v457_v33  ;;  %v2088_v37 = vmul.f32 -1.442695, %v461_v32 }
  0xf6   :  { %2402 = vtanh.f32 %v488_v34  ;;  %v2089_v38 = vmul.f32 -1.442695, %v488_v34 }
  0xf7   :  { %2404 = vpow2.f32 %v2088_v37 }
  0xf8   :  { %2406 = vpow2.f32 %v2089_v38 }
  0xfe   :  { %v2401_v35 = vpop.eup %2400 }
  0xff   :  { %471 = vrot.lane.b32.xlu0 %v2401_v35, %s2554_s4 }
 0x100   :  { %v2403_v36 = vpop.eup %2402 }
 0x101   :  { %v2405_v39 = vpop.eup %2404 }
 0x102   :  { %v465_v40 = vadd.f32 1.0, %v2405_v39  ;;  %v2407_v41 = vpop.eup %2406 }
 0x103   :  { %498 = vrot.lane.b32.xlu0 %v2403_v36, %s2554_s4  ;;  %v492_v43 = vadd.f32 1.0, %v2407_v41 }
 0x104   :  { %2408 = vrcp.f32 %v465_v40 }
 0x105   :  { %2410 = vrcp.f32 %v492_v43 }
 0x10e   :  { %v2409_v45 = vpop.eup %2408 }
 0x10f   :  { %v2411_v48 = vpop.eup %2410  ;;  %v469_v54 = vmul.f32 0.0, %v2409_v45 }
 0x110   :  { %v496_v59 = vmul.f32 0.0, %v2411_v48 }
 0x171   :  { %v472_v46 = vpop.permute.xlu0 %471 }
 0x172   :  { %v474_v47 = vmul.f32 %v2409_v45, %v472_v46 }
 0x174   :  { %476 = vrot.lane.b32.xlu1 %v474_v47, %s2555_s5 }
 0x175   :  { %v499_v52 = vpop.permute.xlu0 %498 }
 0x176   :  { %v501_v53 = vmul.f32 %v2411_v48, %v499_v52 }
 0x178   :  { %503 = vrot.lane.b32.xlu1 %v501_v53, %s2555_s5 }
 0x1e6   :  { %v477_v55 = vpop.permute.xlu1 %476 }
 0x1e7   :  { %v479_v58 = vadd.f32 %v477_v55, %v469_v54  ;;  %v775_v54 = vld [vmem:[#allocation3 + $0xa] sm:$0x3] }
 0x1e9   :  { %2412 = vtanh.f32 %v479_v58 }
 0x1ea   :  { %v504_v61 = vpop.permute.xlu1 %503 }
 0x1eb   :  { %v506_v62 = vadd.f32 %v504_v61, %v496_v59 }
 0x1ed   :  { %2414 = vtanh.f32 %v506_v62 }
 0x1f3   :  { %v2413_v63 = vpop.eup %2412 }
 0x1f4   :  { %482 = vrot.lane.b32.xlu0 %v2413_v63, %s2554_s4 }
 0x1f7   :  { %v2415_v0 = vpop.eup %2414 }
 0x1f8   :  { %509 = vrot.lane.b32.xlu1 %v2415_v0, %s2554_s4 }
 0x266   :  { %v483_v1 = vpop.permute.xlu0 %482 }
 0x267   :  { %v485_v2 = vmul.f32 %v2409_v45, %v483_v1 }
 0x269   :  { %514 = vrot.lane.b32.xlu0 %v485_v2, %s2555_s5 }
 0x26a   :  { %v510_v3 = vpop.permute.xlu1 %509 }
 0x26b   :  { %v2792_v4 = vmul.f32 %v2411_v48, %v510_v3  ;;  %v748_v48 = vld [vmem:[#allocation2 + $0x4] sm:$0x3] }
 0x26d   :  { %525 = vrot.lane.b32.xlu1 %v2792_v4, %s2554_s4 }
 0x2db   :  { %v515_v5 = vpop.permute.xlu0 %514 }
 0x2dc   :  { %518 = vst.msk [vmem:[#allocation4] sm:$0x3] %vm517_vm1, %v515_v5 }
 0x2df   :  { %v526_v6 = vpop.permute.xlu1 %525 }
 0x2e0   :  { %v528_v7 = vsel %vm99_vm0, %v515_v5, %v526_v6 }
 0x2e1   :  { %2090 = vmatmul.mubr.msk.f32.vlgmr.msra.gmra.mrb[2].mxu1 %vm385_vm2, %v528_v7 }
 0x2e2   :  { %2286 = vmatpush1.bf16.msra.mxu1 %v2694_v42  ;;  %884 = vmatprep.mubr.f32.mxu1 %v2553_v50 }
 0x2e3   :  { %2288 = vmatprep.subr.bf16.mxu1 %v2696_v44 }
 0x2e6   :  { %2290 = vmatpush1.bf16.msra.mxu1 %v2716_v49 }
 0x2e7   :  { %2292 = vmatprep.subr.bf16.mxu1 %v2720_v51 }
 0x2ea   :  { %2294 = vmatpush1.bf16.msra.mxu1 %v2738_v56 }
 0x2eb   :  { %2296 = vmatprep.subr.bf16.mxu1 %v2741_v57 }
 0x2ee   :  { %2298 = vmatpush1.bf16.msra.mxu1 %v2752_v60 }
 0x2ef   :  { %2316 = vmatprep.subr.bf16.mxu1 %v2666_v27 }
 0x3b4   :  { %v598_v8 = vpop.f32.mrb[2].mxu1 }
 0x3b5   :  { %v605_v10 = vadd.f32 %v604_v9, %v598_v8  ;;  %v600_v11 = vpop.f32.mrb[3].mxu1 }
 0x3b6   :  { %v632_v13 = vadd.f32 %v631_v12, %v600_v11 }
 0x3b7   :  { %2416 = vtanh.f32 %v605_v10  ;;  %v2091_v16 = vmul.f32 -1.442695, %v605_v10 }
 0x3b8   :  { %2418 = vtanh.f32 %v632_v13  ;;  %v2092_v17 = vmul.f32 -1.442695, %v632_v13 }
 0x3b9   :  { %2420 = vpow2.f32 %v2091_v16 }
 0x3ba   :  { %2422 = vpow2.f32 %v2092_v17 }
 0x3c1   :  { %v2417_v14 = vpop.eup %2416 }
 0x3c2   :  { %v2419_v15 = vpop.eup %2418  ;;  %615 = vrot.lane.b32.xlu0 %v2417_v14, %s2554_s4 }
 0x3c3   :  { %642 = vrot.lane.b32.xlu1 %v2419_v15, %s2554_s4  ;;  %v2421_v18 = vpop.eup %2420 }
 0x3c4   :  { %v2423_v19 = vpop.eup %2422  ;;  %v609_v20 = vadd.f32 1.0, %v2421_v18 }
 0x3c5   :  { %v636_v21 = vadd.f32 1.0, %v2423_v19 }
 0x3c6   :  { %2424 = vrcp.f32 %v609_v20 }
 0x3c7   :  { %2426 = vrcp.f32 %v636_v21 }
 0x3d0   :  { %v2425_v22 = vpop.eup %2424 }
 0x3d1   :  { %v2427_v24 = vpop.eup %2426  ;;  %v613_v30 = vmul.f32 %v2425_v22, %v479_v58 }
 0x3d2   :  { %v640_v32 = vmul.f32 %v2427_v24, %v506_v62 }
 0x434   :  { %v616_v23 = vpop.permute.xlu0 %615 }
 0x435   :  { %v618_v25 = vmul.f32 %v2425_v22, %v616_v23  ;;  %v643_v28 = vpop.permute.xlu1 %642 }
 0x436   :  { %v645_v29 = vmul.f32 %v2427_v24, %v643_v28  ;;  %v892_v28 = vld [vmem:[#allocation2 + $0x6] sm:$0x3] }
 0x437   :  { %620 = vrot.lane.b32.xlu0 %v618_v25, %s2555_s5 }
 0x438   :  { %647 = vrot.lane.b32.xlu1 %v645_v29, %s2555_s5 }
 0x4a9   :  { %v621_v31 = vpop.permute.xlu0 %620 }
 0x4aa   :  { %v623_v33 = vadd.f32 %v621_v31, %v613_v30  ;;  %v648_v34 = vpop.permute.xlu1 %647  ;;  %v919_v31 = vld [vmem:[#allocation3 + $0x8] sm:$0x3] }
 0x4ab   :  { %v650_v35 = vadd.f32 %v648_v34, %v640_v32 }
 0x4ac   :  { %2428 = vtanh.f32 %v623_v33 }
 0x4ad   :  { %2430 = vtanh.f32 %v650_v35 }
 0x4b6   :  { %v2429_v36 = vpop.eup %2428 }
 0x4b7   :  { %v2431_v37 = vpop.eup %2430  ;;  %626 = vrot.lane.b32.xlu0 %v2429_v36, %s2554_s4 }
 0x4b8   :  { %653 = vrot.lane.b32.xlu1 %v2431_v37, %s2554_s4 }
 0x529   :  { %v627_v38 = vpop.permute.xlu0 %626 }
 0x52a   :  { %v629_v39 = vmul.f32 %v2425_v22, %v627_v38  ;;  %v654_v40 = vpop.permute.xlu1 %653 }
 0x52b   :  { %v2814_v41 = vmul.f32 %v2427_v24, %v654_v40 }
 0x52c   :  { %658 = vrot.lane.b32.xlu0 %v629_v39, %s2555_s5 }
 0x52d   :  { %669 = vrot.lane.b32.xlu1 %v2814_v41, %s2554_s4 }
 0x59e   :  { %v659_v43 = vpop.permute.xlu0 %658 }
 0x59f   :  { %662 = vst.msk [vmem:[#allocation4 + $0x2] sm:$0x3] %vm517_vm1, %v659_v43  ;;  %v670_v45 = vpop.permute.xlu1 %669 }
 0x5a0   :  { %v672_v46 = vsel %vm99_vm0, %v659_v43, %v670_v45 }
 0x5a1   :  { %2093 = vmatmul.mubr.msk.f32.vlgmr.msra.gmra.mrb[4].mxu0 %vm385_vm2, %v672_v46 }
 0x5a2   :  { %2302 = vmatpush1.bf16.msra.mxu0 %v2694_v42  ;;  %1028 = vmatprep.mubr.f32.mxu0 %v2553_v50 }
 0x5a3   :  { %2304 = vmatprep.subr.bf16.mxu0 %v2696_v44 }
 0x5a6   :  { %2306 = vmatpush1.bf16.msra.mxu0 %v2716_v49 }
 0x5a7   :  { %2308 = vmatprep.subr.bf16.mxu0 %v2720_v51 }
 0x5aa   :  { %2310 = vmatpush1.bf16.msra.mxu0 %v2738_v56 }
 0x5ab   :  { %2312 = vmatprep.subr.bf16.mxu0 %v2741_v57 }
 0x5ae   :  { %2314 = vmatpush1.bf16.msra.mxu0 %v2752_v60 }
 0x5af   :  { %2332 = vmatprep.subr.bf16.mxu0 %v2666_v27 }
 0x674   :  { %v742_v47 = vpop.f32.mrb[4].mxu0 }
 0x675   :  { %v749_v52 = vadd.f32 %v748_v48, %v742_v47  ;;  %v744_v53 = vpop.f32.mrb[5].mxu0 }
 0x676   :  { %v776_v55 = vadd.f32 %v775_v54, %v744_v53 }
 0x677   :  { %2432 = vtanh.f32 %v749_v52  ;;  %v2094_v61 = vmul.f32 -1.442695, %v749_v52 }
 0x678   :  { %2434 = vtanh.f32 %v776_v55  ;;  %v2095_v62 = vmul.f32 -1.442695, %v776_v55 }
 0x679   :  { %2436 = vpow2.f32 %v2094_v61 }
 0x67a   :  { %2438 = vpow2.f32 %v2095_v62 }
 0x681   :  { %v2433_v58 = vpop.eup %2432 }
 0x682   :  { %v2435_v59 = vpop.eup %2434  ;;  %759 = vrot.lane.b32.xlu0 %v2433_v58, %s2554_s4 }
 0x683   :  { %786 = vrot.lane.b32.xlu1 %v2435_v59, %s2554_s4  ;;  %v2437_v63 = vpop.eup %2436 }
 0x684   :  { %v2439_v0 = vpop.eup %2438  ;;  %v753_v1 = vadd.f32 1.0, %v2437_v63 }
 0x685   :  { %v780_v2 = vadd.f32 1.0, %v2439_v0 }
 0x686   :  { %2440 = vrcp.f32 %v753_v1 }
 0x687   :  { %2442 = vrcp.f32 %v780_v2 }
 0x690   :  { %v2441_v3 = vpop.eup %2440 }
 0x691   :  { %v2443_v6 = vpop.eup %2442  ;;  %v757_v10 = vmul.f32 %v2441_v3, %v623_v33 }
 0x692   :  { %v784_v12 = vmul.f32 %v2443_v6, %v650_v35 }
 0x6f4   :  { %v760_v5 = vpop.permute.xlu0 %759 }
 0x6f5   :  { %v762_v7 = vmul.f32 %v2441_v3, %v760_v5  ;;  %v787_v8 = vpop.permute.xlu1 %786 }
 0x6f6   :  { %v789_v9 = vmul.f32 %v2443_v6, %v787_v8  ;;  %v1036_v8 = vld [vmem:[#allocation2 + $0x8] sm:$0x3] }
 0x6f7   :  { %764 = vrot.lane.b32.xlu0 %v762_v7, %s2555_s5 }
 0x6f8   :  { %791 = vrot.lane.b32.xlu1 %v789_v9, %s2555_s5 }
 0x769   :  { %v765_v11 = vpop.permute.xlu0 %764 }
 0x76a   :  { %v767_v13 = vadd.f32 %v765_v11, %v757_v10  ;;  %v792_v14 = vpop.permute.xlu1 %791  ;;  %v1063_v11 = vld [vmem:[#allocation3 + $0x6] sm:$0x3] }
 0x76b   :  { %v794_v15 = vadd.f32 %v792_v14, %v784_v12 }
 0x76c   :  { %2444 = vtanh.f32 %v767_v13 }
 0x76d   :  { %2446 = vtanh.f32 %v794_v15 }
 0x776   :  { %v2445_v16 = vpop.eup %2444 }
 0x777   :  { %v2447_v17 = vpop.eup %2446  ;;  %770 = vrot.lane.b32.xlu0 %v2445_v16, %s2554_s4 }
 0x778   :  { %797 = vrot.lane.b32.xlu1 %v2447_v17, %s2554_s4 }
 0x7e9   :  { %v771_v18 = vpop.permute.xlu0 %770 }
 0x7ea   :  { %v773_v19 = vmul.f32 %v2441_v3, %v771_v18  ;;  %v798_v20 = vpop.permute.xlu1 %797 }
 0x7eb   :  { %v2837_v21 = vmul.f32 %v2443_v6, %v798_v20 }
 0x7ec   :  { %802 = vrot.lane.b32.xlu0 %v773_v19, %s2555_s5 }
 0x7ed   :  { %813 = vrot.lane.b32.xlu1 %v2837_v21, %s2554_s4 }
 0x85e   :  { %v803_v22 = vpop.permute.xlu0 %802 }
 0x85f   :  { %806 = vst.msk [vmem:[#allocation4 + $0x4] sm:$0x3] %vm517_vm1, %v803_v22  ;;  %v814_v23 = vpop.permute.xlu1 %813 }
 0x860   :  { %v816_v24 = vsel %vm99_vm0, %v803_v22, %v814_v23 }
 0x861   :  { %2096 = vmatmul.mubr.msk.f32.vlgmr.msra.gmra.mrb[4].mxu1 %vm385_vm2, %v816_v24 }
 0x862   :  { %2318 = vmatpush1.bf16.msra.mxu1 %v2694_v42  ;;  %1172 = vmatprep.mubr.f32.mxu1 %v2553_v50 }
 0x863   :  { %2320 = vmatprep.subr.bf16.mxu1 %v2696_v44 }
 0x866   :  { %2322 = vmatpush1.bf16.msra.mxu1 %v2716_v49 }
 0x867   :  { %2324 = vmatprep.subr.bf16.mxu1 %v2720_v51 }
 0x86a   :  { %2326 = vmatpush1.bf16.msra.mxu1 %v2738_v56 }
 0x86b   :  { %2328 = vmatprep.subr.bf16.mxu1 %v2741_v57 }
 0x86e   :  { %2330 = vmatpush1.bf16.msra.mxu1 %v2752_v60 }
 0x86f   :  { %2348 = vmatprep.subr.bf16.mxu1 %v2666_v27 }
 0x934   :  { %v886_v25 = vpop.f32.mrb[4].mxu1 }
 0x935   :  { %v893_v29 = vadd.f32 %v892_v28, %v886_v25  ;;  %v888_v30 = vpop.f32.mrb[5].mxu1 }
 0x936   :  { %v920_v32 = vadd.f32 %v919_v31, %v888_v30 }
 0x937   :  { %2448 = vtanh.f32 %v893_v29  ;;  %v2097_v35 = vmul.f32 -1.442695, %v893_v29 }
 0x938   :  { %2450 = vtanh.f32 %v920_v32  ;;  %v2098_v36 = vmul.f32 -1.442695, %v920_v32 }
 0x939   :  { %2452 = vpow2.f32 %v2097_v35 }
 0x93a   :  { %2454 = vpow2.f32 %v2098_v36 }
 0x941   :  { %v2449_v33 = vpop.eup %2448 }
 0x942   :  { %v2451_v34 = vpop.eup %2450  ;;  %903 = vrot.lane.b32.xlu0 %v2449_v33, %s2554_s4 }
 0x943   :  { %930 = vrot.lane.b32.xlu1 %v2451_v34, %s2554_s4  ;;  %v2453_v37 = vpop.eup %2452 }
 0x944   :  { %v2455_v27 = vpop.eup %2454  ;;  %v897_v38 = vadd.f32 1.0, %v2453_v37 }
 0x945   :  { %v924_v39 = vadd.f32 1.0, %v2455_v27 }
 0x946   :  { %2456 = vrcp.f32 %v897_v38 }
 0x947   :  { %2458 = vrcp.f32 %v924_v39 }
 0x950   :  { %v2457_v40 = vpop.eup %2456 }
 0x951   :  { %v2459_v45 = vpop.eup %2458  ;;  %v901_v52 = vmul.f32 %v2457_v40, %v767_v13 }
 0x952   :  { %v928_v54 = vmul.f32 %v2459_v45, %v794_v15 }
 0x9b4   :  { %v904_v43 = vpop.permute.xlu0 %903 }
 0x9b5   :  { %v906_v46 = vmul.f32 %v2457_v40, %v904_v43  ;;  %v931_v47 = vpop.permute.xlu1 %930 }
 0x9b6   :  { %v933_v48 = vmul.f32 %v2459_v45, %v931_v47 }
 0x9b7   :  { %908 = vrot.lane.b32.xlu0 %v906_v46, %s2555_s5 }
 0x9b8   :  { %935 = vrot.lane.b32.xlu1 %v933_v48, %s2555_s5  ;;  %v1180_v48 = vld [vmem:[#allocation2 + $0xa] sm:$0x3] }
 0xa29   :  { %v909_v53 = vpop.permute.xlu0 %908 }
 0xa2a   :  { %v911_v55 = vadd.f32 %v909_v53, %v901_v52  ;;  %v936_v58 = vpop.permute.xlu1 %935 }
 0xa2b   :  { %v938_v59 = vadd.f32 %v936_v58, %v928_v54  ;;  %v1207_v54 = vld [vmem:[#allocation3 + $0x4] sm:$0x3] }
 0xa2c   :  { %2460 = vtanh.f32 %v911_v55 }
 0xa2d   :  { %2462 = vtanh.f32 %v938_v59 }
 0xa36   :  { %v2461_v61 = vpop.eup %2460 }
 0xa37   :  { %v2463_v62 = vpop.eup %2462  ;;  %914 = vrot.lane.b32.xlu0 %v2461_v61, %s2554_s4 }
 0xa38   :  { %941 = vrot.lane.b32.xlu1 %v2463_v62, %s2554_s4 }
 0xaa9   :  { %v915_v63 = vpop.permute.xlu0 %914 }
 0xaaa   :  { %v917_v0 = vmul.f32 %v2457_v40, %v915_v63  ;;  %v942_v1 = vpop.permute.xlu1 %941 }
 0xaab   :  { %v2860_v2 = vmul.f32 %v2459_v45, %v942_v1 }
 0xaac   :  { %946 = vrot.lane.b32.xlu0 %v917_v0, %s2555_s5 }
 0xaad   :  { %957 = vrot.lane.b32.xlu1 %v2860_v2, %s2554_s4 }
 0xb1e   :  { %v947_v3 = vpop.permute.xlu0 %946 }
 0xb1f   :  { %950 = vst.msk [vmem:[#allocation4 + $0x6] sm:$0x3] %vm517_vm1, %v947_v3  ;;  %v958_v5 = vpop.permute.xlu1 %957 }
 0xb20   :  { %v960_v6 = vsel %vm99_vm0, %v947_v3, %v958_v5 }
 0xb21   :  { %2099 = vmatmul.mubr.msk.f32.vlgmr.msra.gmra.mrb[6].mxu0 %vm385_vm2, %v960_v6 }
 0xb22   :  { %2334 = vmatpush1.bf16.msra.mxu0 %v2694_v42  ;;  %1316 = vmatprep.mubr.f32.mxu0 %v2553_v50 }
 0xb23   :  { %2336 = vmatprep.subr.bf16.mxu0 %v2696_v44 }
 0xb26   :  { %2338 = vmatpush1.bf16.msra.mxu0 %v2716_v49 }
 0xb27   :  { %2340 = vmatprep.subr.bf16.mxu0 %v2720_v51 }
 0xb2a   :  { %2342 = vmatpush1.bf16.msra.mxu0 %v2738_v56 }
 0xb2b   :  { %2344 = vmatprep.subr.bf16.mxu0 %v2741_v57 }
 0xb2e   :  { %2346 = vmatpush1.bf16.msra.mxu0 %v2752_v60 }
 0xbf4   :  { %v1030_v7 = vpop.f32.mrb[6].mxu0 }
 0xbf5   :  { %v1037_v9 = vadd.f32 %v1036_v8, %v1030_v7  ;;  %v1032_v10 = vpop.f32.mrb[7].mxu0 }
 0xbf6   :  { %v1064_v12 = vadd.f32 %v1063_v11, %v1032_v10 }
 0xbf7   :  { %2464 = vtanh.f32 %v1037_v9  ;;  %v2100_v15 = vmul.f32 -1.442695, %v1037_v9 }
 0xbf8   :  { %2466 = vtanh.f32 %v1064_v12  ;;  %v2101_v16 = vmul.f32 -1.442695, %v1064_v12 }
 0xbf9   :  { %2468 = vpow2.f32 %v2100_v15 }
 0xbfa   :  { %2470 = vpow2.f32 %v2101_v16 }
 0xc01   :  { %v2465_v13 = vpop.eup %2464 }
 0xc02   :  { %v2467_v14 = vpop.eup %2466  ;;  %1047 = vrot.lane.b32.xlu0 %v2465_v13, %s2554_s4 }
 0xc03   :  { %1074 = vrot.lane.b32.xlu1 %v2467_v14, %s2554_s4  ;;  %v2469_v17 = vpop.eup %2468 }
 0xc04   :  { %v2471_v18 = vpop.eup %2470  ;;  %v1041_v19 = vadd.f32 1.0, %v2469_v17 }
 0xc05   :  { %v1068_v20 = vadd.f32 1.0, %v2471_v18 }
 0xc06   :  { %2472 = vrcp.f32 %v1041_v19 }
 0xc07   :  { %2474 = vrcp.f32 %v1068_v20  ;;  %v1324_v20 = vld [vmem:[#allocation2 + $0xc] sm:$0x3] }
 0xc10   :  { %v2473_v22 = vpop.eup %2472 }
 0xc11   :  { %v2475_v24 = vpop.eup %2474  ;;  %v1045_v30 = vmul.f32 %v2473_v22, %v911_v55 }
 0xc12   :  { %v1072_v32 = vmul.f32 %v2475_v24, %v938_v59 }
 0xc74   :  { %v1048_v23 = vpop.permute.xlu0 %1047 }
 0xc75   :  { %v1050_v25 = vmul.f32 %v2473_v22, %v1048_v23  ;;  %v1075_v28 = vpop.permute.xlu1 %1074 }
 0xc76   :  { %v1077_v29 = vmul.f32 %v2475_v24, %v1075_v28 }
 0xc77   :  { %1052 = vrot.lane.b32.xlu0 %v1050_v25, %s2555_s5 }
 0xc78   :  { %1079 = vrot.lane.b32.xlu1 %v1077_v29, %s2555_s5 }
 0xce9   :  { %v1053_v31 = vpop.permute.xlu0 %1052 }
 0xcea   :  { %v1055_v33 = vadd.f32 %v1053_v31, %v1045_v30  ;;  %v1080_v34 = vpop.permute.xlu1 %1079 }
 0xceb   :  { %v1082_v35 = vadd.f32 %v1080_v34, %v1072_v32 }
 0xcec   :  { %2476 = vtanh.f32 %v1055_v33 }
 0xced   :  { %2478 = vtanh.f32 %v1082_v35 }
 0xcf6   :  { %v2477_v36 = vpop.eup %2476 }
 0xcf7   :  { %v2479_v37 = vpop.eup %2478  ;;  %1058 = vrot.lane.b32.xlu0 %v2477_v36, %s2554_s4 }
 0xcf8   :  { %1085 = vrot.lane.b32.xlu1 %v2479_v37, %s2554_s4 }
 0xd69   :  { %v1059_v27 = vpop.permute.xlu0 %1058 }
 0xd6a   :  { %v1061_v38 = vmul.f32 %v2473_v22, %v1059_v27  ;;  %v1086_v39 = vpop.permute.xlu1 %1085 }
 0xd6b   :  { %v2882_v40 = vmul.f32 %v2475_v24, %v1086_v39  ;;  %v1351_v24 = vld [vmem:[#allocation3 + $0x2] sm:$0x3] }
 0xd6c   :  { %1090 = vrot.lane.b32.xlu0 %v1061_v38, %s2555_s5 }
 0xd6d   :  { %1101 = vrot.lane.b32.xlu1 %v2882_v40, %s2554_s4 }
 0xdde   :  { %v1091_v43 = vpop.permute.xlu0 %1090 }
 0xddf   :  { %1094 = vst.msk [vmem:[#allocation4 + $0x8] sm:$0x3] %vm517_vm1, %v1091_v43  ;;  %v1102_v45 = vpop.permute.xlu1 %1101 }
 0xde0   :  { %v1104_v46 = vsel %vm99_vm0, %v1091_v43, %v1102_v45 }
 0xde1   :  { %2102 = vmatmul.mubr.msk.f32.vlgmr.msra.gmra.mrb[6].mxu1 %vm385_vm2, %v1104_v46 }
 0xde2   :  { %2350 = vmatpush1.bf16.msra.mxu1 %v2694_v42  ;;  %1460 = vmatprep.mubr.f32.mxu1 %v2553_v50 }
 0xde3   :  { %2352 = vmatprep.subr.bf16.mxu1 %v2696_v44 }
 0xde6   :  { %2354 = vmatpush1.bf16.msra.mxu1 %v2716_v49 }
 0xde7   :  { %2356 = vmatprep.subr.bf16.mxu1 %v2720_v51 }
 0xdea   :  { %2358 = vmatpush1.bf16.msra.mxu1 %v2738_v56 }
 0xdeb   :  { %2360 = vmatprep.subr.bf16.mxu1 %v2741_v57 }
 0xdee   :  { %2362 = vmatpush1.bf16.msra.mxu1 %v2752_v60 }
 0xeb4   :  { %v1174_v47 = vpop.f32.mrb[6].mxu1 }
 0xeb5   :  { %v1181_v52 = vadd.f32 %v1180_v48, %v1174_v47  ;;  %v1176_v53 = vpop.f32.mrb[7].mxu1 }
 0xeb6   :  { %v1208_v42 = vadd.f32 %v1207_v54, %v1176_v53 }
 0xeb7   :  { %2480 = vtanh.f32 %v1181_v52  ;;  %v2103_v49 = vmul.f32 -1.442695, %v1181_v52 }
 0xeb8   :  { %2482 = vtanh.f32 %v1208_v42  ;;  %v2104_v51 = vmul.f32 -1.442695, %v1208_v42 }
 0xeb9   :  { %2484 = vpow2.f32 %v2103_v49 }
 0xeba   :  { %2486 = vpow2.f32 %v2104_v51 }
 0xec1   :  { %v2481_v55 = vpop.eup %2480 }
 0xec2   :  { %v2483_v44 = vpop.eup %2482  ;;  %1191 = vrot.lane.b32.xlu0 %v2481_v55, %s2554_s4 }
 0xec3   :  { %1218 = vrot.lane.b32.xlu1 %v2483_v44, %s2554_s4  ;;  %v2485_v56 = vpop.eup %2484 }
 0xec4   :  { %v2487_v57 = vpop.eup %2486  ;;  %v1185_v60 = vadd.f32 1.0, %v2485_v56 }
 0xec5   :  { %v1212_v58 = vadd.f32 1.0, %v2487_v57 }
 0xec6   :  { %2488 = vrcp.f32 %v1185_v60 }
 0xec7   :  { %2490 = vrcp.f32 %v1212_v58 }
 0xed0   :  { %v2489_v59 = vpop.eup %2488 }
 0xed1   :  { %v2491_v62 = vpop.eup %2490  ;;  %v1189_v3 = vmul.f32 %v2489_v59, %v1055_v33 }
 0xed2   :  { %v1216_v6 = vmul.f32 %v2491_v62, %v1082_v35 }
 0xf34   :  { %v1192_v61 = vpop.permute.xlu0 %1191 }
 0xf35   :  { %v1194_v63 = vmul.f32 %v2489_v59, %v1192_v61  ;;  %v1219_v0 = vpop.permute.xlu1 %1218 }
 0xf36   :  { %v1221_v1 = vmul.f32 %v2491_v62, %v1219_v0 }
 0xf37   :  { %1196 = vrot.lane.b32.xlu0 %v1194_v63, %s2555_s5  ;;  %v1494_v63 = vld [vmem:[#allocation3] sm:$0x3] }
 0xf38   :  { %1223 = vrot.lane.b32.xlu1 %v1221_v1, %s2555_s5 }
 0xfa9   :  { %v1197_v5 = vpop.permute.xlu0 %1196 }
 0xfaa   :  { %v1199_v7 = vadd.f32 %v1197_v5, %v1189_v3  ;;  %v1224_v8 = vpop.permute.xlu1 %1223 }
 0xfab   :  { %v1226_v9 = vadd.f32 %v1224_v8, %v1216_v6 }
 0xfac   :  { %2492 = vtanh.f32 %v1199_v7 }
 0xfad   :  { %2494 = vtanh.f32 %v1226_v9 }
 0xfb6   :  { %v2493_v10 = vpop.eup %2492 }
 0xfb7   :  { %v2495_v11 = vpop.eup %2494  ;;  %1202 = vrot.lane.b32.xlu0 %v2493_v10, %s2554_s4 }
 0xfb8   :  { %1229 = vrot.lane.b32.xlu1 %v2495_v11, %s2554_s4 }
0x1029   :  { %v1203_v12 = vpop.permute.xlu0 %1202 }
0x102a   :  { %v1205_v13 = vmul.f32 %v2489_v59, %v1203_v12  ;;  %v1230_v14 = vpop.permute.xlu1 %1229  ;;  %v1468_v59 = vld [vmem:[#allocation2 + $0xe] sm:$0x3] }
0x102b   :  { %v2904_v15 = vmul.f32 %v2491_v62, %v1230_v14 }
0x102c   :  { %1234 = vrot.lane.b32.xlu0 %v1205_v13, %s2555_s5 }
0x102d   :  { %1245 = vrot.lane.b32.xlu1 %v2904_v15, %s2554_s4 }
0x109e   :  { %v1235_v16 = vpop.permute.xlu0 %1234 }
0x109f   :  { %1238 = vst.msk [vmem:[#allocation4 + $0xa] sm:$0x3] %vm517_vm1, %v1235_v16  ;;  %v1246_v17 = vpop.permute.xlu1 %1245 }
0x10a0   :  { %v1248_v18 = vsel %vm99_vm0, %v1235_v16, %v1246_v17 }
0x10a1   :  { %2105 = vmatmul.mubr.msk.f32.vlgmr.msra.gmra.mrb[8].mxu0 %vm385_vm2, %v1248_v18 }
0x1174   :  { %v1318_v19 = vpop.f32.mrb[8].mxu0 }
0x1175   :  { %v1325_v22 = vadd.f32 %v1324_v20, %v1318_v19  ;;  %v1320_v23 = vpop.f32.mrb[9].mxu0 }
0x1176   :  { %v1352_v25 = vadd.f32 %v1351_v24, %v1320_v23 }
0x1177   :  { %2496 = vtanh.f32 %v1325_v22  ;;  %v2106_v30 = vmul.f32 -1.442695, %v1325_v22 }
0x1178   :  { %2498 = vtanh.f32 %v1352_v25  ;;  %v2107_v31 = vmul.f32 -1.442695, %v1352_v25 }
0x1179   :  { %2500 = vpow2.f32 %v2106_v30  ;;  %v1552_v30 = vld [vmem:[%s3103_s6 + $0x28] sm:$0xff] }
0x117a   :  { %2502 = vpow2.f32 %v2107_v31 }
0x1181   :  { %v2497_v28 = vpop.eup %2496 }
0x1182   :  { %v2499_v29 = vpop.eup %2498  ;;  %1335 = vrot.lane.b32.xlu0 %v2497_v28, %s2554_s4 }
0x1183   :  { %1362 = vrot.lane.b32.xlu1 %v2499_v29, %s2554_s4  ;;  %v2501_v32 = vpop.eup %2500  ;;  %v1551_v29 = vld [vmem:[%s3103_s6 + $0x20] sm:$0xff] }
0x1184   :  { %v2503_v33 = vpop.eup %2502  ;;  %v1329_v34 = vadd.f32 1.0, %v2501_v32  ;;  %v2363_v31 = vpack.c.bf16 %v1552_v30, %v1551_v29 }
0x1185   :  { %v1356_v35 = vadd.f32 1.0, %v2503_v33 }
0x1186   :  { %2504 = vrcp.f32 %v1329_v34  ;;  %2364 = vmatprep.subr.bf16.mxu0 %v2363_v31 }
0x1187   :  { %2506 = vrcp.f32 %v1356_v35  ;;  %2366 = vmatpush3.bf16.msra.mxu0 %v2363_v31  ;;  %v1554_v35 = vld [vmem:[%s3103_s6 + $0x38] sm:$0xff]  ;;  %v1549_v31 = vld [vmem:[%s3103_s6 + $0x10] sm:$0xff] }
0x1190   :  { %v2505_v36 = vpop.eup %2504 }
0x1191   :  { %v2507_v27 = vpop.eup %2506  ;;  %v1333_v45 = vmul.f32 %v2505_v36, %v1199_v7 }
0x1192   :  { %v1360_v47 = vmul.f32 %v2507_v27, %v1226_v9 }
0x11f4   :  { %v1336_v37 = vpop.permute.xlu0 %1335 }
0x11f5   :  { %v1338_v38 = vmul.f32 %v2505_v36, %v1336_v37  ;;  %v1363_v39 = vpop.permute.xlu1 %1362  ;;  %v1896_v37 = vld [vmem:[%s3105_s8 + $0x20] sm:$0xff] }
0x11f6   :  { %v1365_v43 = vmul.f32 %v2507_v27, %v1363_v39  ;;  %v1547_v39 = vld [vmem:[%s3103_s6] sm:$0xff] }
0x11f7   :  { %1340 = vrot.lane.b32.xlu0 %v1338_v38, %s2555_s5 }
0x11f8   :  { %1367 = vrot.lane.b32.xlu1 %v1365_v43, %s2555_s5  ;;  %v1548_v43 = vld [vmem:[%s3103_s6 + $0x8] sm:$0xff] }
0x1269   :  { %v1341_v46 = vpop.permute.xlu0 %1340 }
0x126a   :  { %v1343_v48 = vadd.f32 %v1341_v46, %v1333_v45  ;;  %v1368_v52 = vpop.permute.xlu1 %1367  ;;  %v2556_v46 = vmov 0.0|0.0  }
0x126b   :  { %v1370_v53 = vadd.f32 %v1368_v52, %v1360_v47  ;;  %2379 = vmatprep.subr.bf16.mxu1 %v2556_v46  ;;  %v2969_v47 = vpack.c.bf16 %v1548_v43, %v1547_v39 }
0x126c   :  { %2508 = vtanh.f32 %v1343_v48 }
0x126d   :  { %2510 = vtanh.f32 %v1370_v53 }
0x1276   :  { %v2509_v54 = vpop.eup %2508 }
0x1277   :  { %v2511_v42 = vpop.eup %2510  ;;  %1346 = vrot.lane.b32.xlu0 %v2509_v54, %s2554_s4 }
0x1278   :  { %1373 = vrot.lane.b32.xlu1 %v2511_v42, %s2554_s4 }
0x12e9   :  { %v1347_v55 = vpop.permute.xlu0 %1346 }
0x12ea   :  { %v1349_v44 = vmul.f32 %v2505_v36, %v1347_v55  ;;  %v1374_v49 = vpop.permute.xlu1 %1373 }
0x12eb   :  { %v1376_v51 = vmul.f32 %v2507_v27, %v1374_v49  ;;  %v1897_v27 = vld [vmem:[%s3105_s8 + $0x28] sm:$0xff] }
0x12ec   :  { %1378 = vrot.lane.b32.xlu0 %v1349_v44, %s2555_s5  ;;  %v2380_v38 = vpack.c.bf16 %v1897_v27, %v1896_v37 }
0x12ed   :  { %1389 = vrot.lane.b32.xlu1 %v1376_v51, %s2554_s4 }
0x135e   :  { %v1379_v56 = vpop.permute.xlu0 %1378 }
0x135f   :  { %1382 = vst.msk [vmem:[#allocation4 + $0xc] sm:$0x3] %vm517_vm1, %v1379_v56  ;;  %v1390_v57 = vpop.permute.xlu1 %1389 }
0x1360   :  { %v1392_v60 = vsel %vm99_vm0, %v1379_v56, %v1390_v57 }
0x1361   :  { %2108 = vmatmul.mubr.msk.f32.vlgmr.msra.gmra.mrb[8].mxu1 %vm385_vm2, %v1392_v60 }
0x1362   :  { %2381 = vmatpush3.bf16.msra.mxu1 %v2380_v38  ;;  %2205 = vmatprep.mubr.msk.f32.mxu1 %vm2557_vm3, %v2553_v50  ;;  %v1536_v38 = vld [vmem:[#allocation4 + $0xa] sm:$0x3] }
0x1363   :  { %2382 = vmatprep.subr.bf16.mxu1 %v2556_v46 }
0x1366   :  { %v1537_v39 = vld [vmem:[#allocation4 + $0xc] sm:$0x3] }
0x1434   :  { %v1462_v58 = vpop.f32.mrb[8].mxu1 }
0x1435   :  { %v1469_v61 = vadd.f32 %v1468_v59, %v1462_v58  ;;  %v1464_v62 = vpop.f32.mrb[9].mxu1 }
0x1436   :  { %v1495_v0 = vadd.f32 %v1494_v63, %v1464_v62 }
0x1437   :  { %2512 = vtanh.f32 %v1469_v61  ;;  %v2109_v5 = vmul.f32 -1.442695, %v1469_v61 }
0x1438   :  { %2514 = vtanh.f32 %v1495_v0  ;;  %v2110_v6 = vmul.f32 -1.442695, %v1495_v0 }
0x1439   :  { %2516 = vpow2.f32 %v2109_v5 }
0x143a   :  { %2518 = vpow2.f32 %v2110_v6 }
0x1441   :  { %v2513_v1 = vpop.eup %2512 }
0x1442   :  { %v2515_v3 = vpop.eup %2514  ;;  %1479 = vrot.lane.b32.xlu1 %v2513_v1, %s2554_s4 }
0x1443   :  { %1505 = vrot.lane.b32.xlu0 %v2515_v3, %s2554_s4  ;;  %v2517_v7 = vpop.eup %2516  ;;  %v1534_v3 = vld [vmem:[#allocation4 + $0x6] sm:$0x3] }
0x1444   :  { %v2519_v8 = vpop.eup %2518  ;;  %v1473_v9 = vadd.f32 1.0, %v2517_v7  ;;  %v1532_v7 = vld [vmem:[#allocation4 + $0x2] sm:$0x3] }
0x1445   :  { %v1499_v10 = vadd.f32 1.0, %v2519_v8 }
0x1446   :  { %2520 = vrcp.f32 %v1473_v9  ;;  %v1533_v9 = vld [vmem:[#allocation4 + $0x4] sm:$0x3] }
0x1447   :  { %2522 = vrcp.f32 %v1499_v10 }
0x1450   :  { %v2521_v11 = vpop.eup %2520 }
0x1451   :  { %v2523_v13 = vpop.eup %2522  ;;  %v1477_v18 = vmul.f32 %v2521_v11, %v1343_v48  ;;  %v1899_v48 = vld [vmem:[%s3105_s8 + $0x38] sm:$0xff] }
0x1452   :  { %v1503_v20 = vmul.f32 %v2523_v13, %v1370_v53 }
0x14b4   :  { %v1480_v12 = vpop.permute.xlu1 %1479 }
0x14b5   :  { %v1482_v14 = vmul.f32 %v2521_v11, %v1480_v12  ;;  %v1506_v16 = vpop.permute.xlu0 %1505  ;;  %v1685_v12 = vcombine.low %v1533_v9, %v1534_v3 }
0x14b6   :  { %v1508_v17 = vmul.f32 %v2523_v13, %v1506_v16  ;;  %v1860_v16 = vsel %vm517_vm1, %v1532_v7, 0.0 }
0x14b7   :  { %1484 = vrot.lane.b32.xlu1 %v1482_v14, %s2555_s5  ;;  %v1699_v30 = vrot.slane %v1685_v12, %v2664_v26 }
0x14b8   :  { %1510 = vrot.lane.b32.xlu0 %v1508_v17, %s2555_s5 }
0x1529   :  { %v1485_v19 = vpop.permute.xlu1 %1484 }
0x152a   :  { %v1487_v22 = vadd.f32 %v1485_v19, %v1477_v18  ;;  %v1511_v23 = vpop.permute.xlu0 %1510 }
0x152b   :  { %v1513_v24 = vadd.f32 %v1511_v23, %v1503_v20 }
0x152c   :  { %2524 = vtanh.f32 %v1487_v22 }
0x152d   :  { %2526 = vtanh.f32 %v1513_v24  ;;  %v1535_v24 = vld [vmem:[#allocation4 + $0x8] sm:$0x3] }
0x152e   :  { %v1866_v37 = vsel %vm517_vm1, %v1535_v24, 0.0 }
0x1536   :  { %v2525_v25 = vpop.eup %2524 }
0x1537   :  { %v2527_v28 = vpop.eup %2526  ;;  %1490 = vrot.lane.b32.xlu1 %v2525_v25, %s2554_s4 }
0x1538   :  { %1516 = vrot.lane.b32.xlu0 %v2527_v28, %s2554_s4  ;;  %v1862_v28 = vsel %vm517_vm1, %v1533_v9, 0.0 }
0x153b   :  { %1096 = vrot.lane.b32.xlu1 %v2882_v40, %s2555_s5 }
0x153c   :  { %1384 = vrot.lane.b32.xlu0 %v1376_v51, %s2555_s5 }
0x1540   :  { %1240 = vrot.lane.b32.xlu0 %v2904_v15, %s2555_s5  ;;  %v1553_v15 = vld [vmem:[%s3103_s6 + $0x30] sm:$0xff] }
0x1541   :  { %v2367_v36 = vpack.c.bf16 %v1554_v35, %v1553_v15 }
0x1543   :  { %2368 = vmatprep.subr.bf16.mxu0 %v2367_v36 }
0x1544   :  { %520 = vrot.lane.b32.xlu0 %v2792_v4, %s2555_s5  ;;  %2370 = vmatpush3.bf16.msra.mxu0 %v2367_v36 }
0x1545   :  { %2372 = vmatprep.subr.bf16.mxu0 %v2969_v47 }
0x1548   :  { %808 = vrot.lane.b32.xlu0 %v2837_v21, %s2555_s5 }
0x15a9   :  { %v1491_v40 = vpop.permute.xlu1 %1490 }
0x15aa   :  { %v1493_v32 = vmul.f32 %v2521_v11, %v1491_v40  ;;  %v1517_v33 = vpop.permute.xlu0 %1516  ;;  %v1531_v11 = vld [vmem:[#allocation4] sm:$0x3] }
0x15ab   :  { %v1519_v34 = vmul.f32 %v2523_v13, %v1517_v33  ;;  %v1684_v20 = vcombine.low %v1531_v11, %v1532_v7  ;;  %v1859_v25 = vsel %vm517_vm1, %v1531_v11, 0.0 }
0x15ac   :  { %1521 = vrot.lane.b32.xlu0 %v1493_v32, %s2555_s5  ;;  %v1861_v40 = vadd.f32 %v1860_v16, %v1859_v25  ;;  %v1550_v32 = vld [vmem:[%s3103_s6 + $0x18] sm:$0xff] }
0x15ad   :  { %v1097_v4 = vpop.permute.xlu1 %1096  ;;  %1527 = vrot.lane.b32.xlu1 %v1519_v34, %s2555_s5  ;;  %v1692_v35 = vrot.slane %v1684_v20, %v2664_v26 }
0x15ae   :  { %1100 = vst.msk [vmem:[#allocation5 + $0x6] sm:$0x3] %vm517_vm1, %v1097_v4  ;;  %v1385_v21 = vpop.permute.xlu0 %1384  ;;  %v1863_v36 = vadd.f32 %v1862_v28, %v1861_v40 }
0x15af   :  { %1388 = vst.msk [vmem:[#allocation5 + $0x2] sm:$0x3] %vm517_vm1, %v1385_v21  ;;  %v1864_v21 = vsel %vm517_vm1, %v1534_v3, 0.0 }
0x15b1   :  { %664 = vrot.lane.b32.xlu1 %v2814_v41, %s2555_s5  ;;  %v1898_v41 = vld [vmem:[%s3105_s8 + $0x30] sm:$0xff] }
0x15b2   :  { %v1241_v45 = vpop.permute.xlu0 %1240  ;;  %v2383_v52 = vpack.c.bf16 %v1899_v48, %v1898_v41 }
0x15b3   :  { %1244 = vst.msk [vmem:[#allocation5 + $0x4] sm:$0x3] %vm517_vm1, %v1241_v45  ;;  %v2375_v45 = vpack.c.bf16 %v1550_v32, %v1549_v31 }
0x15b4   :  { %2384 = vmatpush3.bf16.msra.mxu1 %v2383_v52  ;;  %v1700_v52 = vcombine.low %v1692_v35, %v1699_v30 }
0x15b5   :  { %952 = vrot.lane.b32.xlu1 %v2860_v2, %s2555_s5  ;;  %2385 = vmatprep.subr.bf16.mxu1 %v2556_v46  ;;  %v1542_v51 = vld [vmem:[#allocation5 + $0x6] sm:$0x3]  ;;  %s2528_s5 = scalar_lea.vmem %s2065_s30, 32 }
0x15b6   :  { %v521_v53 = vpop.permute.xlu0 %520  ;;  %v1540_v49 = vld [vmem:[#allocation5 + $0x2] sm:$0x3]  ;;  %v1881_v13 = vsel %vm517_vm1, %v1542_v51, 0.0  ;;  %p2529_p0 = scmp.ne.s32.totalorder %s2065_s30, %s2528_s5  ;;  %p2534_p2 = scmp.lt.s32.totalorder %s2528_s5, %s2528_s5 }
0x15b7   :  { %524 = vst.msk [vmem:[#allocation5 + $0xe] sm:$0x3] %vm517_vm1, %v521_v53  ;;  %v1877_v61 = vsel %vm517_vm1, %v1540_v49, 0.0  ;;  %v1865_v53 = vadd.f32 %v1864_v21, %v1863_v36 }
0x15b8   :  { %p2535_p3 = por %p2534_p2, %p2533_p1 }
0x15ba   :  { %v809_v54 = vpop.permute.xlu0 %808  ;;  %v1541_v44 = vld [vmem:[#allocation5 + $0x4] sm:$0x3]  ;;  %p2536_p4 = pnand %p2535_p3, %p2529_p0 }
0x15bb   :  { %812 = vst.msk [vmem:[#allocation5 + $0xa] sm:$0x3] %vm517_vm1, %v809_v54  ;;  %v1564_v56 = vcombine.low %v1541_v44, %v1542_v51  ;;  %v1879_v1 = vsel %vm517_vm1, %v1541_v44, 0.0  ;;  %v1701_v44 = vcombine.low %v1535_v24, %v1536_v38  ;;  %v1867_v51 = vadd.f32 %v1866_v37, %v1865_v53 }
0x15bd   :  { %v1578_v0 = vrot.slane %v1564_v56, %v2664_v26 }
0x15be   :  { %v1546_v10 = vld [vmem:[#allocation5 + $0xe] sm:$0x3] }
0x15c2   :  { %v1544_v19 = vld [vmem:[#allocation5 + $0xa] sm:$0x3] }
0x15c3   :  { %v1885_v15 = vsel %vm517_vm1, %v1544_v19, 0.0 }
0x161e   :  { %v1522_v42 = vpop.permute.xlu0 %1521 }
0x161f   :  { %1525 = vst.msk [vmem:[#allocation4 + $0xe] sm:$0x3] %vm517_vm1, %v1522_v42  ;;  %v1528_v55 = vpop.permute.xlu1 %1527  ;;  %v1892_v42 = vld [vmem:[%s3105_s8] sm:$0xff] }
0x1620   :  { %1530 = vst.msk [vmem:[#allocation5] sm:$0x3] %vm517_vm1, %v1528_v55  ;;  %v1893_v55 = vld [vmem:[%s3105_s8 + $0x8] sm:$0xff] }
0x1623   :  { %v665_v2 = vpop.permute.xlu1 %664 }
0x1624   :  { %668 = vst.msk [vmem:[#allocation5 + $0xc] sm:$0x3] %vm517_vm1, %v665_v2  ;;  %v1889_v2 = vsel %vm517_vm1, %v1546_v10, 0.0 }
0x1626   :  { %v1538_v33 = vld [vmem:[#allocation4 + $0xe] sm:$0x3] }
0x1627   :  { %v953_v57 = vpop.permute.xlu1 %952  ;;  %v1539_v60 = vld [vmem:[#allocation5] sm:$0x3]  ;;  %v1702_v48 = vcombine.low %v1537_v39, %v1538_v33 }
0x1628   :  { %956 = vst.msk [vmem:[#allocation5 + $0x8] sm:$0x3] %vm517_vm1, %v953_v57  ;;  %v1563_v58 = vcombine.low %v1539_v60, %v1540_v49  ;;  %v1876_v59 = vsel %vm517_vm1, %v1539_v60, 0.0  ;;  %v1868_v49 = vsel %vm517_vm1, %v1536_v38, 0.0  ;;  %v2386_v57 = vpack.c.bf16 %v1893_v55, %v1892_v42 }
0x1629   :  { %v1878_v62 = vadd.f32 %v1877_v61, %v1876_v59  ;;  %v1716_v60 = vrot.slane %v1702_v48, %v2664_v26  ;;  %v1894_v61 = vld [vmem:[%s3105_s8 + $0x10] sm:$0xff] }
0x162a   :  { %v1571_v63 = vrot.slane %v1563_v58, %v2664_v26  ;;  %v1870_v58 = vsel %vm517_vm1, %v1537_v39, 0.0 }
0x162b   :  { %v1880_v5 = vadd.f32 %v1879_v1, %v1878_v62  ;;  %v1545_v6 = vld [vmem:[#allocation5 + $0xc] sm:$0x3] }
0x162c   :  { %v1579_v8 = vcombine.low %v1571_v63, %v1578_v0  ;;  %v1581_v14 = vcombine.low %v1545_v6, %v1546_v10  ;;  %v1887_v41 = vsel %vm517_vm1, %v1545_v6, 0.0  ;;  %v1895_v62 = vld [vmem:[%s3105_s8 + $0x18] sm:$0xff]  ;;  %v1709_v63 = vrot.slane %v1701_v44, %v2664_v26  ;;  %v2115_v10 = vld [vmem:[%s3104_s7] ss:$0 sm:$0xff] }
0x162d   :  { %v1882_v18 = vadd.f32 %v1881_v13, %v1880_v5  ;;  %v1872_v0 = vsel %vm517_vm1, %v1538_v33, 0.0  ;;  %v2389_v5 = vpack.c.bf16 %v1895_v62, %v1894_v61 }
0x162e   :  { %2183 = vmatprep.mubr.msk.f32.mxu0 %vm99_vm0, %v1579_v8  ;;  %v1595_v4 = vrot.slane %v1581_v14, %v2664_v26  ;;  %v1717_v3 = vcombine.low %v1709_v63, %v1716_v60 }
0x162f   :  { %v1543_v17 = vld [vmem:[#allocation5 + $0x8] sm:$0x3] }
0x1630   :  { %v1883_v22 = vsel %vm517_vm1, %v1543_v17, 0.0  ;;  %v1580_v23 = vcombine.low %v1543_v17, %v1544_v19 }
0x1631   :  { %v1884_v29 = vadd.f32 %v1883_v22, %v1882_v18  ;;  %v2118_v22 = vld [vmem:[%s3106_s9] ss:$0 sm:$0xff] }
0x1632   :  { %v1588_v34 = vrot.slane %v1580_v23, %v2664_v26 }
0x1633   :  { %v1886_v27 = vadd.f32 %v1885_v15, %v1884_v29 }
0x1634   :  { %v1596_v43 = vcombine.low %v1588_v34, %v1595_v4 }
0x1635   :  { %v1888_v54 = vadd.f32 %v1887_v41, %v1886_v27 }
0x1636   :  { %2184 = vmatmul.mubr.msk.f32.vlgmr.msra.gmra.mrb[10].mxu0 %vm99_vm0, %v1596_v43 }
0x1637   :  { %2374 = vmatpush3.bf16.msra.mxu0 %v2969_v47  ;;  %2194 = vmatprep.mubr.msk.f32.mxu0 %vm99_vm0, %v1700_v52  ;;  %v1890_v56 = vadd.f32 %v1889_v2, %v1888_v54  ;;  %v1869_v47 = vadd.f32 %v1868_v49, %v1867_v51 }
0x1638   :  { %2376 = vmatprep.subr.bf16.mxu0 %v2375_v45 }
0x1639   :  { %v1891_v59 = vmul.f32 0.125, %v1890_v56  ;;  %v1871_v1 = vadd.f32 %v1870_v58, %v1869_v47 }
0x163b   :  { %2378 = vmatpush3.bf16.msra.mxu0 %v2375_v45  ;;  %2206 = vmatmul.mubr.msk.f32.vlgmr.msra.gmra.mrb[10].mxu1 %vm99_vm0, %v1891_v59  ;;  %v1873_v6 = vadd.f32 %v1872_v0, %v1871_v1 }
0x163c   :  { %2387 = vmatpush3.bf16.msra.mxu1 %v2386_v57  ;;  %2216 = vmatprep.mubr.msk.f32.mxu1 %vm2557_vm3, %v2553_v50 }
0x163d   :  { %2388 = vmatprep.subr.bf16.mxu1 %v2556_v46  ;;  %v1875_v7 = vmul.f32 0.125, %v1873_v6 }
0x163e   :  { %2195 = vmatmul.mubr.msk.f32.vlgmr.msra.gmra.mrb[10].mxu0 %vm99_vm0, %v1717_v3 }
0x1640   :  { %2390 = vmatpush3.bf16.msra.mxu1 %v2389_v5 }
0x1643   :  { %2217 = vmatmul.mubr.msk.f32.vlgmr.msra.gmra.mrb[12].mxu1 %vm99_vm0, %v1875_v7 }
0x170e   :  { %v1969_v8 = vpop.f32.mrb[10].mxu1 }
0x170f   :  { %v2207_v9 = vpop.f32.mrb[11].mxu1 }
0x1711   :  { %v2196_v11 = vpop.f32.mrb[10].mxu0 }
0x1712   :  { %v1805_v12 = vadd.f32 %v2196_v11, %v2115_v10  ;;  %v1788_v13 = vpop.f32.mrb[11].mxu0 }
0x1713   :  { %v1804_v50 = vadd.f32 %v2115_v10, %v1788_v13 }
0x1714   :  { %v1825_v14 = vcombine.high %v1805_v12, %v1805_v12  ;;  %v1832_v46 = vrot.slane %v1805_v12, %v2664_v26 }
0x1715   :  { %v1808_v16 = vcombine.high %v1804_v50, %v1804_v50  ;;  %v1815_v17 = vrot.slane %v1804_v50, %v2664_v26 }
0x1716   :  { %v1839_v18 = vrot.slane %v1825_v14, %v2664_v26  ;;  %v1840_v19 = vcombine.high %v1832_v46, %v1832_v46  ;;  %1855 = vst.msk [vmem:[%s3107_s10 + $0x8] sm:$0x3] %vm1850_vm4, %v1832_v46  ;;  %v2042_v20 = vpop.f32.mrb[12].mxu1 }
0x1717   :  { %v1822_v23 = vrot.slane %v1808_v16, %v2664_v26  ;;  %v1823_v24 = vcombine.high %v1815_v17, %v1815_v17  ;;  %1851 = vst.msk [vmem:[%s3107_s10] sm:$0x3] %vm1850_vm4, %v1815_v17  ;;  %v2043_v25 = vadd.f32 %v2042_v20, %v1969_v8  ;;  %v2218_v28 = vpop.f32.mrb[13].mxu1 }
0x1718   :  { %v1841_v29 = vcombine.high %v1839_v18, %v1839_v18  ;;  %1856 = vst.msk [vmem:[%s3107_s10 + $0xa] sm:$0x3] %vm1850_vm4, %v1840_v19  ;;  %1857 = vst.msk [vmem:[%s3107_s10 + $0xc] sm:$0x3] %vm1850_vm4, %v1839_v18 }
0x1719   :  { %v1824_v26 = vcombine.high %v1822_v23, %v1822_v23  ;;  %1852 = vst.msk [vmem:[%s3107_s10 + $0x2] sm:$0x3] %vm1850_vm4, %v1823_v24  ;;  %1853 = vst.msk [vmem:[%s3107_s10 + $0x4] sm:$0x3] %vm1850_vm4, %v1822_v23  ;;  %v2053_v30 = vadd.f32 %v2118_v22, %v2043_v25 }
0x171a   :  { %1858 = vst.msk [vmem:[%s3107_s10 + $0xe] sm:$0x3] %vm1850_vm4, %v1841_v29 }
0x171b   :  { %1854 = vst.msk [vmem:[%s3107_s10 + $0x6] sm:$0x3] %vm1850_vm4, %v1824_v26 }
0x171c   :  { %2055 = vst.msk [vmem:[#allocation6] sm:$0x3] %vm2054_vm5, %v2053_v30 }
0x171d   :  { %2539 = shalt.err (!%p2536_p4)
}
0x171e   :  { %s2540_s21 = scalar_lea.hbm %s3108_s11, 32 }
0x171f   :  { %p2541_p5 = scmp.ne.s32.totalorder %s3108_s11, %s2540_s21  ;;  %p2544_p6 = scmp.lt.u32.totalorder %s2540_s21, %s3108_s11 }
0x1721   :  { %p2546_p7 = pnand %p2544_p6, %p2541_p5 }
0x1723   :  { %2549 = shalt.err (!%p2546_p7)
}
0x1724   :  { %2067 = dma.vmem_to_hbm [thread:$0]  %s2065_s30, 32, %s3108_s11, [#allocation7]  }
0x1725   :  { %2550 = dma.done.wait [#allocation7], 32  }
0x1726   :  { %2551 = vsyncadd [#allocation7], 4294967264 }
0x1727   :  { %2073 = vsyncpa [#allocation7], 1 }

</bundles_post_ra>
